<compile_context>
chip_gen: v7x
topology: tpu7x:2x2x1
jax: 0.10.0
libtpu: 0.0.40
codegen_flags: <defaults>
</compile_context>

<pallas_src>
import math

import jax
import jax.numpy as jnp
from jax import lax
from jax.experimental import pallas as pl
from jax.experimental.pallas import tpu as pltpu

# ----------------------------- model dimensions -----------------------------
N_CLS = 4          # number of classes
N_CTX = 2          # learned context tokens
SEQ_LEN = 8        # text context length (1 prefix + N_CTX + suffix)
TXT_DIM = 32       # text transformer width (ctx_dim)
EMB_DIM = 32       # shared CLIP embedding dim
VIS_DIM = 32       # vision transformer width
N_HEADS = 2
N_LAYERS = 2
IMG_SIZE = 16
PATCH = 8
IMG_C = 3
N_PATCH = (IMG_SIZE // PATCH) ** 2        # 4
VIS_SEQ = N_PATCH + 1                      # 5 (cls token + patches)
MLP_RATIO = 4
LN_EPS = 1e-5
NEG_INF = -1e30

SEL_ROWS = 8        # selection / feature rows padded to a full sublane tile
VIS_ROWS_PAD = 16   # B*VIS_SEQ = 10 padded up to a multiple of 8
OUT_LANES = 128     # lane-dense output slabs

# canonical per-layer weight ordering shared by wrapper and kernel
_BLOCK_FIELDS = ("ln1_w", "ln1_b", "wq", "bq", "wk", "bk", "wv", "bv",
                 "wo", "bo", "ln2_w", "ln2_b", "fc1_w", "fc1_b", "fc2_w", "fc2_b")


# --------------------- in-kernel building blocks (values) -------------------
def _layernorm(x, w, b):
    """x: (M, D); w, b: (1, D). All float32."""
    mu = jnp.mean(x, axis=-1, keepdims=True)
    xc = x - mu
    var = jnp.mean(xc * xc, axis=-1, keepdims=True)
    return xc * lax.rsqrt(var + LN_EPS) * w + b


_DN_T = (((1,), (1,)), ((), ()))   # dot_general: contract last dims (q @ k^T w/o transpose)


def _residual_block(x, bias, blk, l):
    """Pre-LN transformer block on a flattened (rows, D) activation.

    `blk` holds stacked-per-layer weight Refs; per-head q/k/v/out projections
    were pre-split in the wrapper so no lane slicing happens here.  MXU
    operands are bf16, accumulation f32; the additive (T, T) bias enforces
    per-sample block structure (+ causality for text)."""
    M, D = x.shape
    dh = blk["wq"].shape[-1]
    attn_scale = dh ** -0.5

    h = _layernorm(x, blk["ln1_w"][l], blk["ln1_b"][l]).astype(jnp.bfloat16)
    att = jnp.zeros((M, D), jnp.float32)
    for hh in range(N_HEADS):
        q = jnp.dot(h, blk["wq"][l, hh], preferred_element_type=jnp.float32) + blk["bq"][l, hh]
        k = jnp.dot(h, blk["wk"][l, hh], preferred_element_type=jnp.float32) + blk["bk"][l, hh]
        v = jnp.dot(h, blk["wv"][l, hh], preferred_element_type=jnp.float32) + blk["bv"][l, hh]
        s = lax.dot_general(q.astype(jnp.bfloat16), k.astype(jnp.bfloat16), _DN_T,
                            preferred_element_type=jnp.float32) * attn_scale + bias
        s = s - jnp.max(s, axis=-1, keepdims=True)
        p = jnp.exp(s)
        p = p * pl.reciprocal(jnp.sum(p, axis=-1, keepdims=True), approx=False)
        o = jnp.dot(p.astype(jnp.bfloat16), v.astype(jnp.bfloat16),
                    preferred_element_type=jnp.float32)
        att = att + jnp.dot(o.astype(jnp.bfloat16), blk["wo"][l, hh],
                            preferred_element_type=jnp.float32)
    x = x + att + blk["bo"][l]

    h2 = _layernorm(x, blk["ln2_w"][l], blk["ln2_b"][l]).astype(jnp.bfloat16)
    m = jnp.dot(h2, blk["fc1_w"][l], preferred_element_type=jnp.float32) + blk["fc1_b"][l]
    m = m * jax.nn.sigmoid(1.702 * m)                      # quick_gelu
    x = x + jnp.dot(m.astype(jnp.bfloat16), blk["fc2_w"][l],
                    preferred_element_type=jnp.float32) + blk["fc2_b"][l]
    return x


# ------------------------------ fused Pallas kernel --------------------------
def _promptsrc_fused_kernel(*refs):
    it = iter(refs)
    nxt = lambda: next(it)  # noqa: E731

    # ============================ text encoder ============================
    x = nxt()[...]                                 # (N_CLS*SEQ_LEN, D), pos added
    bias_t = nxt()[...]                            # (T, T) causal + block-diag mask
    tblk = {f: nxt() for f in _BLOCK_FIELDS}       # stacked-per-layer weight refs
    lnf_w = nxt()[...]
    lnf_b = nxt()[...]
    sel_t = nxt()[...]                             # (8, T) padded EOT selector
    tproj = nxt()[...]                             # (D, 128) bf16, lane-padded proj

    for l in range(N_LAYERS):                      # short static loop, unrolled
        x = _residual_block(x, bias_t, tblk, l)
    x = _layernorm(x, lnf_w, lnf_b)
    x_eot = jnp.dot(sel_t, x, preferred_element_type=jnp.float32)          # (8, D)
    txt_e = jnp.dot(x_eot.astype(jnp.bfloat16), tproj,
                    preferred_element_type=jnp.float32)                    # (8, 128)

    # =========================== vision encoder ===========================
    patches = nxt()[...]                           # (16, C*ph*pw) bf16, row-padded
    conv_w = nxt()[...]                            # (C*ph*pw, D) bf16
    poscls = nxt()[...]                            # (16, D) f32 (cls+pos, pad rows 0)
    lnpre_w = nxt()[...]
    lnpre_b = nxt()[...]
    bias_v = nxt()[...]                            # (16, 16) block-diag mask
    vblk = {f: nxt() for f in _BLOCK_FIELDS}
    lnpost_w = nxt()[...]
    lnpost_b = nxt()[...]
    sel_v = nxt()[...]                             # (8, 16) padded cls-row selector
    vproj = nxt()[...]                             # (D, 128) bf16

    xv = jnp.dot(patches, conv_w, preferred_element_type=jnp.float32) + poscls
    xv = _layernorm(xv, lnpre_w, lnpre_b)
    for l in range(N_LAYERS):
        xv = _residual_block(xv, bias_v, vblk, l)
    cls = jnp.dot(sel_v, xv, preferred_element_type=jnp.float32)           # (8, D)
    cls = _layernorm(cls, lnpost_w, lnpost_b)
    img_e = jnp.dot(cls.astype(jnp.bfloat16), vproj,
                    preferred_element_type=jnp.float32)                    # (8, 128)

    # ============================== CLIP head ==============================
    fixedn = nxt()[...]                            # (8, 128) pre-normalized teacher
    scale = nxt()[0]                               # SMEM scalar: exp(logit_scale)

    img_out = nxt()
    txt_out = nxt()
    head_out = nxt()

    imgn = img_e * lax.rsqrt(jnp.sum(img_e * img_e, axis=-1, keepdims=True))
    txtn = txt_e * lax.rsqrt(jnp.sum(txt_e * txt_e, axis=-1, keepdims=True))

    # One lane-dense (8, 128) head slab via a single matmul:
    #   cols [0:8)  -> prompted logits  (real at [:B, :N_CLS])
    #   cols [8:16) -> zero-shot logits (real at [:B, :N_CLS])
    kv_cat = jnp.concatenate(
        [txtn, fixedn,
         jnp.zeros((OUT_LANES - 2 * SEL_ROWS, OUT_LANES), jnp.float32)], axis=0)
    head = scale * lax.dot_general(imgn, kv_cat, _DN_T,
                                   preferred_element_type=jnp.float32)     # (8, 128)

    img_out[...] = imgn
    txt_out[...] = txtn
    head_out[...] = head


# ------------------------------ wrapper helpers ------------------------------
def _make_attn_bias(total, seq, *, causal):
    """Additive (total, total) bias: 0 where attention is allowed (same sample
    block of `seq` rows, and col<=row within the block if causal), -1e30
    elsewhere.  Pad rows fall into their own blocks and stay finite."""
    r = jnp.arange(total)
    row, col = r[:, None], r[None, :]
    ok = (row // seq) == (col // seq)
    if causal:
        ok = ok & ((col % seq) <= (row % seq))
    return jnp.where(ok, 0.0, NEG_INF).astype(jnp.float32)


def _pad_lanes(x, lanes):
    return jnp.concatenate(
        [x, jnp.zeros((x.shape[0], lanes - x.shape[1]), x.dtype)], axis=1)


def _split_block_weights(blocks, d, n_heads):
    """Split fused qkv / out-proj weights per head and cast MXU operands to
    bf16 so the kernel never slices a vreg at sub-128-lane offsets."""
    L = blocks["w_qkv"].shape[0]
    dh = d // n_heads
    bf = jnp.bfloat16
    wqkv = blocks["w_qkv"]            # (L, d, 3d)
    bqkv = blocks["b_qkv"]            # (L, 1, 3d)

    def split_w(start):               # -> (L, H, d, dh)
        return (wqkv[:, :, start:start + d]
                .reshape(L, d, n_heads, dh).transpose(0, 2, 1, 3))

    def split_b(start):               # -> (L, H, 1, dh)
        return (bqkv[:, :, start:start + d]
                .reshape(L, 1, n_heads, dh).transpose(0, 2, 1, 3))

    return dict(
        ln1_w=blocks["ln1_w"], ln1_b=blocks["ln1_b"],
        wq=split_w(0).astype(bf), bq=split_b(0),
        wk=split_w(d).astype(bf), bk=split_b(d),
        wv=split_w(2 * d).astype(bf), bv=split_b(2 * d),
        wo=blocks["w_out"].reshape(L, n_heads, dh, d).astype(bf),
        bo=blocks["b_out"],
        ln2_w=blocks["ln2_w"], ln2_b=blocks["ln2_b"],
        fc1_w=blocks["fc1_w"].astype(bf), fc1_b=blocks["fc1_b"],
        fc2_w=blocks["fc2_w"].astype(bf), fc2_b=blocks["fc2_b"],
    )


# ------------------------------- forward pass -------------------------------
def promptsrc_vl_forward(params, image, tokenized_prompts):
    """Returns (logits, text_features, fixed_embeddings, zero_shot_features,
    image_features, zero_shot_logits)  -- the 'living17'/'entity13' branch."""
    tp = params["text"]
    vp = params["vision"]
    bf = jnp.bfloat16
    B = image.shape[0]

    # ---- VLPromptLearner.forward: concat(prefix, ctx, suffix) + pos emb ----
    ctx = jnp.broadcast_to(tp["ctx"][None], (N_CLS, N_CTX, TXT_DIM))
    prompts = jnp.concatenate([tp["prefix"], ctx, tp["suffix"]], axis=1)
    x0_text = (prompts + tp["pos_emb"][None]).reshape(N_CLS * SEQ_LEN, TXT_DIM)

    # EOT gather as a padded one-hot selection matrix (pad rows re-select row 0
    # so every row of the padded selection stays finite downstream).
    eot = jnp.argmax(tokenized_prompts, axis=-1).astype(jnp.int32)
    idx_t = jnp.concatenate(
        [jnp.arange(N_CLS, dtype=jnp.int32) * SEQ_LEN + eot,
         jnp.zeros((SEL_ROWS - N_CLS,), jnp.int32)])
    sel_t = jax.nn.one_hot(idx_t, N_CLS * SEQ_LEN, dtype=jnp.float32)      # (8, 32)
    bias_t = _make_attn_bias(N_CLS * SEQ_LEN, SEQ_LEN, causal=True)

    text_blocks = _split_block_weights(tp["blocks"], TXT_DIM, N_HEADS)
    text_proj_pad = _pad_lanes(tp["text_proj"], OUT_LANES).astype(bf)

    # ---- vision preamble: NCHW -> row-padded (16, C*ph*pw) patch matrix ----
    hp = IMG_SIZE // PATCH
    cpp = IMG_C * PATCH * PATCH
    patches = image.reshape(B, IMG_C, hp, PATCH, hp, PATCH)
    patches = patches.transpose(0, 2, 4, 1, 3, 5).reshape(B, N_PATCH, cpp)
    patches = jnp.concatenate(
        [jnp.zeros((B, 1, cpp), jnp.float32), patches], axis=1)   # cls row = zeros
    patches = patches.reshape(B * VIS_SEQ, cpp)
    vis_rows = B * VIS_SEQ
    patches_pad = jnp.concatenate(
        [patches, jnp.zeros((VIS_ROWS_PAD - vis_rows, cpp), jnp.float32)],
        axis=0).astype(bf)

    poscls = vp["pos_emb"].at[0].add(vp["cls_emb"])               # cls emb folded in
    poscls_pad = jnp.concatenate(
        [jnp.tile(poscls, (B, 1)),
         jnp.zeros((VIS_ROWS_PAD - vis_rows, VIS_DIM), jnp.float32)], axis=0)

    idx_v = jnp.concatenate(
        [jnp.arange(B, dtype=jnp.int32) * VIS_SEQ,
         jnp.zeros((SEL_ROWS - B,), jnp.int32)])
    sel_v = jax.nn.one_hot(idx_v, VIS_ROWS_PAD, dtype=jnp.float32)         # (8, 16)
    bias_v = _make_attn_bias(VIS_ROWS_PAD, VIS_SEQ, causal=False)

    vis_blocks = _split_block_weights(vp["blocks"], VIS_DIM, N_HEADS)
    vis_proj_pad = _pad_lanes(vp["proj"], OUT_LANES).astype(bf)

    # ---- CLIP-head constants (fixed-embedding normalization hoisted out) ----
    fixed = params["fixed_embeddings"]
    fixedn = fixed * lax.rsqrt(jnp.sum(fixed * fixed, axis=-1, keepdims=True))
    fixedn_pad = _pad_lanes(
        jnp.concatenate([fixedn, jnp.zeros((SEL_ROWS - N_CLS, EMB_DIM),
                                           jnp.float32)], axis=0), OUT_LANES)
    scale_arr = jnp.exp(params["logit_scale"]).reshape(1).astype(jnp.float32)

    # ---- single fused kernel launch (no grid, everything VMEM-resident) ----
    text_args = ([x0_text, bias_t]
                 + [text_blocks[f] for f in _BLOCK_FIELDS]
                 + [tp["ln_final_w"], tp["ln_final_b"], sel_t, text_proj_pad])
    vis_args = ([patches_pad, vp["conv_w"].astype(bf), poscls_pad,
                 vp["ln_pre_w"], vp["ln_pre_b"], bias_v]
                + [vis_blocks[f] for f in _BLOCK_FIELDS]
                + [vp["ln_post_w"], vp["ln_post_b"], sel_v, vis_proj_pad])
    head_args = [fixedn_pad, scale_arr]          # scale_arr MUST stay last (SMEM)
    args = text_args + vis_args + head_args

    vmem = pl.BlockSpec(memory_space=pltpu.MemorySpace.VMEM)
    smem = pl.BlockSpec(memory_space=pltpu.MemorySpace.SMEM)
    in_specs = [vmem] * (len(args) - 1) + [smem]

    out_shape = tuple(jax.ShapeDtypeStruct((SEL_ROWS, OUT_LANES), jnp.float32)
                      for _ in range(3))
    img_out, txt_out, head_out = pl.pallas_call(
        _promptsrc_fused_kernel,
        out_shape=out_shape,
        in_specs=in_specs,
        out_specs=(vmem, vmem, vmem),
    )(*args)

    # ---- slice the lane-dense slabs back to natural shapes ----
    image_features = img_out[:B, :EMB_DIM]
    text_features = txt_out[:N_CLS, :EMB_DIM]
    logits = head_out[:B, :N_CLS]
    zero_shot_logits = head_out[:B, SEL_ROWS:SEL_ROWS + N_CLS]
    # ZS_image_encoder shares clip_model.visual weights -> identical features.
    zero_shot_features = image_features
    fixed_embeddings = fixedn

    return (logits, text_features, fixed_embeddings,
            zero_shot_features, image_features, zero_shot_logits)


# --------------------------- deterministic init ------------------------------
def _normal(key, shape, std=0.02):
    return std * jax.random.normal(key, shape, jnp.float32)


def init_block(key, d):
    ks = jax.random.split(key, 4)
    hidden = MLP_RATIO * d
    return dict(
        ln1_w=jnp.ones((1, d), jnp.float32), ln1_b=jnp.zeros((1, d), jnp.float32),
        w_qkv=_normal(ks[0], (d, 3 * d)), b_qkv=jnp.zeros((1, 3 * d), jnp.float32),
        w_out=_normal(ks[1], (d, d)), b_out=jnp.zeros((1, d), jnp.float32),
        ln2_w=jnp.ones((1, d), jnp.float32), ln2_b=jnp.zeros((1, d), jnp.float32),
        fc1_w=_normal(ks[2], (d, hidden)), fc1_b=jnp.zeros((1, hidden), jnp.float32),
        fc2_w=_normal(ks[3], (hidden, d)), fc2_b=jnp.zeros((1, d), jnp.float32),
    )


def _stack_blocks(keys, d):
    blocks = [init_block(k, d) for k in keys]
    return {name: jnp.stack([blk[name] for blk in blocks])
            for name in blocks[0]}    # each entry: (N_LAYERS, ...)


def init_params(key):
    kt, kv, kf = jax.random.split(key, 3)
    tks = jax.random.split(kt, 5 + N_LAYERS)
    vks = jax.random.split(kv, 4 + N_LAYERS)
    text = dict(
        prefix=_normal(tks[0], (N_CLS, 1, TXT_DIM)),                    # token_prefix
        suffix=_normal(tks[1], (N_CLS, SEQ_LEN - 1 - N_CTX, TXT_DIM)),  # token_suffix
        ctx=_normal(tks[2], (N_CTX, TXT_DIM)),                          # learned ctx
        pos_emb=_normal(tks[3], (SEQ_LEN, TXT_DIM), 0.01),
        ln_final_w=jnp.ones((1, TXT_DIM), jnp.float32),
        ln_final_b=jnp.zeros((1, TXT_DIM), jnp.float32),
        text_proj=_normal(tks[4], (TXT_DIM, EMB_DIM)),
        blocks=_stack_blocks(tks[5:5 + N_LAYERS], TXT_DIM),
    )
    vision = dict(
        conv_w=_normal(vks[0], (IMG_C * PATCH * PATCH, VIS_DIM)),
        cls_emb=_normal(vks[1], (VIS_DIM,)),
        pos_emb=_normal(vks[2], (VIS_SEQ, VIS_DIM), 0.01),
        ln_pre_w=jnp.ones((1, VIS_DIM), jnp.float32),
        ln_pre_b=jnp.zeros((1, VIS_DIM), jnp.float32),
        ln_post_w=jnp.ones((1, VIS_DIM), jnp.float32),
        ln_post_b=jnp.zeros((1, VIS_DIM), jnp.float32),
        proj=_normal(vks[3], (VIS_DIM, EMB_DIM)),
        blocks=_stack_blocks(vks[4:4 + N_LAYERS], VIS_DIM),
    )
    return dict(
        text=text,
        vision=vision,
        # fixed_embeddings buffer (synthetic teacher text features)
        fixed_embeddings=_normal(kf, (N_CLS, EMB_DIM), 1.0),
        logit_scale=jnp.asarray(math.log(1.0 / 0.07), jnp.float32),
    )


# ----------------------------------- main ------------------------------------
if __name__ == "__main__":
    key = jax.random.PRNGKey(0)
    kp, ki, ktok = jax.random.split(key, 3)

    params = init_params(kp)

    B = 2
    image = jax.random.normal(ki, (B, IMG_C, IMG_SIZE, IMG_SIZE), jnp.float32)

    # synthetic tokenized prompts: argmax along the row marks the EOT position
    tokens = jax.random.randint(ktok, (N_CLS, SEQ_LEN), 1, 100, jnp.int32)
    eot_pos = (4 + jnp.arange(N_CLS) % 3).astype(jnp.int32)          # within [4, 6]
    tokenized_prompts = tokens.at[jnp.arange(N_CLS), eot_pos].set(1000)

    fwd = jax.jit(promptsrc_vl_forward)
    outs = fwd(params, image, tokenized_prompts)
    jax.block_until_ready(outs)

    (logits, text_features, fixed_embeddings,
     zero_shot_features, image_features, zero_shot_logits) = outs
    assert logits.shape == (B, N_CLS)
    assert text_features.shape == (N_CLS, EMB_DIM)
    assert fixed_embeddings.shape == (N_CLS, EMB_DIM)
    assert zero_shot_features.shape == (B, EMB_DIM)
    assert image_features.shape == (B, EMB_DIM)
    assert zero_shot_logits.shape == (B, N_CLS)
    for name, t in (("logits", logits), ("text_features", text_features),
                    ("fixed_embeddings", fixed_embeddings),
                    ("image_features", image_features),
                    ("zero_shot_logits", zero_shot_logits)):
        assert bool(jnp.all(jnp.isfinite(t))), name

    print("KERNEL_OK")
</pallas_src>

<mosaic_0001>
module attributes {stable_mosaic.version = 11 : i64} {
  func.func @_promptsrc_fused_kernel(%arg0: memref<32x32xf32, #tpu.memory_space<vmem>>, %arg1: memref<32x32xf32, #tpu.memory_space<vmem>>, %arg2: memref<2x1x32xf32, #tpu.memory_space<vmem>>, %arg3: memref<2x1x32xf32, #tpu.memory_space<vmem>>, %arg4: memref<2x2x32x16xbf16, #tpu.memory_space<vmem>>, %arg5: memref<2x2x1x16xf32, #tpu.memory_space<vmem>>, %arg6: memref<2x2x32x16xbf16, #tpu.memory_space<vmem>>, %arg7: memref<2x2x1x16xf32, #tpu.memory_space<vmem>>, %arg8: memref<2x2x32x16xbf16, #tpu.memory_space<vmem>>, %arg9: memref<2x2x1x16xf32, #tpu.memory_space<vmem>>, %arg10: memref<2x2x16x32xbf16, #tpu.memory_space<vmem>>, %arg11: memref<2x1x32xf32, #tpu.memory_space<vmem>>, %arg12: memref<2x1x32xf32, #tpu.memory_space<vmem>>, %arg13: memref<2x1x32xf32, #tpu.memory_space<vmem>>, %arg14: memref<2x32x128xbf16, #tpu.memory_space<vmem>>, %arg15: memref<2x1x128xf32, #tpu.memory_space<vmem>>, %arg16: memref<2x128x32xbf16, #tpu.memory_space<vmem>>, %arg17: memref<2x1x32xf32, #tpu.memory_space<vmem>>, %arg18: memref<1x32xf32, #tpu.memory_space<vmem>>, %arg19: memref<1x32xf32, #tpu.memory_space<vmem>>, %arg20: memref<8x32xf32, #tpu.memory_space<vmem>>, %arg21: memref<32x128xbf16, #tpu.memory_space<vmem>>, %arg22: memref<16x192xbf16, #tpu.memory_space<vmem>>, %arg23: memref<192x32xbf16, #tpu.memory_space<vmem>>, %arg24: memref<16x32xf32, #tpu.memory_space<vmem>>, %arg25: memref<1x32xf32, #tpu.memory_space<vmem>>, %arg26: memref<1x32xf32, #tpu.memory_space<vmem>>, %arg27: memref<16x16xf32, #tpu.memory_space<vmem>>, %arg28: memref<2x1x32xf32, #tpu.memory_space<vmem>>, %arg29: memref<2x1x32xf32, #tpu.memory_space<vmem>>, %arg30: memref<2x2x32x16xbf16, #tpu.memory_space<vmem>>, %arg31: memref<2x2x1x16xf32, #tpu.memory_space<vmem>>, %arg32: memref<2x2x32x16xbf16, #tpu.memory_space<vmem>>, %arg33: memref<2x2x1x16xf32, #tpu.memory_space<vmem>>, %arg34: memref<2x2x32x16xbf16, #tpu.memory_space<vmem>>, %arg35: memref<2x2x1x16xf32, #tpu.memory_space<vmem>>, %arg36: memref<2x2x16x32xbf16, #tpu.memory_space<vmem>>, %arg37: memref<2x1x32xf32, #tpu.memory_space<vmem>>, %arg38: memref<2x1x32xf32, #tpu.memory_space<vmem>>, %arg39: memref<2x1x32xf32, #tpu.memory_space<vmem>>, %arg40: memref<2x32x128xbf16, #tpu.memory_space<vmem>>, %arg41: memref<2x1x128xf32, #tpu.memory_space<vmem>>, %arg42: memref<2x128x32xbf16, #tpu.memory_space<vmem>>, %arg43: memref<2x1x32xf32, #tpu.memory_space<vmem>>, %arg44: memref<1x32xf32, #tpu.memory_space<vmem>>, %arg45: memref<1x32xf32, #tpu.memory_space<vmem>>, %arg46: memref<8x16xf32, #tpu.memory_space<vmem>>, %arg47: memref<32x128xbf16, #tpu.memory_space<vmem>>, %arg48: memref<8x128xf32, #tpu.memory_space<vmem>>, %arg49: memref<1xf32, #tpu.memory_space<smem>>, %arg50: memref<8x128xf32, #tpu.memory_space<vmem>>, %arg51: memref<8x128xf32, #tpu.memory_space<vmem>>, %arg52: memref<8x128xf32, #tpu.memory_space<vmem>>) attributes {dimension_semantics = [], scalar_prefetch = 0 : i64, scratch_operands = 0 : i64, tpu.core_type = #tpu.core_type<tc>} {
    %c0 = arith.constant 0 : index
    %c0_0 = arith.constant 0 : index
    %0 = vector.load %arg0[%c0, %c0_0] : memref<32x32xf32, #tpu.memory_space<vmem>>, vector<32x32xf32>
    %c0_1 = arith.constant 0 : index
    %c0_2 = arith.constant 0 : index
    %1 = vector.load %arg1[%c0_1, %c0_2] : memref<32x32xf32, #tpu.memory_space<vmem>>, vector<32x32xf32>
    %c0_3 = arith.constant 0 : index
    %c0_4 = arith.constant 0 : index
    %2 = vector.load %arg18[%c0_3, %c0_4] : memref<1x32xf32, #tpu.memory_space<vmem>>, vector<1x32xf32>
    %c0_5 = arith.constant 0 : index
    %c0_6 = arith.constant 0 : index
    %3 = vector.load %arg19[%c0_5, %c0_6] : memref<1x32xf32, #tpu.memory_space<vmem>>, vector<1x32xf32>
    %c0_7 = arith.constant 0 : index
    %c0_8 = arith.constant 0 : index
    %4 = vector.load %arg20[%c0_7, %c0_8] : memref<8x32xf32, #tpu.memory_space<vmem>>, vector<8x32xf32>
    %c0_9 = arith.constant 0 : index
    %c0_10 = arith.constant 0 : index
    %5 = vector.load %arg21[%c0_9, %c0_10] : memref<32x128xbf16, #tpu.memory_space<vmem>>, vector<32x128xbf16>
    %c0_11 = arith.constant 0 : index
    %c0_12 = arith.constant 0 : index
    %c0_13 = arith.constant 0 : index
    %6 = vector.load %arg2[%c0_11, %c0_12, %c0_13] : memref<2x1x32xf32, #tpu.memory_space<vmem>>, vector<1x1x32xf32>
    %7 = vector.shape_cast %6 : vector<1x1x32xf32> to vector<1x32xf32>
    %c0_14 = arith.constant 0 : index
    %c0_15 = arith.constant 0 : index
    %c0_16 = arith.constant 0 : index
    %8 = vector.load %arg3[%c0_14, %c0_15, %c0_16] : memref<2x1x32xf32, #tpu.memory_space<vmem>>, vector<1x1x32xf32>
    %9 = vector.shape_cast %8 : vector<1x1x32xf32> to vector<1x32xf32>
    %cst = arith.constant dense<0.000000e+00> : vector<32xf32>
    %10 = vector.multi_reduction <add>, %0, %cst [1] : vector<32x32xf32> to vector<32xf32>
    %11 = vector.shape_cast %10 : vector<32xf32> to vector<32x1xf32>
    %cst_17 = arith.constant 3.200000e+01 : f32
    %12 = vector.broadcast %cst_17 : f32 to vector<32x1xf32>
    %13 = arith.divf %11, %12 : vector<32x1xf32>
    %14 = vector.broadcast %13 : vector<32x1xf32> to vector<32x32xf32>
    %15 = arith.subf %0, %14 : vector<32x32xf32>
    %16 = arith.mulf %15, %15 : vector<32x32xf32>
    %cst_18 = arith.constant dense<0.000000e+00> : vector<32xf32>
    %17 = vector.multi_reduction <add>, %16, %cst_18 [1] : vector<32x32xf32> to vector<32xf32>
    %18 = vector.shape_cast %17 : vector<32xf32> to vector<32x1xf32>
    %cst_19 = arith.constant 3.200000e+01 : f32
    %19 = vector.broadcast %cst_19 : f32 to vector<32x1xf32>
    %20 = arith.divf %18, %19 : vector<32x1xf32>
    %cst_20 = arith.constant 9.99999974E-6 : f32
    %21 = vector.broadcast %cst_20 : f32 to vector<32x1xf32>
    %22 = arith.addf %20, %21 : vector<32x1xf32>
    %23 = math.rsqrt %22 : vector<32x1xf32>
    %24 = vector.broadcast %23 : vector<32x1xf32> to vector<32x32xf32>
    %25 = arith.mulf %15, %24 : vector<32x32xf32>
    %26 = vector.broadcast %7 : vector<1x32xf32> to vector<32x32xf32>
    %27 = arith.mulf %25, %26 : vector<32x32xf32>
    %28 = vector.broadcast %9 : vector<1x32xf32> to vector<32x32xf32>
    %29 = arith.addf %27, %28 : vector<32x32xf32>
    %30 = arith.truncf %29 : vector<32x32xf32> to vector<32x32xbf16>
    %cst_21 = arith.constant 0.000000e+00 : f32
    %31 = vector.broadcast %cst_21 : f32 to vector<32x32xf32>
    %c0_22 = arith.constant 0 : index
    %c0_23 = arith.constant 0 : index
    %c0_24 = arith.constant 0 : index
    %c0_25 = arith.constant 0 : index
    %32 = vector.load %arg4[%c0_22, %c0_23, %c0_24, %c0_25] : memref<2x2x32x16xbf16, #tpu.memory_space<vmem>>, vector<1x1x32x16xbf16>
    %33 = vector.shape_cast %32 : vector<1x1x32x16xbf16> to vector<32x16xbf16>
    %cst_26 = arith.constant dense<0.000000e+00> : vector<32x16xf32>
    %34 = tpu.matmul %30, %33, %cst_26 {dimension_numbers = #tpu.dot_dimension_numbers<[1], [0], [0], [1], [0, 0, 1, 1], [], []>} : vector<32x32xbf16>, vector<32x16xbf16>, vector<32x16xf32> -> vector<32x16xf32>
    %c0_27 = arith.constant 0 : index
    %c0_28 = arith.constant 0 : index
    %c0_29 = arith.constant 0 : index
    %c0_30 = arith.constant 0 : index
    %35 = vector.load %arg5[%c0_27, %c0_28, %c0_29, %c0_30] : memref<2x2x1x16xf32, #tpu.memory_space<vmem>>, vector<1x1x1x16xf32>
    %36 = vector.shape_cast %35 : vector<1x1x1x16xf32> to vector<1x16xf32>
    %37 = vector.broadcast %36 : vector<1x16xf32> to vector<32x16xf32>
    %38 = arith.addf %34, %37 : vector<32x16xf32>
    %c0_31 = arith.constant 0 : index
    %c0_32 = arith.constant 0 : index
    %c0_33 = arith.constant 0 : index
    %c0_34 = arith.constant 0 : index
    %39 = vector.load %arg6[%c0_31, %c0_32, %c0_33, %c0_34] : memref<2x2x32x16xbf16, #tpu.memory_space<vmem>>, vector<1x1x32x16xbf16>
    %40 = vector.shape_cast %39 : vector<1x1x32x16xbf16> to vector<32x16xbf16>
    %cst_35 = arith.constant dense<0.000000e+00> : vector<32x16xf32>
    %41 = tpu.matmul %30, %40, %cst_35 {dimension_numbers = #tpu.dot_dimension_numbers<[1], [0], [0], [1], [0, 0, 1, 1], [], []>} : vector<32x32xbf16>, vector<32x16xbf16>, vector<32x16xf32> -> vector<32x16xf32>
    %c0_36 = arith.constant 0 : index
    %c0_37 = arith.constant 0 : index
    %c0_38 = arith.constant 0 : index
    %c0_39 = arith.constant 0 : index
    %42 = vector.load %arg7[%c0_36, %c0_37, %c0_38, %c0_39] : memref<2x2x1x16xf32, #tpu.memory_space<vmem>>, vector<1x1x1x16xf32>
    %43 = vector.shape_cast %42 : vector<1x1x1x16xf32> to vector<1x16xf32>
    %44 = vector.broadcast %43 : vector<1x16xf32> to vector<32x16xf32>
    %45 = arith.addf %41, %44 : vector<32x16xf32>
    %c0_40 = arith.constant 0 : index
    %c0_41 = arith.constant 0 : index
    %c0_42 = arith.constant 0 : index
    %c0_43 = arith.constant 0 : index
    %46 = vector.load %arg8[%c0_40, %c0_41, %c0_42, %c0_43] : memref<2x2x32x16xbf16, #tpu.memory_space<vmem>>, vector<1x1x32x16xbf16>
    %47 = vector.shape_cast %46 : vector<1x1x32x16xbf16> to vector<32x16xbf16>
    %cst_44 = arith.constant dense<0.000000e+00> : vector<32x16xf32>
    %48 = tpu.matmul %30, %47, %cst_44 {dimension_numbers = #tpu.dot_dimension_numbers<[1], [0], [0], [1], [0, 0, 1, 1], [], []>} : vector<32x32xbf16>, vector<32x16xbf16>, vector<32x16xf32> -> vector<32x16xf32>
    %c0_45 = arith.constant 0 : index
    %c0_46 = arith.constant 0 : index
    %c0_47 = arith.constant 0 : index
    %c0_48 = arith.constant 0 : index
    %49 = vector.load %arg9[%c0_45, %c0_46, %c0_47, %c0_48] : memref<2x2x1x16xf32, #tpu.memory_space<vmem>>, vector<1x1x1x16xf32>
    %50 = vector.shape_cast %49 : vector<1x1x1x16xf32> to vector<1x16xf32>
    %51 = vector.broadcast %50 : vector<1x16xf32> to vector<32x16xf32>
    %52 = arith.addf %48, %51 : vector<32x16xf32>
    %53 = arith.truncf %38 : vector<32x16xf32> to vector<32x16xbf16>
    %54 = arith.truncf %45 : vector<32x16xf32> to vector<32x16xbf16>
    %cst_49 = arith.constant dense<0.000000e+00> : vector<32x32xf32>
    %55 = tpu.matmul %53, %54, %cst_49 {dimension_numbers = #tpu.dot_dimension_numbers<[1], [1], [0], [0], [0, 0, 1, 0], [], []>} : vector<32x16xbf16>, vector<32x16xbf16>, vector<32x32xf32> -> vector<32x32xf32>
    %cst_50 = arith.constant 2.500000e-01 : f32
    %56 = vector.broadcast %cst_50 : f32 to vector<32x32xf32>
    %57 = arith.mulf %55, %56 : vector<32x32xf32>
    %58 = arith.addf %57, %1 : vector<32x32xf32>
    %cst_51 = arith.constant dense<0xFF800000> : vector<32xf32>
    %59 = vector.multi_reduction <maximumf>, %58, %cst_51 [1] : vector<32x32xf32> to vector<32xf32>
    %60 = vector.shape_cast %59 : vector<32xf32> to vector<32x1xf32>
    %61 = vector.broadcast %60 : vector<32x1xf32> to vector<32x32xf32>
    %62 = arith.subf %58, %61 : vector<32x32xf32>
    %63 = math.exp %62 : vector<32x32xf32>
    %cst_52 = arith.constant dense<0.000000e+00> : vector<32xf32>
    %64 = vector.multi_reduction <add>, %63, %cst_52 [1] : vector<32x32xf32> to vector<32xf32>
    %65 = vector.shape_cast %64 : vector<32xf32> to vector<32x1xf32>
    %66 = tpu.reciprocal %65 : vector<32x1xf32> -> vector<32x1xf32>
    %67 = vector.broadcast %66 : vector<32x1xf32> to vector<32x32xf32>
    %68 = arith.mulf %63, %67 : vector<32x32xf32>
    %69 = arith.truncf %68 : vector<32x32xf32> to vector<32x32xbf16>
    %70 = arith.truncf %52 : vector<32x16xf32> to vector<32x16xbf16>
    %cst_53 = arith.constant dense<0.000000e+00> : vector<32x16xf32>
    %71 = tpu.matmul %69, %70, %cst_53 {dimension_numbers = #tpu.dot_dimension_numbers<[1], [0], [0], [1], [0, 0, 1, 1], [], []>} : vector<32x32xbf16>, vector<32x16xbf16>, vector<32x16xf32> -> vector<32x16xf32>
    %72 = arith.truncf %71 : vector<32x16xf32> to vector<32x16xbf16>
    %c0_54 = arith.constant 0 : index
    %c0_55 = arith.constant 0 : index
    %c0_56 = arith.constant 0 : index
    %c0_57 = arith.constant 0 : index
    %73 = vector.load %arg10[%c0_54, %c0_55, %c0_56, %c0_57] : memref<2x2x16x32xbf16, #tpu.memory_space<vmem>>, vector<1x1x16x32xbf16>
    %74 = vector.shape_cast %73 : vector<1x1x16x32xbf16> to vector<16x32xbf16>
    %cst_58 = arith.constant dense<0.000000e+00> : vector<32x32xf32>
    %75 = tpu.matmul %72, %74, %cst_58 {dimension_numbers = #tpu.dot_dimension_numbers<[1], [0], [0], [1], [0, 0, 1, 1], [], []>} : vector<32x16xbf16>, vector<16x32xbf16>, vector<32x32xf32> -> vector<32x32xf32>
    %76 = arith.addf %31, %75 : vector<32x32xf32>
    %c0_59 = arith.constant 0 : index
    %c1 = arith.constant 1 : index
    %c0_60 = arith.constant 0 : index
    %c0_61 = arith.constant 0 : index
    %77 = vector.load %arg4[%c0_59, %c1, %c0_60, %c0_61] : memref<2x2x32x16xbf16, #tpu.memory_space<vmem>>, vector<1x1x32x16xbf16>
    %78 = vector.shape_cast %77 : vector<1x1x32x16xbf16> to vector<32x16xbf16>
    %cst_62 = arith.constant dense<0.000000e+00> : vector<32x16xf32>
    %79 = tpu.matmul %30, %78, %cst_62 {dimension_numbers = #tpu.dot_dimension_numbers<[1], [0], [0], [1], [0, 0, 1, 1], [], []>} : vector<32x32xbf16>, vector<32x16xbf16>, vector<32x16xf32> -> vector<32x16xf32>
    %c0_63 = arith.constant 0 : index
    %c1_64 = arith.constant 1 : index
    %c0_65 = arith.constant 0 : index
    %c0_66 = arith.constant 0 : index
    %80 = vector.load %arg5[%c0_63, %c1_64, %c0_65, %c0_66] : memref<2x2x1x16xf32, #tpu.memory_space<vmem>>, vector<1x1x1x16xf32>
    %81 = vector.shape_cast %80 : vector<1x1x1x16xf32> to vector<1x16xf32>
    %82 = vector.broadcast %81 : vector<1x16xf32> to vector<32x16xf32>
    %83 = arith.addf %79, %82 : vector<32x16xf32>
    %c0_67 = arith.constant 0 : index
    %c1_68 = arith.constant 1 : index
    %c0_69 = arith.constant 0 : index
    %c0_70 = arith.constant 0 : index
    %84 = vector.load %arg6[%c0_67, %c1_68, %c0_69, %c0_70] : memref<2x2x32x16xbf16, #tpu.memory_space<vmem>>, vector<1x1x32x16xbf16>
    %85 = vector.shape_cast %84 : vector<1x1x32x16xbf16> to vector<32x16xbf16>
    %cst_71 = arith.constant dense<0.000000e+00> : vector<32x16xf32>
    %86 = tpu.matmul %30, %85, %cst_71 {dimension_numbers = #tpu.dot_dimension_numbers<[1], [0], [0], [1], [0, 0, 1, 1], [], []>} : vector<32x32xbf16>, vector<32x16xbf16>, vector<32x16xf32> -> vector<32x16xf32>
    %c0_72 = arith.constant 0 : index
    %c1_73 = arith.constant 1 : index
    %c0_74 = arith.constant 0 : index
    %c0_75 = arith.constant 0 : index
    %87 = vector.load %arg7[%c0_72, %c1_73, %c0_74, %c0_75] : memref<2x2x1x16xf32, #tpu.memory_space<vmem>>, vector<1x1x1x16xf32>
    %88 = vector.shape_cast %87 : vector<1x1x1x16xf32> to vector<1x16xf32>
    %89 = vector.broadcast %88 : vector<1x16xf32> to vector<32x16xf32>
    %90 = arith.addf %86, %89 : vector<32x16xf32>
    %c0_76 = arith.constant 0 : index
    %c1_77 = arith.constant 1 : index
    %c0_78 = arith.constant 0 : index
    %c0_79 = arith.constant 0 : index
    %91 = vector.load %arg8[%c0_76, %c1_77, %c0_78, %c0_79] : memref<2x2x32x16xbf16, #tpu.memory_space<vmem>>, vector<1x1x32x16xbf16>
    %92 = vector.shape_cast %91 : vector<1x1x32x16xbf16> to vector<32x16xbf16>
    %cst_80 = arith.constant dense<0.000000e+00> : vector<32x16xf32>
    %93 = tpu.matmul %30, %92, %cst_80 {dimension_numbers = #tpu.dot_dimension_numbers<[1], [0], [0], [1], [0, 0, 1, 1], [], []>} : vector<32x32xbf16>, vector<32x16xbf16>, vector<32x16xf32> -> vector<32x16xf32>
    %c0_81 = arith.constant 0 : index
    %c1_82 = arith.constant 1 : index
    %c0_83 = arith.constant 0 : index
    %c0_84 = arith.constant 0 : index
    %94 = vector.load %arg9[%c0_81, %c1_82, %c0_83, %c0_84] : memref<2x2x1x16xf32, #tpu.memory_space<vmem>>, vector<1x1x1x16xf32>
    %95 = vector.shape_cast %94 : vector<1x1x1x16xf32> to vector<1x16xf32>
    %96 = vector.broadcast %95 : vector<1x16xf32> to vector<32x16xf32>
    %97 = arith.addf %93, %96 : vector<32x16xf32>
    %98 = arith.truncf %83 : vector<32x16xf32> to vector<32x16xbf16>
    %99 = arith.truncf %90 : vector<32x16xf32> to vector<32x16xbf16>
    %cst_85 = arith.constant dense<0.000000e+00> : vector<32x32xf32>
    %100 = tpu.matmul %98, %99, %cst_85 {dimension_numbers = #tpu.dot_dimension_numbers<[1], [1], [0], [0], [0, 0, 1, 0], [], []>} : vector<32x16xbf16>, vector<32x16xbf16>, vector<32x32xf32> -> vector<32x32xf32>
    %cst_86 = arith.constant 2.500000e-01 : f32
    %101 = vector.broadcast %cst_86 : f32 to vector<32x32xf32>
    %102 = arith.mulf %100, %101 : vector<32x32xf32>
    %103 = arith.addf %102, %1 : vector<32x32xf32>
    %cst_87 = arith.constant dense<0xFF800000> : vector<32xf32>
    %104 = vector.multi_reduction <maximumf>, %103, %cst_87 [1] : vector<32x32xf32> to vector<32xf32>
    %105 = vector.shape_cast %104 : vector<32xf32> to vector<32x1xf32>
    %106 = vector.broadcast %105 : vector<32x1xf32> to vector<32x32xf32>
    %107 = arith.subf %103, %106 : vector<32x32xf32>
    %108 = math.exp %107 : vector<32x32xf32>
    %cst_88 = arith.constant dense<0.000000e+00> : vector<32xf32>
    %109 = vector.multi_reduction <add>, %108, %cst_88 [1] : vector<32x32xf32> to vector<32xf32>
    %110 = vector.shape_cast %109 : vector<32xf32> to vector<32x1xf32>
    %111 = tpu.reciprocal %110 : vector<32x1xf32> -> vector<32x1xf32>
    %112 = vector.broadcast %111 : vector<32x1xf32> to vector<32x32xf32>
    %113 = arith.mulf %108, %112 : vector<32x32xf32>
    %114 = arith.truncf %113 : vector<32x32xf32> to vector<32x32xbf16>
    %115 = arith.truncf %97 : vector<32x16xf32> to vector<32x16xbf16>
    %cst_89 = arith.constant dense<0.000000e+00> : vector<32x16xf32>
    %116 = tpu.matmul %114, %115, %cst_89 {dimension_numbers = #tpu.dot_dimension_numbers<[1], [0], [0], [1], [0, 0, 1, 1], [], []>} : vector<32x32xbf16>, vector<32x16xbf16>, vector<32x16xf32> -> vector<32x16xf32>
    %117 = arith.truncf %116 : vector<32x16xf32> to vector<32x16xbf16>
    %c0_90 = arith.constant 0 : index
    %c1_91 = arith.constant 1 : index
    %c0_92 = arith.constant 0 : index
    %c0_93 = arith.constant 0 : index
    %118 = vector.load %arg10[%c0_90, %c1_91, %c0_92, %c0_93] : memref<2x2x16x32xbf16, #tpu.memory_space<vmem>>, vector<1x1x16x32xbf16>
    %119 = vector.shape_cast %118 : vector<1x1x16x32xbf16> to vector<16x32xbf16>
    %cst_94 = arith.constant dense<0.000000e+00> : vector<32x32xf32>
    %120 = tpu.matmul %117, %119, %cst_94 {dimension_numbers = #tpu.dot_dimension_numbers<[1], [0], [0], [1], [0, 0, 1, 1], [], []>} : vector<32x16xbf16>, vector<16x32xbf16>, vector<32x32xf32> -> vector<32x32xf32>
    %121 = arith.addf %76, %120 : vector<32x32xf32>
    %122 = arith.addf %0, %121 : vector<32x32xf32>
    %c0_95 = arith.constant 0 : index
    %c0_96 = arith.constant 0 : index
    %c0_97 = arith.constant 0 : index
    %123 = vector.load %arg11[%c0_95, %c0_96, %c0_97] : memref<2x1x32xf32, #tpu.memory_space<vmem>>, vector<1x1x32xf32>
    %124 = vector.shape_cast %123 : vector<1x1x32xf32> to vector<1x32xf32>
    %125 = vector.broadcast %124 : vector<1x32xf32> to vector<32x32xf32>
    %126 = arith.addf %122, %125 : vector<32x32xf32>
    %c0_98 = arith.constant 0 : index
    %c0_99 = arith.constant 0 : index
    %c0_100 = arith.constant 0 : index
    %127 = vector.load %arg12[%c0_98, %c0_99, %c0_100] : memref<2x1x32xf32, #tpu.memory_space<vmem>>, vector<1x1x32xf32>
    %128 = vector.shape_cast %127 : vector<1x1x32xf32> to vector<1x32xf32>
    %c0_101 = arith.constant 0 : index
    %c0_102 = arith.constant 0 : index
    %c0_103 = arith.constant 0 : index
    %129 = vector.load %arg13[%c0_101, %c0_102, %c0_103] : memref<2x1x32xf32, #tpu.memory_space<vmem>>, vector<1x1x32xf32>
    %130 = vector.shape_cast %129 : vector<1x1x32xf32> to vector<1x32xf32>
    %cst_104 = arith.constant dense<0.000000e+00> : vector<32xf32>
    %131 = vector.multi_reduction <add>, %126, %cst_104 [1] : vector<32x32xf32> to vector<32xf32>
    %132 = vector.shape_cast %131 : vector<32xf32> to vector<32x1xf32>
    %cst_105 = arith.constant 3.200000e+01 : f32
    %133 = vector.broadcast %cst_105 : f32 to vector<32x1xf32>
    %134 = arith.divf %132, %133 : vector<32x1xf32>
    %135 = vector.broadcast %134 : vector<32x1xf32> to vector<32x32xf32>
    %136 = arith.subf %126, %135 : vector<32x32xf32>
    %137 = arith.mulf %136, %136 : vector<32x32xf32>
    %cst_106 = arith.constant dense<0.000000e+00> : vector<32xf32>
    %138 = vector.multi_reduction <add>, %137, %cst_106 [1] : vector<32x32xf32> to vector<32xf32>
    %139 = vector.shape_cast %138 : vector<32xf32> to vector<32x1xf32>
    %cst_107 = arith.constant 3.200000e+01 : f32
    %140 = vector.broadcast %cst_107 : f32 to vector<32x1xf32>
    %141 = arith.divf %139, %140 : vector<32x1xf32>
    %cst_108 = arith.constant 9.99999974E-6 : f32
    %142 = vector.broadcast %cst_108 : f32 to vector<32x1xf32>
    %143 = arith.addf %141, %142 : vector<32x1xf32>
    %144 = math.rsqrt %143 : vector<32x1xf32>
    %145 = vector.broadcast %144 : vector<32x1xf32> to vector<32x32xf32>
    %146 = arith.mulf %136, %145 : vector<32x32xf32>
    %147 = vector.broadcast %128 : vector<1x32xf32> to vector<32x32xf32>
    %148 = arith.mulf %146, %147 : vector<32x32xf32>
    %149 = vector.broadcast %130 : vector<1x32xf32> to vector<32x32xf32>
    %150 = arith.addf %148, %149 : vector<32x32xf32>
    %151 = arith.truncf %150 : vector<32x32xf32> to vector<32x32xbf16>
    %c0_109 = arith.constant 0 : index
    %c0_110 = arith.constant 0 : index
    %c0_111 = arith.constant 0 : index
    %152 = vector.load %arg14[%c0_109, %c0_110, %c0_111] : memref<2x32x128xbf16, #tpu.memory_space<vmem>>, vector<1x32x128xbf16>
    %153 = vector.shape_cast %152 : vector<1x32x128xbf16> to vector<32x128xbf16>
    %cst_112 = arith.constant dense<0.000000e+00> : vector<32x128xf32>
    %154 = tpu.matmul %151, %153, %cst_112 {dimension_numbers = #tpu.dot_dimension_numbers<[1], [0], [0], [1], [0, 0, 1, 1], [], []>} : vector<32x32xbf16>, vector<32x128xbf16>, vector<32x128xf32> -> vector<32x128xf32>
    %c0_113 = arith.constant 0 : index
    %c0_114 = arith.constant 0 : index
    %c0_115 = arith.constant 0 : index
    %155 = vector.load %arg15[%c0_113, %c0_114, %c0_115] : memref<2x1x128xf32, #tpu.memory_space<vmem>>, vector<1x1x128xf32>
    %156 = vector.shape_cast %155 : vector<1x1x128xf32> to vector<1x128xf32>
    %157 = vector.broadcast %156 : vector<1x128xf32> to vector<32x128xf32>
    %158 = arith.addf %154, %157 : vector<32x128xf32>
    %cst_116 = arith.constant 1.702000e+00 : f32
    %159 = vector.broadcast %cst_116 : f32 to vector<32x128xf32>
    %160 = arith.mulf %159, %158 : vector<32x128xf32>
    %161 = arith.negf %160 : vector<32x128xf32>
    %162 = math.exp %161 : vector<32x128xf32>
    %cst_117 = arith.constant 1.000000e+00 : f32
    %163 = vector.broadcast %cst_117 : f32 to vector<32x128xf32>
    %164 = arith.addf %163, %162 : vector<32x128xf32>
    %165 = arith.divf %163, %164 : vector<32x128xf32>
    %166 = arith.mulf %158, %165 : vector<32x128xf32>
    %167 = arith.truncf %166 : vector<32x128xf32> to vector<32x128xbf16>
    %c0_118 = arith.constant 0 : index
    %c0_119 = arith.constant 0 : index
    %c0_120 = arith.constant 0 : index
    %168 = vector.load %arg16[%c0_118, %c0_119, %c0_120] : memref<2x128x32xbf16, #tpu.memory_space<vmem>>, vector<1x128x32xbf16>
    %169 = vector.shape_cast %168 : vector<1x128x32xbf16> to vector<128x32xbf16>
    %cst_121 = arith.constant dense<0.000000e+00> : vector<32x32xf32>
    %170 = tpu.matmul %167, %169, %cst_121 {dimension_numbers = #tpu.dot_dimension_numbers<[1], [0], [0], [1], [0, 0, 1, 1], [], []>} : vector<32x128xbf16>, vector<128x32xbf16>, vector<32x32xf32> -> vector<32x32xf32>
    %171 = arith.addf %126, %170 : vector<32x32xf32>
    %c0_122 = arith.constant 0 : index
    %c0_123 = arith.constant 0 : index
    %c0_124 = arith.constant 0 : index
    %172 = vector.load %arg17[%c0_122, %c0_123, %c0_124] : memref<2x1x32xf32, #tpu.memory_space<vmem>>, vector<1x1x32xf32>
    %173 = vector.shape_cast %172 : vector<1x1x32xf32> to vector<1x32xf32>
    %174 = vector.broadcast %173 : vector<1x32xf32> to vector<32x32xf32>
    %175 = arith.addf %171, %174 : vector<32x32xf32>
    %c1_125 = arith.constant 1 : index
    %c0_126 = arith.constant 0 : index
    %c0_127 = arith.constant 0 : index
    %176 = vector.load %arg2[%c1_125, %c0_126, %c0_127] : memref<2x1x32xf32, #tpu.memory_space<vmem>>, vector<1x1x32xf32>
    %177 = vector.shape_cast %176 : vector<1x1x32xf32> to vector<1x32xf32>
    %c1_128 = arith.constant 1 : index
    %c0_129 = arith.constant 0 : index
    %c0_130 = arith.constant 0 : index
    %178 = vector.load %arg3[%c1_128, %c0_129, %c0_130] : memref<2x1x32xf32, #tpu.memory_space<vmem>>, vector<1x1x32xf32>
    %179 = vector.shape_cast %178 : vector<1x1x32xf32> to vector<1x32xf32>
    %cst_131 = arith.constant dense<0.000000e+00> : vector<32xf32>
    %180 = vector.multi_reduction <add>, %175, %cst_131 [1] : vector<32x32xf32> to vector<32xf32>
    %181 = vector.shape_cast %180 : vector<32xf32> to vector<32x1xf32>
    %cst_132 = arith.constant 3.200000e+01 : f32
    %182 = vector.broadcast %cst_132 : f32 to vector<32x1xf32>
    %183 = arith.divf %181, %182 : vector<32x1xf32>
    %184 = vector.broadcast %183 : vector<32x1xf32> to vector<32x32xf32>
    %185 = arith.subf %175, %184 : vector<32x32xf32>
    %186 = arith.mulf %185, %185 : vector<32x32xf32>
    %cst_133 = arith.constant dense<0.000000e+00> : vector<32xf32>
    %187 = vector.multi_reduction <add>, %186, %cst_133 [1] : vector<32x32xf32> to vector<32xf32>
    %188 = vector.shape_cast %187 : vector<32xf32> to vector<32x1xf32>
    %cst_134 = arith.constant 3.200000e+01 : f32
    %189 = vector.broadcast %cst_134 : f32 to vector<32x1xf32>
    %190 = arith.divf %188, %189 : vector<32x1xf32>
    %cst_135 = arith.constant 9.99999974E-6 : f32
    %191 = vector.broadcast %cst_135 : f32 to vector<32x1xf32>
    %192 = arith.addf %190, %191 : vector<32x1xf32>
    %193 = math.rsqrt %192 : vector<32x1xf32>
    %194 = vector.broadcast %193 : vector<32x1xf32> to vector<32x32xf32>
    %195 = arith.mulf %185, %194 : vector<32x32xf32>
    %196 = vector.broadcast %177 : vector<1x32xf32> to vector<32x32xf32>
    %197 = arith.mulf %195, %196 : vector<32x32xf32>
    %198 = vector.broadcast %179 : vector<1x32xf32> to vector<32x32xf32>
    %199 = arith.addf %197, %198 : vector<32x32xf32>
    %200 = arith.truncf %199 : vector<32x32xf32> to vector<32x32xbf16>
    %cst_136 = arith.constant 0.000000e+00 : f32
    %201 = vector.broadcast %cst_136 : f32 to vector<32x32xf32>
    %c1_137 = arith.constant 1 : index
    %c0_138 = arith.constant 0 : index
    %c0_139 = arith.constant 0 : index
    %c0_140 = arith.constant 0 : index
    %202 = vector.load %arg4[%c1_137, %c0_138, %c0_139, %c0_140] : memref<2x2x32x16xbf16, #tpu.memory_space<vmem>>, vector<1x1x32x16xbf16>
    %203 = vector.shape_cast %202 : vector<1x1x32x16xbf16> to vector<32x16xbf16>
    %cst_141 = arith.constant dense<0.000000e+00> : vector<32x16xf32>
    %204 = tpu.matmul %200, %203, %cst_141 {dimension_numbers = #tpu.dot_dimension_numbers<[1], [0], [0], [1], [0, 0, 1, 1], [], []>} : vector<32x32xbf16>, vector<32x16xbf16>, vector<32x16xf32> -> vector<32x16xf32>
    %c1_142 = arith.constant 1 : index
    %c0_143 = arith.constant 0 : index
    %c0_144 = arith.constant 0 : index
    %c0_145 = arith.constant 0 : index
    %205 = vector.load %arg5[%c1_142, %c0_143, %c0_144, %c0_145] : memref<2x2x1x16xf32, #tpu.memory_space<vmem>>, vector<1x1x1x16xf32>
    %206 = vector.shape_cast %205 : vector<1x1x1x16xf32> to vector<1x16xf32>
    %207 = vector.broadcast %206 : vector<1x16xf32> to vector<32x16xf32>
    %208 = arith.addf %204, %207 : vector<32x16xf32>
    %c1_146 = arith.constant 1 : index
    %c0_147 = arith.constant 0 : index
    %c0_148 = arith.constant 0 : index
    %c0_149 = arith.constant 0 : index
    %209 = vector.load %arg6[%c1_146, %c0_147, %c0_148, %c0_149] : memref<2x2x32x16xbf16, #tpu.memory_space<vmem>>, vector<1x1x32x16xbf16>
    %210 = vector.shape_cast %209 : vector<1x1x32x16xbf16> to vector<32x16xbf16>
    %cst_150 = arith.constant dense<0.000000e+00> : vector<32x16xf32>
    %211 = tpu.matmul %200, %210, %cst_150 {dimension_numbers = #tpu.dot_dimension_numbers<[1], [0], [0], [1], [0, 0, 1, 1], [], []>} : vector<32x32xbf16>, vector<32x16xbf16>, vector<32x16xf32> -> vector<32x16xf32>
    %c1_151 = arith.constant 1 : index
    %c0_152 = arith.constant 0 : index
    %c0_153 = arith.constant 0 : index
    %c0_154 = arith.constant 0 : index
    %212 = vector.load %arg7[%c1_151, %c0_152, %c0_153, %c0_154] : memref<2x2x1x16xf32, #tpu.memory_space<vmem>>, vector<1x1x1x16xf32>
    %213 = vector.shape_cast %212 : vector<1x1x1x16xf32> to vector<1x16xf32>
    %214 = vector.broadcast %213 : vector<1x16xf32> to vector<32x16xf32>
    %215 = arith.addf %211, %214 : vector<32x16xf32>
    %c1_155 = arith.constant 1 : index
    %c0_156 = arith.constant 0 : index
    %c0_157 = arith.constant 0 : index
    %c0_158 = arith.constant 0 : index
    %216 = vector.load %arg8[%c1_155, %c0_156, %c0_157, %c0_158] : memref<2x2x32x16xbf16, #tpu.memory_space<vmem>>, vector<1x1x32x16xbf16>
    %217 = vector.shape_cast %216 : vector<1x1x32x16xbf16> to vector<32x16xbf16>
    %cst_159 = arith.constant dense<0.000000e+00> : vector<32x16xf32>
    %218 = tpu.matmul %200, %217, %cst_159 {dimension_numbers = #tpu.dot_dimension_numbers<[1], [0], [0], [1], [0, 0, 1, 1], [], []>} : vector<32x32xbf16>, vector<32x16xbf16>, vector<32x16xf32> -> vector<32x16xf32>
    %c1_160 = arith.constant 1 : index
    %c0_161 = arith.constant 0 : index
    %c0_162 = arith.constant 0 : index
    %c0_163 = arith.constant 0 : index
    %219 = vector.load %arg9[%c1_160, %c0_161, %c0_162, %c0_163] : memref<2x2x1x16xf32, #tpu.memory_space<vmem>>, vector<1x1x1x16xf32>
    %220 = vector.shape_cast %219 : vector<1x1x1x16xf32> to vector<1x16xf32>
    %221 = vector.broadcast %220 : vector<1x16xf32> to vector<32x16xf32>
    %222 = arith.addf %218, %221 : vector<32x16xf32>
    %223 = arith.truncf %208 : vector<32x16xf32> to vector<32x16xbf16>
    %224 = arith.truncf %215 : vector<32x16xf32> to vector<32x16xbf16>
    %cst_164 = arith.constant dense<0.000000e+00> : vector<32x32xf32>
    %225 = tpu.matmul %223, %224, %cst_164 {dimension_numbers = #tpu.dot_dimension_numbers<[1], [1], [0], [0], [0, 0, 1, 0], [], []>} : vector<32x16xbf16>, vector<32x16xbf16>, vector<32x32xf32> -> vector<32x32xf32>
    %cst_165 = arith.constant 2.500000e-01 : f32
    %226 = vector.broadcast %cst_165 : f32 to vector<32x32xf32>
    %227 = arith.mulf %225, %226 : vector<32x32xf32>
    %228 = arith.addf %227, %1 : vector<32x32xf32>
    %cst_166 = arith.constant dense<0xFF800000> : vector<32xf32>
    %229 = vector.multi_reduction <maximumf>, %228, %cst_166 [1] : vector<32x32xf32> to vector<32xf32>
    %230 = vector.shape_cast %229 : vector<32xf32> to vector<32x1xf32>
    %231 = vector.broadcast %230 : vector<32x1xf32> to vector<32x32xf32>
    %232 = arith.subf %228, %231 : vector<32x32xf32>
    %233 = math.exp %232 : vector<32x32xf32>
    %cst_167 = arith.constant dense<0.000000e+00> : vector<32xf32>
    %234 = vector.multi_reduction <add>, %233, %cst_167 [1] : vector<32x32xf32> to vector<32xf32>
    %235 = vector.shape_cast %234 : vector<32xf32> to vector<32x1xf32>
    %236 = tpu.reciprocal %235 : vector<32x1xf32> -> vector<32x1xf32>
    %237 = vector.broadcast %236 : vector<32x1xf32> to vector<32x32xf32>
    %238 = arith.mulf %233, %237 : vector<32x32xf32>
    %239 = arith.truncf %238 : vector<32x32xf32> to vector<32x32xbf16>
    %240 = arith.truncf %222 : vector<32x16xf32> to vector<32x16xbf16>
    %cst_168 = arith.constant dense<0.000000e+00> : vector<32x16xf32>
    %241 = tpu.matmul %239, %240, %cst_168 {dimension_numbers = #tpu.dot_dimension_numbers<[1], [0], [0], [1], [0, 0, 1, 1], [], []>} : vector<32x32xbf16>, vector<32x16xbf16>, vector<32x16xf32> -> vector<32x16xf32>
    %242 = arith.truncf %241 : vector<32x16xf32> to vector<32x16xbf16>
    %c1_169 = arith.constant 1 : index
    %c0_170 = arith.constant 0 : index
    %c0_171 = arith.constant 0 : index
    %c0_172 = arith.constant 0 : index
    %243 = vector.load %arg10[%c1_169, %c0_170, %c0_171, %c0_172] : memref<2x2x16x32xbf16, #tpu.memory_space<vmem>>, vector<1x1x16x32xbf16>
    %244 = vector.shape_cast %243 : vector<1x1x16x32xbf16> to vector<16x32xbf16>
    %cst_173 = arith.constant dense<0.000000e+00> : vector<32x32xf32>
    %245 = tpu.matmul %242, %244, %cst_173 {dimension_numbers = #tpu.dot_dimension_numbers<[1], [0], [0], [1], [0, 0, 1, 1], [], []>} : vector<32x16xbf16>, vector<16x32xbf16>, vector<32x32xf32> -> vector<32x32xf32>
    %246 = arith.addf %201, %245 : vector<32x32xf32>
    %c1_174 = arith.constant 1 : index
    %c1_175 = arith.constant 1 : index
    %c0_176 = arith.constant 0 : index
    %c0_177 = arith.constant 0 : index
    %247 = vector.load %arg4[%c1_174, %c1_175, %c0_176, %c0_177] : memref<2x2x32x16xbf16, #tpu.memory_space<vmem>>, vector<1x1x32x16xbf16>
    %248 = vector.shape_cast %247 : vector<1x1x32x16xbf16> to vector<32x16xbf16>
    %cst_178 = arith.constant dense<0.000000e+00> : vector<32x16xf32>
    %249 = tpu.matmul %200, %248, %cst_178 {dimension_numbers = #tpu.dot_dimension_numbers<[1], [0], [0], [1], [0, 0, 1, 1], [], []>} : vector<32x32xbf16>, vector<32x16xbf16>, vector<32x16xf32> -> vector<32x16xf32>
    %c1_179 = arith.constant 1 : index
    %c1_180 = arith.constant 1 : index
    %c0_181 = arith.constant 0 : index
    %c0_182 = arith.constant 0 : index
    %250 = vector.load %arg5[%c1_179, %c1_180, %c0_181, %c0_182] : memref<2x2x1x16xf32, #tpu.memory_space<vmem>>, vector<1x1x1x16xf32>
    %251 = vector.shape_cast %250 : vector<1x1x1x16xf32> to vector<1x16xf32>
    %252 = vector.broadcast %251 : vector<1x16xf32> to vector<32x16xf32>
    %253 = arith.addf %249, %252 : vector<32x16xf32>
    %c1_183 = arith.constant 1 : index
    %c1_184 = arith.constant 1 : index
    %c0_185 = arith.constant 0 : index
    %c0_186 = arith.constant 0 : index
    %254 = vector.load %arg6[%c1_183, %c1_184, %c0_185, %c0_186] : memref<2x2x32x16xbf16, #tpu.memory_space<vmem>>, vector<1x1x32x16xbf16>
    %255 = vector.shape_cast %254 : vector<1x1x32x16xbf16> to vector<32x16xbf16>
    %cst_187 = arith.constant dense<0.000000e+00> : vector<32x16xf32>
    %256 = tpu.matmul %200, %255, %cst_187 {dimension_numbers = #tpu.dot_dimension_numbers<[1], [0], [0], [1], [0, 0, 1, 1], [], []>} : vector<32x32xbf16>, vector<32x16xbf16>, vector<32x16xf32> -> vector<32x16xf32>
    %c1_188 = arith.constant 1 : index
    %c1_189 = arith.constant 1 : index
    %c0_190 = arith.constant 0 : index
    %c0_191 = arith.constant 0 : index
    %257 = vector.load %arg7[%c1_188, %c1_189, %c0_190, %c0_191] : memref<2x2x1x16xf32, #tpu.memory_space<vmem>>, vector<1x1x1x16xf32>
    %258 = vector.shape_cast %257 : vector<1x1x1x16xf32> to vector<1x16xf32>
    %259 = vector.broadcast %258 : vector<1x16xf32> to vector<32x16xf32>
    %260 = arith.addf %256, %259 : vector<32x16xf32>
    %c1_192 = arith.constant 1 : index
    %c1_193 = arith.constant 1 : index
    %c0_194 = arith.constant 0 : index
    %c0_195 = arith.constant 0 : index
    %261 = vector.load %arg8[%c1_192, %c1_193, %c0_194, %c0_195] : memref<2x2x32x16xbf16, #tpu.memory_space<vmem>>, vector<1x1x32x16xbf16>
    %262 = vector.shape_cast %261 : vector<1x1x32x16xbf16> to vector<32x16xbf16>
    %cst_196 = arith.constant dense<0.000000e+00> : vector<32x16xf32>
    %263 = tpu.matmul %200, %262, %cst_196 {dimension_numbers = #tpu.dot_dimension_numbers<[1], [0], [0], [1], [0, 0, 1, 1], [], []>} : vector<32x32xbf16>, vector<32x16xbf16>, vector<32x16xf32> -> vector<32x16xf32>
    %c1_197 = arith.constant 1 : index
    %c1_198 = arith.constant 1 : index
    %c0_199 = arith.constant 0 : index
    %c0_200 = arith.constant 0 : index
    %264 = vector.load %arg9[%c1_197, %c1_198, %c0_199, %c0_200] : memref<2x2x1x16xf32, #tpu.memory_space<vmem>>, vector<1x1x1x16xf32>
    %265 = vector.shape_cast %264 : vector<1x1x1x16xf32> to vector<1x16xf32>
    %266 = vector.broadcast %265 : vector<1x16xf32> to vector<32x16xf32>
    %267 = arith.addf %263, %266 : vector<32x16xf32>
    %268 = arith.truncf %253 : vector<32x16xf32> to vector<32x16xbf16>
    %269 = arith.truncf %260 : vector<32x16xf32> to vector<32x16xbf16>
    %cst_201 = arith.constant dense<0.000000e+00> : vector<32x32xf32>
    %270 = tpu.matmul %268, %269, %cst_201 {dimension_numbers = #tpu.dot_dimension_numbers<[1], [1], [0], [0], [0, 0, 1, 0], [], []>} : vector<32x16xbf16>, vector<32x16xbf16>, vector<32x32xf32> -> vector<32x32xf32>
    %cst_202 = arith.constant 2.500000e-01 : f32
    %271 = vector.broadcast %cst_202 : f32 to vector<32x32xf32>
    %272 = arith.mulf %270, %271 : vector<32x32xf32>
    %273 = arith.addf %272, %1 : vector<32x32xf32>
    %cst_203 = arith.constant dense<0xFF800000> : vector<32xf32>
    %274 = vector.multi_reduction <maximumf>, %273, %cst_203 [1] : vector<32x32xf32> to vector<32xf32>
    %275 = vector.shape_cast %274 : vector<32xf32> to vector<32x1xf32>
    %276 = vector.broadcast %275 : vector<32x1xf32> to vector<32x32xf32>
    %277 = arith.subf %273, %276 : vector<32x32xf32>
    %278 = math.exp %277 : vector<32x32xf32>
    %cst_204 = arith.constant dense<0.000000e+00> : vector<32xf32>
    %279 = vector.multi_reduction <add>, %278, %cst_204 [1] : vector<32x32xf32> to vector<32xf32>
    %280 = vector.shape_cast %279 : vector<32xf32> to vector<32x1xf32>
    %281 = tpu.reciprocal %280 : vector<32x1xf32> -> vector<32x1xf32>
    %282 = vector.broadcast %281 : vector<32x1xf32> to vector<32x32xf32>
    %283 = arith.mulf %278, %282 : vector<32x32xf32>
    %284 = arith.truncf %283 : vector<32x32xf32> to vector<32x32xbf16>
    %285 = arith.truncf %267 : vector<32x16xf32> to vector<32x16xbf16>
    %cst_205 = arith.constant dense<0.000000e+00> : vector<32x16xf32>
    %286 = tpu.matmul %284, %285, %cst_205 {dimension_numbers = #tpu.dot_dimension_numbers<[1], [0], [0], [1], [0, 0, 1, 1], [], []>} : vector<32x32xbf16>, vector<32x16xbf16>, vector<32x16xf32> -> vector<32x16xf32>
    %287 = arith.truncf %286 : vector<32x16xf32> to vector<32x16xbf16>
    %c1_206 = arith.constant 1 : index
    %c1_207 = arith.constant 1 : index
    %c0_208 = arith.constant 0 : index
    %c0_209 = arith.constant 0 : index
    %288 = vector.load %arg10[%c1_206, %c1_207, %c0_208, %c0_209] : memref<2x2x16x32xbf16, #tpu.memory_space<vmem>>, vector<1x1x16x32xbf16>
    %289 = vector.shape_cast %288 : vector<1x1x16x32xbf16> to vector<16x32xbf16>
    %cst_210 = arith.constant dense<0.000000e+00> : vector<32x32xf32>
    %290 = tpu.matmul %287, %289, %cst_210 {dimension_numbers = #tpu.dot_dimension_numbers<[1], [0], [0], [1], [0, 0, 1, 1], [], []>} : vector<32x16xbf16>, vector<16x32xbf16>, vector<32x32xf32> -> vector<32x32xf32>
    %291 = arith.addf %246, %290 : vector<32x32xf32>
    %292 = arith.addf %175, %291 : vector<32x32xf32>
    %c1_211 = arith.constant 1 : index
    %c0_212 = arith.constant 0 : index
    %c0_213 = arith.constant 0 : index
    %293 = vector.load %arg11[%c1_211, %c0_212, %c0_213] : memref<2x1x32xf32, #tpu.memory_space<vmem>>, vector<1x1x32xf32>
    %294 = vector.shape_cast %293 : vector<1x1x32xf32> to vector<1x32xf32>
    %295 = vector.broadcast %294 : vector<1x32xf32> to vector<32x32xf32>
    %296 = arith.addf %292, %295 : vector<32x32xf32>
    %c1_214 = arith.constant 1 : index
    %c0_215 = arith.constant 0 : index
    %c0_216 = arith.constant 0 : index
    %297 = vector.load %arg12[%c1_214, %c0_215, %c0_216] : memref<2x1x32xf32, #tpu.memory_space<vmem>>, vector<1x1x32xf32>
    %298 = vector.shape_cast %297 : vector<1x1x32xf32> to vector<1x32xf32>
    %c1_217 = arith.constant 1 : index
    %c0_218 = arith.constant 0 : index
    %c0_219 = arith.constant 0 : index
    %299 = vector.load %arg13[%c1_217, %c0_218, %c0_219] : memref<2x1x32xf32, #tpu.memory_space<vmem>>, vector<1x1x32xf32>
    %300 = vector.shape_cast %299 : vector<1x1x32xf32> to vector<1x32xf32>
    %cst_220 = arith.constant dense<0.000000e+00> : vector<32xf32>
    %301 = vector.multi_reduction <add>, %296, %cst_220 [1] : vector<32x32xf32> to vector<32xf32>
    %302 = vector.shape_cast %301 : vector<32xf32> to vector<32x1xf32>
    %cst_221 = arith.constant 3.200000e+01 : f32
    %303 = vector.broadcast %cst_221 : f32 to vector<32x1xf32>
    %304 = arith.divf %302, %303 : vector<32x1xf32>
    %305 = vector.broadcast %304 : vector<32x1xf32> to vector<32x32xf32>
    %306 = arith.subf %296, %305 : vector<32x32xf32>
    %307 = arith.mulf %306, %306 : vector<32x32xf32>
    %cst_222 = arith.constant dense<0.000000e+00> : vector<32xf32>
    %308 = vector.multi_reduction <add>, %307, %cst_222 [1] : vector<32x32xf32> to vector<32xf32>
    %309 = vector.shape_cast %308 : vector<32xf32> to vector<32x1xf32>
    %cst_223 = arith.constant 3.200000e+01 : f32
    %310 = vector.broadcast %cst_223 : f32 to vector<32x1xf32>
    %311 = arith.divf %309, %310 : vector<32x1xf32>
    %cst_224 = arith.constant 9.99999974E-6 : f32
    %312 = vector.broadcast %cst_224 : f32 to vector<32x1xf32>
    %313 = arith.addf %311, %312 : vector<32x1xf32>
    %314 = math.rsqrt %313 : vector<32x1xf32>
    %315 = vector.broadcast %314 : vector<32x1xf32> to vector<32x32xf32>
    %316 = arith.mulf %306, %315 : vector<32x32xf32>
    %317 = vector.broadcast %298 : vector<1x32xf32> to vector<32x32xf32>
    %318 = arith.mulf %316, %317 : vector<32x32xf32>
    %319 = vector.broadcast %300 : vector<1x32xf32> to vector<32x32xf32>
    %320 = arith.addf %318, %319 : vector<32x32xf32>
    %321 = arith.truncf %320 : vector<32x32xf32> to vector<32x32xbf16>
    %c1_225 = arith.constant 1 : index
    %c0_226 = arith.constant 0 : index
    %c0_227 = arith.constant 0 : index
    %322 = vector.load %arg14[%c1_225, %c0_226, %c0_227] : memref<2x32x128xbf16, #tpu.memory_space<vmem>>, vector<1x32x128xbf16>
    %323 = vector.shape_cast %322 : vector<1x32x128xbf16> to vector<32x128xbf16>
    %cst_228 = arith.constant dense<0.000000e+00> : vector<32x128xf32>
    %324 = tpu.matmul %321, %323, %cst_228 {dimension_numbers = #tpu.dot_dimension_numbers<[1], [0], [0], [1], [0, 0, 1, 1], [], []>} : vector<32x32xbf16>, vector<32x128xbf16>, vector<32x128xf32> -> vector<32x128xf32>
    %c1_229 = arith.constant 1 : index
    %c0_230 = arith.constant 0 : index
    %c0_231 = arith.constant 0 : index
    %325 = vector.load %arg15[%c1_229, %c0_230, %c0_231] : memref<2x1x128xf32, #tpu.memory_space<vmem>>, vector<1x1x128xf32>
    %326 = vector.shape_cast %325 : vector<1x1x128xf32> to vector<1x128xf32>
    %327 = vector.broadcast %326 : vector<1x128xf32> to vector<32x128xf32>
    %328 = arith.addf %324, %327 : vector<32x128xf32>
    %cst_232 = arith.constant 1.702000e+00 : f32
    %329 = vector.broadcast %cst_232 : f32 to vector<32x128xf32>
    %330 = arith.mulf %329, %328 : vector<32x128xf32>
    %331 = arith.negf %330 : vector<32x128xf32>
    %332 = math.exp %331 : vector<32x128xf32>
    %cst_233 = arith.constant 1.000000e+00 : f32
    %333 = vector.broadcast %cst_233 : f32 to vector<32x128xf32>
    %334 = arith.addf %333, %332 : vector<32x128xf32>
    %335 = arith.divf %333, %334 : vector<32x128xf32>
    %336 = arith.mulf %328, %335 : vector<32x128xf32>
    %337 = arith.truncf %336 : vector<32x128xf32> to vector<32x128xbf16>
    %c1_234 = arith.constant 1 : index
    %c0_235 = arith.constant 0 : index
    %c0_236 = arith.constant 0 : index
    %338 = vector.load %arg16[%c1_234, %c0_235, %c0_236] : memref<2x128x32xbf16, #tpu.memory_space<vmem>>, vector<1x128x32xbf16>
    %339 = vector.shape_cast %338 : vector<1x128x32xbf16> to vector<128x32xbf16>
    %cst_237 = arith.constant dense<0.000000e+00> : vector<32x32xf32>
    %340 = tpu.matmul %337, %339, %cst_237 {dimension_numbers = #tpu.dot_dimension_numbers<[1], [0], [0], [1], [0, 0, 1, 1], [], []>} : vector<32x128xbf16>, vector<128x32xbf16>, vector<32x32xf32> -> vector<32x32xf32>
    %341 = arith.addf %296, %340 : vector<32x32xf32>
    %c1_238 = arith.constant 1 : index
    %c0_239 = arith.constant 0 : index
    %c0_240 = arith.constant 0 : index
    %342 = vector.load %arg17[%c1_238, %c0_239, %c0_240] : memref<2x1x32xf32, #tpu.memory_space<vmem>>, vector<1x1x32xf32>
    %343 = vector.shape_cast %342 : vector<1x1x32xf32> to vector<1x32xf32>
    %344 = vector.broadcast %343 : vector<1x32xf32> to vector<32x32xf32>
    %345 = arith.addf %341, %344 : vector<32x32xf32>
    %cst_241 = arith.constant dense<0.000000e+00> : vector<32xf32>
    %346 = vector.multi_reduction <add>, %345, %cst_241 [1] : vector<32x32xf32> to vector<32xf32>
    %347 = vector.shape_cast %346 : vector<32xf32> to vector<32x1xf32>
    %cst_242 = arith.constant 3.200000e+01 : f32
    %348 = vector.broadcast %cst_242 : f32 to vector<32x1xf32>
    %349 = arith.divf %347, %348 : vector<32x1xf32>
    %350 = vector.broadcast %349 : vector<32x1xf32> to vector<32x32xf32>
    %351 = arith.subf %345, %350 : vector<32x32xf32>
    %352 = arith.mulf %351, %351 : vector<32x32xf32>
    %cst_243 = arith.constant dense<0.000000e+00> : vector<32xf32>
    %353 = vector.multi_reduction <add>, %352, %cst_243 [1] : vector<32x32xf32> to vector<32xf32>
    %354 = vector.shape_cast %353 : vector<32xf32> to vector<32x1xf32>
    %cst_244 = arith.constant 3.200000e+01 : f32
    %355 = vector.broadcast %cst_244 : f32 to vector<32x1xf32>
    %356 = arith.divf %354, %355 : vector<32x1xf32>
    %cst_245 = arith.constant 9.99999974E-6 : f32
    %357 = vector.broadcast %cst_245 : f32 to vector<32x1xf32>
    %358 = arith.addf %356, %357 : vector<32x1xf32>
    %359 = math.rsqrt %358 : vector<32x1xf32>
    %360 = vector.broadcast %359 : vector<32x1xf32> to vector<32x32xf32>
    %361 = arith.mulf %351, %360 : vector<32x32xf32>
    %362 = vector.broadcast %2 : vector<1x32xf32> to vector<32x32xf32>
    %363 = arith.mulf %361, %362 : vector<32x32xf32>
    %364 = vector.broadcast %3 : vector<1x32xf32> to vector<32x32xf32>
    %365 = arith.addf %363, %364 : vector<32x32xf32>
    %cst_246 = arith.constant dense<0.000000e+00> : vector<8x32xf32>
    %366 = tpu.matmul %4, %365, %cst_246 {dimension_numbers = #tpu.dot_dimension_numbers<[1], [0], [0], [1], [0, 0, 1, 1], [], []>} : vector<8x32xf32>, vector<32x32xf32>, vector<8x32xf32> -> vector<8x32xf32>
    %367 = arith.truncf %366 : vector<8x32xf32> to vector<8x32xbf16>
    %cst_247 = arith.constant dense<0.000000e+00> : vector<8x128xf32>
    %368 = tpu.matmul %367, %5, %cst_247 {dimension_numbers = #tpu.dot_dimension_numbers<[1], [0], [0], [1], [0, 0, 1, 1], [], []>} : vector<8x32xbf16>, vector<32x128xbf16>, vector<8x128xf32> -> vector<8x128xf32>
    %c0_248 = arith.constant 0 : index
    %c0_249 = arith.constant 0 : index
    %369 = vector.load %arg22[%c0_248, %c0_249] : memref<16x192xbf16, #tpu.memory_space<vmem>>, vector<16x192xbf16>
    %c0_250 = arith.constant 0 : index
    %c0_251 = arith.constant 0 : index
    %370 = vector.load %arg23[%c0_250, %c0_251] : memref<192x32xbf16, #tpu.memory_space<vmem>>, vector<192x32xbf16>
    %c0_252 = arith.constant 0 : index
    %c0_253 = arith.constant 0 : index
    %371 = vector.load %arg24[%c0_252, %c0_253] : memref<16x32xf32, #tpu.memory_space<vmem>>, vector<16x32xf32>
    %c0_254 = arith.constant 0 : index
    %c0_255 = arith.constant 0 : index
    %372 = vector.load %arg25[%c0_254, %c0_255] : memref<1x32xf32, #tpu.memory_space<vmem>>, vector<1x32xf32>
    %c0_256 = arith.constant 0 : index
    %c0_257 = arith.constant 0 : index
    %373 = vector.load %arg26[%c0_256, %c0_257] : memref<1x32xf32, #tpu.memory_space<vmem>>, vector<1x32xf32>
    %c0_258 = arith.constant 0 : index
    %c0_259 = arith.constant 0 : index
    %374 = vector.load %arg27[%c0_258, %c0_259] : memref<16x16xf32, #tpu.memory_space<vmem>>, vector<16x16xf32>
    %c0_260 = arith.constant 0 : index
    %c0_261 = arith.constant 0 : index
    %375 = vector.load %arg44[%c0_260, %c0_261] : memref<1x32xf32, #tpu.memory_space<vmem>>, vector<1x32xf32>
    %c0_262 = arith.constant 0 : index
    %c0_263 = arith.constant 0 : index
    %376 = vector.load %arg45[%c0_262, %c0_263] : memref<1x32xf32, #tpu.memory_space<vmem>>, vector<1x32xf32>
    %c0_264 = arith.constant 0 : index
    %c0_265 = arith.constant 0 : index
    %377 = vector.load %arg46[%c0_264, %c0_265] : memref<8x16xf32, #tpu.memory_space<vmem>>, vector<8x16xf32>
    %c0_266 = arith.constant 0 : index
    %c0_267 = arith.constant 0 : index
    %378 = vector.load %arg47[%c0_266, %c0_267] : memref<32x128xbf16, #tpu.memory_space<vmem>>, vector<32x128xbf16>
    %cst_268 = arith.constant dense<0.000000e+00> : vector<16x32xf32>
    %379 = tpu.matmul %369, %370, %cst_268 {dimension_numbers = #tpu.dot_dimension_numbers<[1], [0], [0], [1], [0, 0, 1, 1], [], []>} : vector<16x192xbf16>, vector<192x32xbf16>, vector<16x32xf32> -> vector<16x32xf32>
    %380 = arith.addf %379, %371 : vector<16x32xf32>
    %cst_269 = arith.constant dense<0.000000e+00> : vector<16xf32>
    %381 = vector.multi_reduction <add>, %380, %cst_269 [1] : vector<16x32xf32> to vector<16xf32>
    %382 = vector.shape_cast %381 : vector<16xf32> to vector<16x1xf32>
    %cst_270 = arith.constant 3.200000e+01 : f32
    %383 = vector.broadcast %cst_270 : f32 to vector<16x1xf32>
    %384 = arith.divf %382, %383 : vector<16x1xf32>
    %385 = vector.broadcast %384 : vector<16x1xf32> to vector<16x32xf32>
    %386 = arith.subf %380, %385 : vector<16x32xf32>
    %387 = arith.mulf %386, %386 : vector<16x32xf32>
    %cst_271 = arith.constant dense<0.000000e+00> : vector<16xf32>
    %388 = vector.multi_reduction <add>, %387, %cst_271 [1] : vector<16x32xf32> to vector<16xf32>
    %389 = vector.shape_cast %388 : vector<16xf32> to vector<16x1xf32>
    %cst_272 = arith.constant 3.200000e+01 : f32
    %390 = vector.broadcast %cst_272 : f32 to vector<16x1xf32>
    %391 = arith.divf %389, %390 : vector<16x1xf32>
    %cst_273 = arith.constant 9.99999974E-6 : f32
    %392 = vector.broadcast %cst_273 : f32 to vector<16x1xf32>
    %393 = arith.addf %391, %392 : vector<16x1xf32>
    %394 = math.rsqrt %393 : vector<16x1xf32>
    %395 = vector.broadcast %394 : vector<16x1xf32> to vector<16x32xf32>
    %396 = arith.mulf %386, %395 : vector<16x32xf32>
    %397 = vector.broadcast %372 : vector<1x32xf32> to vector<16x32xf32>
    %398 = arith.mulf %396, %397 : vector<16x32xf32>
    %399 = vector.broadcast %373 : vector<1x32xf32> to vector<16x32xf32>
    %400 = arith.addf %398, %399 : vector<16x32xf32>
    %c0_274 = arith.constant 0 : index
    %c0_275 = arith.constant 0 : index
    %c0_276 = arith.constant 0 : index
    %401 = vector.load %arg28[%c0_274, %c0_275, %c0_276] : memref<2x1x32xf32, #tpu.memory_space<vmem>>, vector<1x1x32xf32>
    %402 = vector.shape_cast %401 : vector<1x1x32xf32> to vector<1x32xf32>
    %c0_277 = arith.constant 0 : index
    %c0_278 = arith.constant 0 : index
    %c0_279 = arith.constant 0 : index
    %403 = vector.load %arg29[%c0_277, %c0_278, %c0_279] : memref<2x1x32xf32, #tpu.memory_space<vmem>>, vector<1x1x32xf32>
    %404 = vector.shape_cast %403 : vector<1x1x32xf32> to vector<1x32xf32>
    %cst_280 = arith.constant dense<0.000000e+00> : vector<16xf32>
    %405 = vector.multi_reduction <add>, %400, %cst_280 [1] : vector<16x32xf32> to vector<16xf32>
    %406 = vector.shape_cast %405 : vector<16xf32> to vector<16x1xf32>
    %cst_281 = arith.constant 3.200000e+01 : f32
    %407 = vector.broadcast %cst_281 : f32 to vector<16x1xf32>
    %408 = arith.divf %406, %407 : vector<16x1xf32>
    %409 = vector.broadcast %408 : vector<16x1xf32> to vector<16x32xf32>
    %410 = arith.subf %400, %409 : vector<16x32xf32>
    %411 = arith.mulf %410, %410 : vector<16x32xf32>
    %cst_282 = arith.constant dense<0.000000e+00> : vector<16xf32>
    %412 = vector.multi_reduction <add>, %411, %cst_282 [1] : vector<16x32xf32> to vector<16xf32>
    %413 = vector.shape_cast %412 : vector<16xf32> to vector<16x1xf32>
    %cst_283 = arith.constant 3.200000e+01 : f32
    %414 = vector.broadcast %cst_283 : f32 to vector<16x1xf32>
    %415 = arith.divf %413, %414 : vector<16x1xf32>
    %cst_284 = arith.constant 9.99999974E-6 : f32
    %416 = vector.broadcast %cst_284 : f32 to vector<16x1xf32>
    %417 = arith.addf %415, %416 : vector<16x1xf32>
    %418 = math.rsqrt %417 : vector<16x1xf32>
    %419 = vector.broadcast %418 : vector<16x1xf32> to vector<16x32xf32>
    %420 = arith.mulf %410, %419 : vector<16x32xf32>
    %421 = vector.broadcast %402 : vector<1x32xf32> to vector<16x32xf32>
    %422 = arith.mulf %420, %421 : vector<16x32xf32>
    %423 = vector.broadcast %404 : vector<1x32xf32> to vector<16x32xf32>
    %424 = arith.addf %422, %423 : vector<16x32xf32>
    %425 = arith.truncf %424 : vector<16x32xf32> to vector<16x32xbf16>
    %cst_285 = arith.constant 0.000000e+00 : f32
    %426 = vector.broadcast %cst_285 : f32 to vector<16x32xf32>
    %c0_286 = arith.constant 0 : index
    %c0_287 = arith.constant 0 : index
    %c0_288 = arith.constant 0 : index
    %c0_289 = arith.constant 0 : index
    %427 = vector.load %arg30[%c0_286, %c0_287, %c0_288, %c0_289] : memref<2x2x32x16xbf16, #tpu.memory_space<vmem>>, vector<1x1x32x16xbf16>
    %428 = vector.shape_cast %427 : vector<1x1x32x16xbf16> to vector<32x16xbf16>
    %cst_290 = arith.constant dense<0.000000e+00> : vector<16x16xf32>
    %429 = tpu.matmul %425, %428, %cst_290 {dimension_numbers = #tpu.dot_dimension_numbers<[1], [0], [0], [1], [0, 0, 1, 1], [], []>} : vector<16x32xbf16>, vector<32x16xbf16>, vector<16x16xf32> -> vector<16x16xf32>
    %c0_291 = arith.constant 0 : index
    %c0_292 = arith.constant 0 : index
    %c0_293 = arith.constant 0 : index
    %c0_294 = arith.constant 0 : index
    %430 = vector.load %arg31[%c0_291, %c0_292, %c0_293, %c0_294] : memref<2x2x1x16xf32, #tpu.memory_space<vmem>>, vector<1x1x1x16xf32>
    %431 = vector.shape_cast %430 : vector<1x1x1x16xf32> to vector<1x16xf32>
    %432 = vector.broadcast %431 : vector<1x16xf32> to vector<16x16xf32>
    %433 = arith.addf %429, %432 : vector<16x16xf32>
    %c0_295 = arith.constant 0 : index
    %c0_296 = arith.constant 0 : index
    %c0_297 = arith.constant 0 : index
    %c0_298 = arith.constant 0 : index
    %434 = vector.load %arg32[%c0_295, %c0_296, %c0_297, %c0_298] : memref<2x2x32x16xbf16, #tpu.memory_space<vmem>>, vector<1x1x32x16xbf16>
    %435 = vector.shape_cast %434 : vector<1x1x32x16xbf16> to vector<32x16xbf16>
    %cst_299 = arith.constant dense<0.000000e+00> : vector<16x16xf32>
    %436 = tpu.matmul %425, %435, %cst_299 {dimension_numbers = #tpu.dot_dimension_numbers<[1], [0], [0], [1], [0, 0, 1, 1], [], []>} : vector<16x32xbf16>, vector<32x16xbf16>, vector<16x16xf32> -> vector<16x16xf32>
    %c0_300 = arith.constant 0 : index
    %c0_301 = arith.constant 0 : index
    %c0_302 = arith.constant 0 : index
    %c0_303 = arith.constant 0 : index
    %437 = vector.load %arg33[%c0_300, %c0_301, %c0_302, %c0_303] : memref<2x2x1x16xf32, #tpu.memory_space<vmem>>, vector<1x1x1x16xf32>
    %438 = vector.shape_cast %437 : vector<1x1x1x16xf32> to vector<1x16xf32>
    %439 = vector.broadcast %438 : vector<1x16xf32> to vector<16x16xf32>
    %440 = arith.addf %436, %439 : vector<16x16xf32>
    %c0_304 = arith.constant 0 : index
    %c0_305 = arith.constant 0 : index
    %c0_306 = arith.constant 0 : index
    %c0_307 = arith.constant 0 : index
    %441 = vector.load %arg34[%c0_304, %c0_305, %c0_306, %c0_307] : memref<2x2x32x16xbf16, #tpu.memory_space<vmem>>, vector<1x1x32x16xbf16>
    %442 = vector.shape_cast %441 : vector<1x1x32x16xbf16> to vector<32x16xbf16>
    %cst_308 = arith.constant dense<0.000000e+00> : vector<16x16xf32>
    %443 = tpu.matmul %425, %442, %cst_308 {dimension_numbers = #tpu.dot_dimension_numbers<[1], [0], [0], [1], [0, 0, 1, 1], [], []>} : vector<16x32xbf16>, vector<32x16xbf16>, vector<16x16xf32> -> vector<16x16xf32>
    %c0_309 = arith.constant 0 : index
    %c0_310 = arith.constant 0 : index
    %c0_311 = arith.constant 0 : index
    %c0_312 = arith.constant 0 : index
    %444 = vector.load %arg35[%c0_309, %c0_310, %c0_311, %c0_312] : memref<2x2x1x16xf32, #tpu.memory_space<vmem>>, vector<1x1x1x16xf32>
    %445 = vector.shape_cast %444 : vector<1x1x1x16xf32> to vector<1x16xf32>
    %446 = vector.broadcast %445 : vector<1x16xf32> to vector<16x16xf32>
    %447 = arith.addf %443, %446 : vector<16x16xf32>
    %448 = arith.truncf %433 : vector<16x16xf32> to vector<16x16xbf16>
    %449 = arith.truncf %440 : vector<16x16xf32> to vector<16x16xbf16>
    %cst_313 = arith.constant dense<0.000000e+00> : vector<16x16xf32>
    %450 = tpu.matmul %448, %449, %cst_313 {dimension_numbers = #tpu.dot_dimension_numbers<[1], [1], [0], [0], [0, 0, 1, 0], [], []>} : vector<16x16xbf16>, vector<16x16xbf16>, vector<16x16xf32> -> vector<16x16xf32>
    %cst_314 = arith.constant 2.500000e-01 : f32
    %451 = vector.broadcast %cst_314 : f32 to vector<16x16xf32>
    %452 = arith.mulf %450, %451 : vector<16x16xf32>
    %453 = arith.addf %452, %374 : vector<16x16xf32>
    %cst_315 = arith.constant dense<0xFF800000> : vector<16xf32>
    %454 = vector.multi_reduction <maximumf>, %453, %cst_315 [1] : vector<16x16xf32> to vector<16xf32>
    %455 = vector.shape_cast %454 : vector<16xf32> to vector<16x1xf32>
    %456 = vector.broadcast %455 : vector<16x1xf32> to vector<16x16xf32>
    %457 = arith.subf %453, %456 : vector<16x16xf32>
    %458 = math.exp %457 : vector<16x16xf32>
    %cst_316 = arith.constant dense<0.000000e+00> : vector<16xf32>
    %459 = vector.multi_reduction <add>, %458, %cst_316 [1] : vector<16x16xf32> to vector<16xf32>
    %460 = vector.shape_cast %459 : vector<16xf32> to vector<16x1xf32>
    %461 = tpu.reciprocal %460 : vector<16x1xf32> -> vector<16x1xf32>
    %462 = vector.broadcast %461 : vector<16x1xf32> to vector<16x16xf32>
    %463 = arith.mulf %458, %462 : vector<16x16xf32>
    %464 = arith.truncf %463 : vector<16x16xf32> to vector<16x16xbf16>
    %465 = arith.truncf %447 : vector<16x16xf32> to vector<16x16xbf16>
    %cst_317 = arith.constant dense<0.000000e+00> : vector<16x16xf32>
    %466 = tpu.matmul %464, %465, %cst_317 {dimension_numbers = #tpu.dot_dimension_numbers<[1], [0], [0], [1], [0, 0, 1, 1], [], []>} : vector<16x16xbf16>, vector<16x16xbf16>, vector<16x16xf32> -> vector<16x16xf32>
    %467 = arith.truncf %466 : vector<16x16xf32> to vector<16x16xbf16>
    %c0_318 = arith.constant 0 : index
    %c0_319 = arith.constant 0 : index
    %c0_320 = arith.constant 0 : index
    %c0_321 = arith.constant 0 : index
    %468 = vector.load %arg36[%c0_318, %c0_319, %c0_320, %c0_321] : memref<2x2x16x32xbf16, #tpu.memory_space<vmem>>, vector<1x1x16x32xbf16>
    %469 = vector.shape_cast %468 : vector<1x1x16x32xbf16> to vector<16x32xbf16>
    %cst_322 = arith.constant dense<0.000000e+00> : vector<16x32xf32>
    %470 = tpu.matmul %467, %469, %cst_322 {dimension_numbers = #tpu.dot_dimension_numbers<[1], [0], [0], [1], [0, 0, 1, 1], [], []>} : vector<16x16xbf16>, vector<16x32xbf16>, vector<16x32xf32> -> vector<16x32xf32>
    %471 = arith.addf %426, %470 : vector<16x32xf32>
    %c0_323 = arith.constant 0 : index
    %c1_324 = arith.constant 1 : index
    %c0_325 = arith.constant 0 : index
    %c0_326 = arith.constant 0 : index
    %472 = vector.load %arg30[%c0_323, %c1_324, %c0_325, %c0_326] : memref<2x2x32x16xbf16, #tpu.memory_space<vmem>>, vector<1x1x32x16xbf16>
    %473 = vector.shape_cast %472 : vector<1x1x32x16xbf16> to vector<32x16xbf16>
    %cst_327 = arith.constant dense<0.000000e+00> : vector<16x16xf32>
    %474 = tpu.matmul %425, %473, %cst_327 {dimension_numbers = #tpu.dot_dimension_numbers<[1], [0], [0], [1], [0, 0, 1, 1], [], []>} : vector<16x32xbf16>, vector<32x16xbf16>, vector<16x16xf32> -> vector<16x16xf32>
    %c0_328 = arith.constant 0 : index
    %c1_329 = arith.constant 1 : index
    %c0_330 = arith.constant 0 : index
    %c0_331 = arith.constant 0 : index
    %475 = vector.load %arg31[%c0_328, %c1_329, %c0_330, %c0_331] : memref<2x2x1x16xf32, #tpu.memory_space<vmem>>, vector<1x1x1x16xf32>
    %476 = vector.shape_cast %475 : vector<1x1x1x16xf32> to vector<1x16xf32>
    %477 = vector.broadcast %476 : vector<1x16xf32> to vector<16x16xf32>
    %478 = arith.addf %474, %477 : vector<16x16xf32>
    %c0_332 = arith.constant 0 : index
    %c1_333 = arith.constant 1 : index
    %c0_334 = arith.constant 0 : index
    %c0_335 = arith.constant 0 : index
    %479 = vector.load %arg32[%c0_332, %c1_333, %c0_334, %c0_335] : memref<2x2x32x16xbf16, #tpu.memory_space<vmem>>, vector<1x1x32x16xbf16>
    %480 = vector.shape_cast %479 : vector<1x1x32x16xbf16> to vector<32x16xbf16>
    %cst_336 = arith.constant dense<0.000000e+00> : vector<16x16xf32>
    %481 = tpu.matmul %425, %480, %cst_336 {dimension_numbers = #tpu.dot_dimension_numbers<[1], [0], [0], [1], [0, 0, 1, 1], [], []>} : vector<16x32xbf16>, vector<32x16xbf16>, vector<16x16xf32> -> vector<16x16xf32>
    %c0_337 = arith.constant 0 : index
    %c1_338 = arith.constant 1 : index
    %c0_339 = arith.constant 0 : index
    %c0_340 = arith.constant 0 : index
    %482 = vector.load %arg33[%c0_337, %c1_338, %c0_339, %c0_340] : memref<2x2x1x16xf32, #tpu.memory_space<vmem>>, vector<1x1x1x16xf32>
    %483 = vector.shape_cast %482 : vector<1x1x1x16xf32> to vector<1x16xf32>
    %484 = vector.broadcast %483 : vector<1x16xf32> to vector<16x16xf32>
    %485 = arith.addf %481, %484 : vector<16x16xf32>
    %c0_341 = arith.constant 0 : index
    %c1_342 = arith.constant 1 : index
    %c0_343 = arith.constant 0 : index
    %c0_344 = arith.constant 0 : index
    %486 = vector.load %arg34[%c0_341, %c1_342, %c0_343, %c0_344] : memref<2x2x32x16xbf16, #tpu.memory_space<vmem>>, vector<1x1x32x16xbf16>
    %487 = vector.shape_cast %486 : vector<1x1x32x16xbf16> to vector<32x16xbf16>
    %cst_345 = arith.constant dense<0.000000e+00> : vector<16x16xf32>
    %488 = tpu.matmul %425, %487, %cst_345 {dimension_numbers = #tpu.dot_dimension_numbers<[1], [0], [0], [1], [0, 0, 1, 1], [], []>} : vector<16x32xbf16>, vector<32x16xbf16>, vector<16x16xf32> -> vector<16x16xf32>
    %c0_346 = arith.constant 0 : index
    %c1_347 = arith.constant 1 : index
    %c0_348 = arith.constant 0 : index
    %c0_349 = arith.constant 0 : index
    %489 = vector.load %arg35[%c0_346, %c1_347, %c0_348, %c0_349] : memref<2x2x1x16xf32, #tpu.memory_space<vmem>>, vector<1x1x1x16xf32>
    %490 = vector.shape_cast %489 : vector<1x1x1x16xf32> to vector<1x16xf32>
    %491 = vector.broadcast %490 : vector<1x16xf32> to vector<16x16xf32>
    %492 = arith.addf %488, %491 : vector<16x16xf32>
    %493 = arith.truncf %478 : vector<16x16xf32> to vector<16x16xbf16>
    %494 = arith.truncf %485 : vector<16x16xf32> to vector<16x16xbf16>
    %cst_350 = arith.constant dense<0.000000e+00> : vector<16x16xf32>
    %495 = tpu.matmul %493, %494, %cst_350 {dimension_numbers = #tpu.dot_dimension_numbers<[1], [1], [0], [0], [0, 0, 1, 0], [], []>} : vector<16x16xbf16>, vector<16x16xbf16>, vector<16x16xf32> -> vector<16x16xf32>
    %cst_351 = arith.constant 2.500000e-01 : f32
    %496 = vector.broadcast %cst_351 : f32 to vector<16x16xf32>
    %497 = arith.mulf %495, %496 : vector<16x16xf32>
    %498 = arith.addf %497, %374 : vector<16x16xf32>
    %cst_352 = arith.constant dense<0xFF800000> : vector<16xf32>
    %499 = vector.multi_reduction <maximumf>, %498, %cst_352 [1] : vector<16x16xf32> to vector<16xf32>
    %500 = vector.shape_cast %499 : vector<16xf32> to vector<16x1xf32>
    %501 = vector.broadcast %500 : vector<16x1xf32> to vector<16x16xf32>
    %502 = arith.subf %498, %501 : vector<16x16xf32>
    %503 = math.exp %502 : vector<16x16xf32>
    %cst_353 = arith.constant dense<0.000000e+00> : vector<16xf32>
    %504 = vector.multi_reduction <add>, %503, %cst_353 [1] : vector<16x16xf32> to vector<16xf32>
    %505 = vector.shape_cast %504 : vector<16xf32> to vector<16x1xf32>
    %506 = tpu.reciprocal %505 : vector<16x1xf32> -> vector<16x1xf32>
    %507 = vector.broadcast %506 : vector<16x1xf32> to vector<16x16xf32>
    %508 = arith.mulf %503, %507 : vector<16x16xf32>
    %509 = arith.truncf %508 : vector<16x16xf32> to vector<16x16xbf16>
    %510 = arith.truncf %492 : vector<16x16xf32> to vector<16x16xbf16>
    %cst_354 = arith.constant dense<0.000000e+00> : vector<16x16xf32>
    %511 = tpu.matmul %509, %510, %cst_354 {dimension_numbers = #tpu.dot_dimension_numbers<[1], [0], [0], [1], [0, 0, 1, 1], [], []>} : vector<16x16xbf16>, vector<16x16xbf16>, vector<16x16xf32> -> vector<16x16xf32>
    %512 = arith.truncf %511 : vector<16x16xf32> to vector<16x16xbf16>
    %c0_355 = arith.constant 0 : index
    %c1_356 = arith.constant 1 : index
    %c0_357 = arith.constant 0 : index
    %c0_358 = arith.constant 0 : index
    %513 = vector.load %arg36[%c0_355, %c1_356, %c0_357, %c0_358] : memref<2x2x16x32xbf16, #tpu.memory_space<vmem>>, vector<1x1x16x32xbf16>
    %514 = vector.shape_cast %513 : vector<1x1x16x32xbf16> to vector<16x32xbf16>
    %cst_359 = arith.constant dense<0.000000e+00> : vector<16x32xf32>
    %515 = tpu.matmul %512, %514, %cst_359 {dimension_numbers = #tpu.dot_dimension_numbers<[1], [0], [0], [1], [0, 0, 1, 1], [], []>} : vector<16x16xbf16>, vector<16x32xbf16>, vector<16x32xf32> -> vector<16x32xf32>
    %516 = arith.addf %471, %515 : vector<16x32xf32>
    %517 = arith.addf %400, %516 : vector<16x32xf32>
    %c0_360 = arith.constant 0 : index
    %c0_361 = arith.constant 0 : index
    %c0_362 = arith.constant 0 : index
    %518 = vector.load %arg37[%c0_360, %c0_361, %c0_362] : memref<2x1x32xf32, #tpu.memory_space<vmem>>, vector<1x1x32xf32>
    %519 = vector.shape_cast %518 : vector<1x1x32xf32> to vector<1x32xf32>
    %520 = vector.broadcast %519 : vector<1x32xf32> to vector<16x32xf32>
    %521 = arith.addf %517, %520 : vector<16x32xf32>
    %c0_363 = arith.constant 0 : index
    %c0_364 = arith.constant 0 : index
    %c0_365 = arith.constant 0 : index
    %522 = vector.load %arg38[%c0_363, %c0_364, %c0_365] : memref<2x1x32xf32, #tpu.memory_space<vmem>>, vector<1x1x32xf32>
    %523 = vector.shape_cast %522 : vector<1x1x32xf32> to vector<1x32xf32>
    %c0_366 = arith.constant 0 : index
    %c0_367 = arith.constant 0 : index
    %c0_368 = arith.constant 0 : index
    %524 = vector.load %arg39[%c0_366, %c0_367, %c0_368] : memref<2x1x32xf32, #tpu.memory_space<vmem>>, vector<1x1x32xf32>
    %525 = vector.shape_cast %524 : vector<1x1x32xf32> to vector<1x32xf32>
    %cst_369 = arith.constant dense<0.000000e+00> : vector<16xf32>
    %526 = vector.multi_reduction <add>, %521, %cst_369 [1] : vector<16x32xf32> to vector<16xf32>
    %527 = vector.shape_cast %526 : vector<16xf32> to vector<16x1xf32>
    %cst_370 = arith.constant 3.200000e+01 : f32
    %528 = vector.broadcast %cst_370 : f32 to vector<16x1xf32>
    %529 = arith.divf %527, %528 : vector<16x1xf32>
    %530 = vector.broadcast %529 : vector<16x1xf32> to vector<16x32xf32>
    %531 = arith.subf %521, %530 : vector<16x32xf32>
    %532 = arith.mulf %531, %531 : vector<16x32xf32>
    %cst_371 = arith.constant dense<0.000000e+00> : vector<16xf32>
    %533 = vector.multi_reduction <add>, %532, %cst_371 [1] : vector<16x32xf32> to vector<16xf32>
    %534 = vector.shape_cast %533 : vector<16xf32> to vector<16x1xf32>
    %cst_372 = arith.constant 3.200000e+01 : f32
    %535 = vector.broadcast %cst_372 : f32 to vector<16x1xf32>
    %536 = arith.divf %534, %535 : vector<16x1xf32>
    %cst_373 = arith.constant 9.99999974E-6 : f32
    %537 = vector.broadcast %cst_373 : f32 to vector<16x1xf32>
    %538 = arith.addf %536, %537 : vector<16x1xf32>
    %539 = math.rsqrt %538 : vector<16x1xf32>
    %540 = vector.broadcast %539 : vector<16x1xf32> to vector<16x32xf32>
    %541 = arith.mulf %531, %540 : vector<16x32xf32>
    %542 = vector.broadcast %523 : vector<1x32xf32> to vector<16x32xf32>
    %543 = arith.mulf %541, %542 : vector<16x32xf32>
    %544 = vector.broadcast %525 : vector<1x32xf32> to vector<16x32xf32>
    %545 = arith.addf %543, %544 : vector<16x32xf32>
    %546 = arith.truncf %545 : vector<16x32xf32> to vector<16x32xbf16>
    %c0_374 = arith.constant 0 : index
    %c0_375 = arith.constant 0 : index
    %c0_376 = arith.constant 0 : index
    %547 = vector.load %arg40[%c0_374, %c0_375, %c0_376] : memref<2x32x128xbf16, #tpu.memory_space<vmem>>, vector<1x32x128xbf16>
    %548 = vector.shape_cast %547 : vector<1x32x128xbf16> to vector<32x128xbf16>
    %cst_377 = arith.constant dense<0.000000e+00> : vector<16x128xf32>
    %549 = tpu.matmul %546, %548, %cst_377 {dimension_numbers = #tpu.dot_dimension_numbers<[1], [0], [0], [1], [0, 0, 1, 1], [], []>} : vector<16x32xbf16>, vector<32x128xbf16>, vector<16x128xf32> -> vector<16x128xf32>
    %c0_378 = arith.constant 0 : index
    %c0_379 = arith.constant 0 : index
    %c0_380 = arith.constant 0 : index
    %550 = vector.load %arg41[%c0_378, %c0_379, %c0_380] : memref<2x1x128xf32, #tpu.memory_space<vmem>>, vector<1x1x128xf32>
    %551 = vector.shape_cast %550 : vector<1x1x128xf32> to vector<1x128xf32>
    %552 = vector.broadcast %551 : vector<1x128xf32> to vector<16x128xf32>
    %553 = arith.addf %549, %552 : vector<16x128xf32>
    %cst_381 = arith.constant 1.702000e+00 : f32
    %554 = vector.broadcast %cst_381 : f32 to vector<16x128xf32>
    %555 = arith.mulf %554, %553 : vector<16x128xf32>
    %556 = arith.negf %555 : vector<16x128xf32>
    %557 = math.exp %556 : vector<16x128xf32>
    %cst_382 = arith.constant 1.000000e+00 : f32
    %558 = vector.broadcast %cst_382 : f32 to vector<16x128xf32>
    %559 = arith.addf %558, %557 : vector<16x128xf32>
    %560 = arith.divf %558, %559 : vector<16x128xf32>
    %561 = arith.mulf %553, %560 : vector<16x128xf32>
    %562 = arith.truncf %561 : vector<16x128xf32> to vector<16x128xbf16>
    %c0_383 = arith.constant 0 : index
    %c0_384 = arith.constant 0 : index
    %c0_385 = arith.constant 0 : index
    %563 = vector.load %arg42[%c0_383, %c0_384, %c0_385] : memref<2x128x32xbf16, #tpu.memory_space<vmem>>, vector<1x128x32xbf16>
    %564 = vector.shape_cast %563 : vector<1x128x32xbf16> to vector<128x32xbf16>
    %cst_386 = arith.constant dense<0.000000e+00> : vector<16x32xf32>
    %565 = tpu.matmul %562, %564, %cst_386 {dimension_numbers = #tpu.dot_dimension_numbers<[1], [0], [0], [1], [0, 0, 1, 1], [], []>} : vector<16x128xbf16>, vector<128x32xbf16>, vector<16x32xf32> -> vector<16x32xf32>
    %566 = arith.addf %521, %565 : vector<16x32xf32>
    %c0_387 = arith.constant 0 : index
    %c0_388 = arith.constant 0 : index
    %c0_389 = arith.constant 0 : index
    %567 = vector.load %arg43[%c0_387, %c0_388, %c0_389] : memref<2x1x32xf32, #tpu.memory_space<vmem>>, vector<1x1x32xf32>
    %568 = vector.shape_cast %567 : vector<1x1x32xf32> to vector<1x32xf32>
    %569 = vector.broadcast %568 : vector<1x32xf32> to vector<16x32xf32>
    %570 = arith.addf %566, %569 : vector<16x32xf32>
    %c1_390 = arith.constant 1 : index
    %c0_391 = arith.constant 0 : index
    %c0_392 = arith.constant 0 : index
    %571 = vector.load %arg28[%c1_390, %c0_391, %c0_392] : memref<2x1x32xf32, #tpu.memory_space<vmem>>, vector<1x1x32xf32>
    %572 = vector.shape_cast %571 : vector<1x1x32xf32> to vector<1x32xf32>
    %c1_393 = arith.constant 1 : index
    %c0_394 = arith.constant 0 : index
    %c0_395 = arith.constant 0 : index
    %573 = vector.load %arg29[%c1_393, %c0_394, %c0_395] : memref<2x1x32xf32, #tpu.memory_space<vmem>>, vector<1x1x32xf32>
    %574 = vector.shape_cast %573 : vector<1x1x32xf32> to vector<1x32xf32>
    %cst_396 = arith.constant dense<0.000000e+00> : vector<16xf32>
    %575 = vector.multi_reduction <add>, %570, %cst_396 [1] : vector<16x32xf32> to vector<16xf32>
    %576 = vector.shape_cast %575 : vector<16xf32> to vector<16x1xf32>
    %cst_397 = arith.constant 3.200000e+01 : f32
    %577 = vector.broadcast %cst_397 : f32 to vector<16x1xf32>
    %578 = arith.divf %576, %577 : vector<16x1xf32>
    %579 = vector.broadcast %578 : vector<16x1xf32> to vector<16x32xf32>
    %580 = arith.subf %570, %579 : vector<16x32xf32>
    %581 = arith.mulf %580, %580 : vector<16x32xf32>
    %cst_398 = arith.constant dense<0.000000e+00> : vector<16xf32>
    %582 = vector.multi_reduction <add>, %581, %cst_398 [1] : vector<16x32xf32> to vector<16xf32>
    %583 = vector.shape_cast %582 : vector<16xf32> to vector<16x1xf32>
    %cst_399 = arith.constant 3.200000e+01 : f32
    %584 = vector.broadcast %cst_399 : f32 to vector<16x1xf32>
    %585 = arith.divf %583, %584 : vector<16x1xf32>
    %cst_400 = arith.constant 9.99999974E-6 : f32
    %586 = vector.broadcast %cst_400 : f32 to vector<16x1xf32>
    %587 = arith.addf %585, %586 : vector<16x1xf32>
    %588 = math.rsqrt %587 : vector<16x1xf32>
    %589 = vector.broadcast %588 : vector<16x1xf32> to vector<16x32xf32>
    %590 = arith.mulf %580, %589 : vector<16x32xf32>
    %591 = vector.broadcast %572 : vector<1x32xf32> to vector<16x32xf32>
    %592 = arith.mulf %590, %591 : vector<16x32xf32>
    %593 = vector.broadcast %574 : vector<1x32xf32> to vector<16x32xf32>
    %594 = arith.addf %592, %593 : vector<16x32xf32>
    %595 = arith.truncf %594 : vector<16x32xf32> to vector<16x32xbf16>
    %cst_401 = arith.constant 0.000000e+00 : f32
    %596 = vector.broadcast %cst_401 : f32 to vector<16x32xf32>
    %c1_402 = arith.constant 1 : index
    %c0_403 = arith.constant 0 : index
    %c0_404 = arith.constant 0 : index
    %c0_405 = arith.constant 0 : index
    %597 = vector.load %arg30[%c1_402, %c0_403, %c0_404, %c0_405] : memref<2x2x32x16xbf16, #tpu.memory_space<vmem>>, vector<1x1x32x16xbf16>
    %598 = vector.shape_cast %597 : vector<1x1x32x16xbf16> to vector<32x16xbf16>
    %cst_406 = arith.constant dense<0.000000e+00> : vector<16x16xf32>
    %599 = tpu.matmul %595, %598, %cst_406 {dimension_numbers = #tpu.dot_dimension_numbers<[1], [0], [0], [1], [0, 0, 1, 1], [], []>} : vector<16x32xbf16>, vector<32x16xbf16>, vector<16x16xf32> -> vector<16x16xf32>
    %c1_407 = arith.constant 1 : index
    %c0_408 = arith.constant 0 : index
    %c0_409 = arith.constant 0 : index
    %c0_410 = arith.constant 0 : index
    %600 = vector.load %arg31[%c1_407, %c0_408, %c0_409, %c0_410] : memref<2x2x1x16xf32, #tpu.memory_space<vmem>>, vector<1x1x1x16xf32>
    %601 = vector.shape_cast %600 : vector<1x1x1x16xf32> to vector<1x16xf32>
    %602 = vector.broadcast %601 : vector<1x16xf32> to vector<16x16xf32>
    %603 = arith.addf %599, %602 : vector<16x16xf32>
    %c1_411 = arith.constant 1 : index
    %c0_412 = arith.constant 0 : index
    %c0_413 = arith.constant 0 : index
    %c0_414 = arith.constant 0 : index
    %604 = vector.load %arg32[%c1_411, %c0_412, %c0_413, %c0_414] : memref<2x2x32x16xbf16, #tpu.memory_space<vmem>>, vector<1x1x32x16xbf16>
    %605 = vector.shape_cast %604 : vector<1x1x32x16xbf16> to vector<32x16xbf16>
    %cst_415 = arith.constant dense<0.000000e+00> : vector<16x16xf32>
    %606 = tpu.matmul %595, %605, %cst_415 {dimension_numbers = #tpu.dot_dimension_numbers<[1], [0], [0], [1], [0, 0, 1, 1], [], []>} : vector<16x32xbf16>, vector<32x16xbf16>, vector<16x16xf32> -> vector<16x16xf32>
    %c1_416 = arith.constant 1 : index
    %c0_417 = arith.constant 0 : index
    %c0_418 = arith.constant 0 : index
    %c0_419 = arith.constant 0 : index
    %607 = vector.load %arg33[%c1_416, %c0_417, %c0_418, %c0_419] : memref<2x2x1x16xf32, #tpu.memory_space<vmem>>, vector<1x1x1x16xf32>
    %608 = vector.shape_cast %607 : vector<1x1x1x16xf32> to vector<1x16xf32>
    %609 = vector.broadcast %608 : vector<1x16xf32> to vector<16x16xf32>
    %610 = arith.addf %606, %609 : vector<16x16xf32>
    %c1_420 = arith.constant 1 : index
    %c0_421 = arith.constant 0 : index
    %c0_422 = arith.constant 0 : index
    %c0_423 = arith.constant 0 : index
    %611 = vector.load %arg34[%c1_420, %c0_421, %c0_422, %c0_423] : memref<2x2x32x16xbf16, #tpu.memory_space<vmem>>, vector<1x1x32x16xbf16>
    %612 = vector.shape_cast %611 : vector<1x1x32x16xbf16> to vector<32x16xbf16>
    %cst_424 = arith.constant dense<0.000000e+00> : vector<16x16xf32>
    %613 = tpu.matmul %595, %612, %cst_424 {dimension_numbers = #tpu.dot_dimension_numbers<[1], [0], [0], [1], [0, 0, 1, 1], [], []>} : vector<16x32xbf16>, vector<32x16xbf16>, vector<16x16xf32> -> vector<16x16xf32>
    %c1_425 = arith.constant 1 : index
    %c0_426 = arith.constant 0 : index
    %c0_427 = arith.constant 0 : index
    %c0_428 = arith.constant 0 : index
    %614 = vector.load %arg35[%c1_425, %c0_426, %c0_427, %c0_428] : memref<2x2x1x16xf32, #tpu.memory_space<vmem>>, vector<1x1x1x16xf32>
    %615 = vector.shape_cast %614 : vector<1x1x1x16xf32> to vector<1x16xf32>
    %616 = vector.broadcast %615 : vector<1x16xf32> to vector<16x16xf32>
    %617 = arith.addf %613, %616 : vector<16x16xf32>
    %618 = arith.truncf %603 : vector<16x16xf32> to vector<16x16xbf16>
    %619 = arith.truncf %610 : vector<16x16xf32> to vector<16x16xbf16>
    %cst_429 = arith.constant dense<0.000000e+00> : vector<16x16xf32>
    %620 = tpu.matmul %618, %619, %cst_429 {dimension_numbers = #tpu.dot_dimension_numbers<[1], [1], [0], [0], [0, 0, 1, 0], [], []>} : vector<16x16xbf16>, vector<16x16xbf16>, vector<16x16xf32> -> vector<16x16xf32>
    %cst_430 = arith.constant 2.500000e-01 : f32
    %621 = vector.broadcast %cst_430 : f32 to vector<16x16xf32>
    %622 = arith.mulf %620, %621 : vector<16x16xf32>
    %623 = arith.addf %622, %374 : vector<16x16xf32>
    %cst_431 = arith.constant dense<0xFF800000> : vector<16xf32>
    %624 = vector.multi_reduction <maximumf>, %623, %cst_431 [1] : vector<16x16xf32> to vector<16xf32>
    %625 = vector.shape_cast %624 : vector<16xf32> to vector<16x1xf32>
    %626 = vector.broadcast %625 : vector<16x1xf32> to vector<16x16xf32>
    %627 = arith.subf %623, %626 : vector<16x16xf32>
    %628 = math.exp %627 : vector<16x16xf32>
    %cst_432 = arith.constant dense<0.000000e+00> : vector<16xf32>
    %629 = vector.multi_reduction <add>, %628, %cst_432 [1] : vector<16x16xf32> to vector<16xf32>
    %630 = vector.shape_cast %629 : vector<16xf32> to vector<16x1xf32>
    %631 = tpu.reciprocal %630 : vector<16x1xf32> -> vector<16x1xf32>
    %632 = vector.broadcast %631 : vector<16x1xf32> to vector<16x16xf32>
    %633 = arith.mulf %628, %632 : vector<16x16xf32>
    %634 = arith.truncf %633 : vector<16x16xf32> to vector<16x16xbf16>
    %635 = arith.truncf %617 : vector<16x16xf32> to vector<16x16xbf16>
    %cst_433 = arith.constant dense<0.000000e+00> : vector<16x16xf32>
    %636 = tpu.matmul %634, %635, %cst_433 {dimension_numbers = #tpu.dot_dimension_numbers<[1], [0], [0], [1], [0, 0, 1, 1], [], []>} : vector<16x16xbf16>, vector<16x16xbf16>, vector<16x16xf32> -> vector<16x16xf32>
    %637 = arith.truncf %636 : vector<16x16xf32> to vector<16x16xbf16>
    %c1_434 = arith.constant 1 : index
    %c0_435 = arith.constant 0 : index
    %c0_436 = arith.constant 0 : index
    %c0_437 = arith.constant 0 : index
    %638 = vector.load %arg36[%c1_434, %c0_435, %c0_436, %c0_437] : memref<2x2x16x32xbf16, #tpu.memory_space<vmem>>, vector<1x1x16x32xbf16>
    %639 = vector.shape_cast %638 : vector<1x1x16x32xbf16> to vector<16x32xbf16>
    %cst_438 = arith.constant dense<0.000000e+00> : vector<16x32xf32>
    %640 = tpu.matmul %637, %639, %cst_438 {dimension_numbers = #tpu.dot_dimension_numbers<[1], [0], [0], [1], [0, 0, 1, 1], [], []>} : vector<16x16xbf16>, vector<16x32xbf16>, vector<16x32xf32> -> vector<16x32xf32>
    %641 = arith.addf %596, %640 : vector<16x32xf32>
    %c1_439 = arith.constant 1 : index
    %c1_440 = arith.constant 1 : index
    %c0_441 = arith.constant 0 : index
    %c0_442 = arith.constant 0 : index
    %642 = vector.load %arg30[%c1_439, %c1_440, %c0_441, %c0_442] : memref<2x2x32x16xbf16, #tpu.memory_space<vmem>>, vector<1x1x32x16xbf16>
    %643 = vector.shape_cast %642 : vector<1x1x32x16xbf16> to vector<32x16xbf16>
    %cst_443 = arith.constant dense<0.000000e+00> : vector<16x16xf32>
    %644 = tpu.matmul %595, %643, %cst_443 {dimension_numbers = #tpu.dot_dimension_numbers<[1], [0], [0], [1], [0, 0, 1, 1], [], []>} : vector<16x32xbf16>, vector<32x16xbf16>, vector<16x16xf32> -> vector<16x16xf32>
    %c1_444 = arith.constant 1 : index
    %c1_445 = arith.constant 1 : index
    %c0_446 = arith.constant 0 : index
    %c0_447 = arith.constant 0 : index
    %645 = vector.load %arg31[%c1_444, %c1_445, %c0_446, %c0_447] : memref<2x2x1x16xf32, #tpu.memory_space<vmem>>, vector<1x1x1x16xf32>
    %646 = vector.shape_cast %645 : vector<1x1x1x16xf32> to vector<1x16xf32>
    %647 = vector.broadcast %646 : vector<1x16xf32> to vector<16x16xf32>
    %648 = arith.addf %644, %647 : vector<16x16xf32>
    %c1_448 = arith.constant 1 : index
    %c1_449 = arith.constant 1 : index
    %c0_450 = arith.constant 0 : index
    %c0_451 = arith.constant 0 : index
    %649 = vector.load %arg32[%c1_448, %c1_449, %c0_450, %c0_451] : memref<2x2x32x16xbf16, #tpu.memory_space<vmem>>, vector<1x1x32x16xbf16>
    %650 = vector.shape_cast %649 : vector<1x1x32x16xbf16> to vector<32x16xbf16>
    %cst_452 = arith.constant dense<0.000000e+00> : vector<16x16xf32>
    %651 = tpu.matmul %595, %650, %cst_452 {dimension_numbers = #tpu.dot_dimension_numbers<[1], [0], [0], [1], [0, 0, 1, 1], [], []>} : vector<16x32xbf16>, vector<32x16xbf16>, vector<16x16xf32> -> vector<16x16xf32>
    %c1_453 = arith.constant 1 : index
    %c1_454 = arith.constant 1 : index
    %c0_455 = arith.constant 0 : index
    %c0_456 = arith.constant 0 : index
    %652 = vector.load %arg33[%c1_453, %c1_454, %c0_455, %c0_456] : memref<2x2x1x16xf32, #tpu.memory_space<vmem>>, vector<1x1x1x16xf32>
    %653 = vector.shape_cast %652 : vector<1x1x1x16xf32> to vector<1x16xf32>
    %654 = vector.broadcast %653 : vector<1x16xf32> to vector<16x16xf32>
    %655 = arith.addf %651, %654 : vector<16x16xf32>
    %c1_457 = arith.constant 1 : index
    %c1_458 = arith.constant 1 : index
    %c0_459 = arith.constant 0 : index
    %c0_460 = arith.constant 0 : index
    %656 = vector.load %arg34[%c1_457, %c1_458, %c0_459, %c0_460] : memref<2x2x32x16xbf16, #tpu.memory_space<vmem>>, vector<1x1x32x16xbf16>
    %657 = vector.shape_cast %656 : vector<1x1x32x16xbf16> to vector<32x16xbf16>
    %cst_461 = arith.constant dense<0.000000e+00> : vector<16x16xf32>
    %658 = tpu.matmul %595, %657, %cst_461 {dimension_numbers = #tpu.dot_dimension_numbers<[1], [0], [0], [1], [0, 0, 1, 1], [], []>} : vector<16x32xbf16>, vector<32x16xbf16>, vector<16x16xf32> -> vector<16x16xf32>
    %c1_462 = arith.constant 1 : index
    %c1_463 = arith.constant 1 : index
    %c0_464 = arith.constant 0 : index
    %c0_465 = arith.constant 0 : index
    %659 = vector.load %arg35[%c1_462, %c1_463, %c0_464, %c0_465] : memref<2x2x1x16xf32, #tpu.memory_space<vmem>>, vector<1x1x1x16xf32>
    %660 = vector.shape_cast %659 : vector<1x1x1x16xf32> to vector<1x16xf32>
    %661 = vector.broadcast %660 : vector<1x16xf32> to vector<16x16xf32>
    %662 = arith.addf %658, %661 : vector<16x16xf32>
    %663 = arith.truncf %648 : vector<16x16xf32> to vector<16x16xbf16>
    %664 = arith.truncf %655 : vector<16x16xf32> to vector<16x16xbf16>
    %cst_466 = arith.constant dense<0.000000e+00> : vector<16x16xf32>
    %665 = tpu.matmul %663, %664, %cst_466 {dimension_numbers = #tpu.dot_dimension_numbers<[1], [1], [0], [0], [0, 0, 1, 0], [], []>} : vector<16x16xbf16>, vector<16x16xbf16>, vector<16x16xf32> -> vector<16x16xf32>
    %cst_467 = arith.constant 2.500000e-01 : f32
    %666 = vector.broadcast %cst_467 : f32 to vector<16x16xf32>
    %667 = arith.mulf %665, %666 : vector<16x16xf32>
    %668 = arith.addf %667, %374 : vector<16x16xf32>
    %cst_468 = arith.constant dense<0xFF800000> : vector<16xf32>
    %669 = vector.multi_reduction <maximumf>, %668, %cst_468 [1] : vector<16x16xf32> to vector<16xf32>
    %670 = vector.shape_cast %669 : vector<16xf32> to vector<16x1xf32>
    %671 = vector.broadcast %670 : vector<16x1xf32> to vector<16x16xf32>
    %672 = arith.subf %668, %671 : vector<16x16xf32>
    %673 = math.exp %672 : vector<16x16xf32>
    %cst_469 = arith.constant dense<0.000000e+00> : vector<16xf32>
    %674 = vector.multi_reduction <add>, %673, %cst_469 [1] : vector<16x16xf32> to vector<16xf32>
    %675 = vector.shape_cast %674 : vector<16xf32> to vector<16x1xf32>
    %676 = tpu.reciprocal %675 : vector<16x1xf32> -> vector<16x1xf32>
    %677 = vector.broadcast %676 : vector<16x1xf32> to vector<16x16xf32>
    %678 = arith.mulf %673, %677 : vector<16x16xf32>
    %679 = arith.truncf %678 : vector<16x16xf32> to vector<16x16xbf16>
    %680 = arith.truncf %662 : vector<16x16xf32> to vector<16x16xbf16>
    %cst_470 = arith.constant dense<0.000000e+00> : vector<16x16xf32>
    %681 = tpu.matmul %679, %680, %cst_470 {dimension_numbers = #tpu.dot_dimension_numbers<[1], [0], [0], [1], [0, 0, 1, 1], [], []>} : vector<16x16xbf16>, vector<16x16xbf16>, vector<16x16xf32> -> vector<16x16xf32>
    %682 = arith.truncf %681 : vector<16x16xf32> to vector<16x16xbf16>
    %c1_471 = arith.constant 1 : index
    %c1_472 = arith.constant 1 : index
    %c0_473 = arith.constant 0 : index
    %c0_474 = arith.constant 0 : index
    %683 = vector.load %arg36[%c1_471, %c1_472, %c0_473, %c0_474] : memref<2x2x16x32xbf16, #tpu.memory_space<vmem>>, vector<1x1x16x32xbf16>
    %684 = vector.shape_cast %683 : vector<1x1x16x32xbf16> to vector<16x32xbf16>
    %cst_475 = arith.constant dense<0.000000e+00> : vector<16x32xf32>
    %685 = tpu.matmul %682, %684, %cst_475 {dimension_numbers = #tpu.dot_dimension_numbers<[1], [0], [0], [1], [0, 0, 1, 1], [], []>} : vector<16x16xbf16>, vector<16x32xbf16>, vector<16x32xf32> -> vector<16x32xf32>
    %686 = arith.addf %641, %685 : vector<16x32xf32>
    %687 = arith.addf %570, %686 : vector<16x32xf32>
    %c1_476 = arith.constant 1 : index
    %c0_477 = arith.constant 0 : index
    %c0_478 = arith.constant 0 : index
    %688 = vector.load %arg37[%c1_476, %c0_477, %c0_478] : memref<2x1x32xf32, #tpu.memory_space<vmem>>, vector<1x1x32xf32>
    %689 = vector.shape_cast %688 : vector<1x1x32xf32> to vector<1x32xf32>
    %690 = vector.broadcast %689 : vector<1x32xf32> to vector<16x32xf32>
    %691 = arith.addf %687, %690 : vector<16x32xf32>
    %c1_479 = arith.constant 1 : index
    %c0_480 = arith.constant 0 : index
    %c0_481 = arith.constant 0 : index
    %692 = vector.load %arg38[%c1_479, %c0_480, %c0_481] : memref<2x1x32xf32, #tpu.memory_space<vmem>>, vector<1x1x32xf32>
    %693 = vector.shape_cast %692 : vector<1x1x32xf32> to vector<1x32xf32>
    %c1_482 = arith.constant 1 : index
    %c0_483 = arith.constant 0 : index
    %c0_484 = arith.constant 0 : index
    %694 = vector.load %arg39[%c1_482, %c0_483, %c0_484] : memref<2x1x32xf32, #tpu.memory_space<vmem>>, vector<1x1x32xf32>
    %695 = vector.shape_cast %694 : vector<1x1x32xf32> to vector<1x32xf32>
    %cst_485 = arith.constant dense<0.000000e+00> : vector<16xf32>
    %696 = vector.multi_reduction <add>, %691, %cst_485 [1] : vector<16x32xf32> to vector<16xf32>
    %697 = vector.shape_cast %696 : vector<16xf32> to vector<16x1xf32>
    %cst_486 = arith.constant 3.200000e+01 : f32
    %698 = vector.broadcast %cst_486 : f32 to vector<16x1xf32>
    %699 = arith.divf %697, %698 : vector<16x1xf32>
    %700 = vector.broadcast %699 : vector<16x1xf32> to vector<16x32xf32>
    %701 = arith.subf %691, %700 : vector<16x32xf32>
    %702 = arith.mulf %701, %701 : vector<16x32xf32>
    %cst_487 = arith.constant dense<0.000000e+00> : vector<16xf32>
    %703 = vector.multi_reduction <add>, %702, %cst_487 [1] : vector<16x32xf32> to vector<16xf32>
    %704 = vector.shape_cast %703 : vector<16xf32> to vector<16x1xf32>
    %cst_488 = arith.constant 3.200000e+01 : f32
    %705 = vector.broadcast %cst_488 : f32 to vector<16x1xf32>
    %706 = arith.divf %704, %705 : vector<16x1xf32>
    %cst_489 = arith.constant 9.99999974E-6 : f32
    %707 = vector.broadcast %cst_489 : f32 to vector<16x1xf32>
    %708 = arith.addf %706, %707 : vector<16x1xf32>
    %709 = math.rsqrt %708 : vector<16x1xf32>
    %710 = vector.broadcast %709 : vector<16x1xf32> to vector<16x32xf32>
    %711 = arith.mulf %701, %710 : vector<16x32xf32>
    %712 = vector.broadcast %693 : vector<1x32xf32> to vector<16x32xf32>
    %713 = arith.mulf %711, %712 : vector<16x32xf32>
    %714 = vector.broadcast %695 : vector<1x32xf32> to vector<16x32xf32>
    %715 = arith.addf %713, %714 : vector<16x32xf32>
    %716 = arith.truncf %715 : vector<16x32xf32> to vector<16x32xbf16>
    %c1_490 = arith.constant 1 : index
    %c0_491 = arith.constant 0 : index
    %c0_492 = arith.constant 0 : index
    %717 = vector.load %arg40[%c1_490, %c0_491, %c0_492] : memref<2x32x128xbf16, #tpu.memory_space<vmem>>, vector<1x32x128xbf16>
    %718 = vector.shape_cast %717 : vector<1x32x128xbf16> to vector<32x128xbf16>
    %cst_493 = arith.constant dense<0.000000e+00> : vector<16x128xf32>
    %719 = tpu.matmul %716, %718, %cst_493 {dimension_numbers = #tpu.dot_dimension_numbers<[1], [0], [0], [1], [0, 0, 1, 1], [], []>} : vector<16x32xbf16>, vector<32x128xbf16>, vector<16x128xf32> -> vector<16x128xf32>
    %c1_494 = arith.constant 1 : index
    %c0_495 = arith.constant 0 : index
    %c0_496 = arith.constant 0 : index
    %720 = vector.load %arg41[%c1_494, %c0_495, %c0_496] : memref<2x1x128xf32, #tpu.memory_space<vmem>>, vector<1x1x128xf32>
    %721 = vector.shape_cast %720 : vector<1x1x128xf32> to vector<1x128xf32>
    %722 = vector.broadcast %721 : vector<1x128xf32> to vector<16x128xf32>
    %723 = arith.addf %719, %722 : vector<16x128xf32>
    %cst_497 = arith.constant 1.702000e+00 : f32
    %724 = vector.broadcast %cst_497 : f32 to vector<16x128xf32>
    %725 = arith.mulf %724, %723 : vector<16x128xf32>
    %726 = arith.negf %725 : vector<16x128xf32>
    %727 = math.exp %726 : vector<16x128xf32>
    %cst_498 = arith.constant 1.000000e+00 : f32
    %728 = vector.broadcast %cst_498 : f32 to vector<16x128xf32>
    %729 = arith.addf %728, %727 : vector<16x128xf32>
    %730 = arith.divf %728, %729 : vector<16x128xf32>
    %731 = arith.mulf %723, %730 : vector<16x128xf32>
    %732 = arith.truncf %731 : vector<16x128xf32> to vector<16x128xbf16>
    %c1_499 = arith.constant 1 : index
    %c0_500 = arith.constant 0 : index
    %c0_501 = arith.constant 0 : index
    %733 = vector.load %arg42[%c1_499, %c0_500, %c0_501] : memref<2x128x32xbf16, #tpu.memory_space<vmem>>, vector<1x128x32xbf16>
    %734 = vector.shape_cast %733 : vector<1x128x32xbf16> to vector<128x32xbf16>
    %cst_502 = arith.constant dense<0.000000e+00> : vector<16x32xf32>
    %735 = tpu.matmul %732, %734, %cst_502 {dimension_numbers = #tpu.dot_dimension_numbers<[1], [0], [0], [1], [0, 0, 1, 1], [], []>} : vector<16x128xbf16>, vector<128x32xbf16>, vector<16x32xf32> -> vector<16x32xf32>
    %736 = arith.addf %691, %735 : vector<16x32xf32>
    %c1_503 = arith.constant 1 : index
    %c0_504 = arith.constant 0 : index
    %c0_505 = arith.constant 0 : index
    %737 = vector.load %arg43[%c1_503, %c0_504, %c0_505] : memref<2x1x32xf32, #tpu.memory_space<vmem>>, vector<1x1x32xf32>
    %738 = vector.shape_cast %737 : vector<1x1x32xf32> to vector<1x32xf32>
    %739 = vector.broadcast %738 : vector<1x32xf32> to vector<16x32xf32>
    %740 = arith.addf %736, %739 : vector<16x32xf32>
    %cst_506 = arith.constant dense<0.000000e+00> : vector<8x32xf32>
    %741 = tpu.matmul %377, %740, %cst_506 {dimension_numbers = #tpu.dot_dimension_numbers<[1], [0], [0], [1], [0, 0, 1, 1], [], []>} : vector<8x16xf32>, vector<16x32xf32>, vector<8x32xf32> -> vector<8x32xf32>
    %cst_507 = arith.constant dense<0.000000e+00> : vector<8xf32>
    %742 = vector.multi_reduction <add>, %741, %cst_507 [1] : vector<8x32xf32> to vector<8xf32>
    %743 = vector.shape_cast %742 : vector<8xf32> to vector<8x1xf32>
    %cst_508 = arith.constant 3.200000e+01 : f32
    %744 = vector.broadcast %cst_508 : f32 to vector<8x1xf32>
    %745 = arith.divf %743, %744 : vector<8x1xf32>
    %746 = vector.broadcast %745 : vector<8x1xf32> to vector<8x32xf32>
    %747 = arith.subf %741, %746 : vector<8x32xf32>
    %748 = arith.mulf %747, %747 : vector<8x32xf32>
    %cst_509 = arith.constant dense<0.000000e+00> : vector<8xf32>
    %749 = vector.multi_reduction <add>, %748, %cst_509 [1] : vector<8x32xf32> to vector<8xf32>
    %750 = vector.shape_cast %749 : vector<8xf32> to vector<8x1xf32>
    %cst_510 = arith.constant 3.200000e+01 : f32
    %751 = vector.broadcast %cst_510 : f32 to vector<8x1xf32>
    %752 = arith.divf %750, %751 : vector<8x1xf32>
    %cst_511 = arith.constant 9.99999974E-6 : f32
    %753 = vector.broadcast %cst_511 : f32 to vector<8x1xf32>
    %754 = arith.addf %752, %753 : vector<8x1xf32>
    %755 = math.rsqrt %754 : vector<8x1xf32>
    %756 = vector.broadcast %755 : vector<8x1xf32> to vector<8x32xf32>
    %757 = arith.mulf %747, %756 : vector<8x32xf32>
    %758 = vector.broadcast %375 : vector<1x32xf32> to vector<8x32xf32>
    %759 = arith.mulf %757, %758 : vector<8x32xf32>
    %760 = vector.broadcast %376 : vector<1x32xf32> to vector<8x32xf32>
    %761 = arith.addf %759, %760 : vector<8x32xf32>
    %762 = arith.truncf %761 : vector<8x32xf32> to vector<8x32xbf16>
    %cst_512 = arith.constant dense<0.000000e+00> : vector<8x128xf32>
    %763 = tpu.matmul %762, %378, %cst_512 {dimension_numbers = #tpu.dot_dimension_numbers<[1], [0], [0], [1], [0, 0, 1, 1], [], []>} : vector<8x32xbf16>, vector<32x128xbf16>, vector<8x128xf32> -> vector<8x128xf32>
    %c0_513 = arith.constant 0 : index
    %c0_514 = arith.constant 0 : index
    %764 = vector.load %arg48[%c0_513, %c0_514] : memref<8x128xf32, #tpu.memory_space<vmem>>, vector<8x128xf32>
    %c0_515 = arith.constant 0 : index
    %765 = memref.load %arg49[%c0_515] : memref<1xf32, #tpu.memory_space<smem>>
    %766 = arith.mulf %763, %763 : vector<8x128xf32>
    %cst_516 = arith.constant dense<0.000000e+00> : vector<8xf32>
    %767 = vector.multi_reduction <add>, %766, %cst_516 [1] : vector<8x128xf32> to vector<8xf32>
    %768 = vector.shape_cast %767 : vector<8xf32> to vector<8x1xf32>
    %769 = math.rsqrt %768 : vector<8x1xf32>
    %770 = vector.broadcast %769 : vector<8x1xf32> to vector<8x128xf32>
    %771 = arith.mulf %763, %770 : vector<8x128xf32>
    %772 = arith.mulf %368, %368 : vector<8x128xf32>
    %cst_517 = arith.constant dense<0.000000e+00> : vector<8xf32>
    %773 = vector.multi_reduction <add>, %772, %cst_517 [1] : vector<8x128xf32> to vector<8xf32>
    %774 = vector.shape_cast %773 : vector<8xf32> to vector<8x1xf32>
    %775 = math.rsqrt %774 : vector<8x1xf32>
    %776 = vector.broadcast %775 : vector<8x1xf32> to vector<8x128xf32>
    %777 = arith.mulf %368, %776 : vector<8x128xf32>
    %cst_518 = arith.constant 0.000000e+00 : f32
    %778 = vector.broadcast %cst_518 : f32 to vector<112x128xf32>
    %779 = tpu.concatenate %777, %764, %778 in 0 : vector<8x128xf32>, vector<8x128xf32>, vector<112x128xf32> -> vector<128x128xf32>
    %cst_519 = arith.constant dense<0.000000e+00> : vector<8x128xf32>
    %780 = tpu.matmul %771, %779, %cst_519 {dimension_numbers = #tpu.dot_dimension_numbers<[1], [1], [0], [0], [0, 0, 1, 0], [], []>} : vector<8x128xf32>, vector<128x128xf32>, vector<8x128xf32> -> vector<8x128xf32>
    %781 = vector.broadcast %765 : f32 to vector<8x128xf32>
    %782 = arith.mulf %781, %780 : vector<8x128xf32>
    %c0_520 = arith.constant 0 : index
    %c0_521 = arith.constant 0 : index
    %783 = vector.load %arg50[%c0_520, %c0_521] : memref<8x128xf32, #tpu.memory_space<vmem>>, vector<8x128xf32>
    tpu.vector_store %arg50[%c0_520, %c0_521], %771 {strides = array<i32>} : memref<8x128xf32, #tpu.memory_space<vmem>>, vector<8x128xf32>,
    %c0_522 = arith.constant 0 : index
    %c0_523 = arith.constant 0 : index
    %784 = vector.load %arg51[%c0_522, %c0_523] : memref<8x128xf32, #tpu.memory_space<vmem>>, vector<8x128xf32>
    tpu.vector_store %arg51[%c0_522, %c0_523], %777 {strides = array<i32>} : memref<8x128xf32, #tpu.memory_space<vmem>>, vector<8x128xf32>,
    %c0_524 = arith.constant 0 : index
    %c0_525 = arith.constant 0 : index
    %785 = vector.load %arg52[%c0_524, %c0_525] : memref<8x128xf32, #tpu.memory_space<vmem>>, vector<8x128xf32>
    tpu.vector_store %arg52[%c0_524, %c0_525], %782 {strides = array<i32>} : memref<8x128xf32, #tpu.memory_space<vmem>>, vector<8x128xf32>,
    return
  }
}

</mosaic_0001>

<bundles_post_ra>
// kernel: tile.9
= control target key start
LH: loop header
LB: loop body
LE: loop exit
PB: predicated region body
PF: predicated region fallthrough
CT: control target
= control target key end

     0   :  { %vm3_vm0 = vcmask 261120   ;;  %s34_s0 = inlined_call_operand.vmem [shape: f32[2,5,32], index: 0, kind: input, shape index: {}]   ;;  %s35_s1 = inlined_call_operand.vmem [shape: f32[10,32], index: 1, kind: output, shape index: {}]  }
   0x1   :  { %v2_v0 = vld [vmem:[%s34_s0] sm:$0x1f]   ;;  %v10_v1 = vld [vmem:[%s34_s0 + $0x8] sm:$0x1f]  }
   0x2   :  { %4 = vst.msk [vmem:[%s35_s1] sm:$0x1f] %vm3_vm0, %v2_v0   ;;  %11 = vst.msk [vmem:[%s35_s1 + $0x5] sm:$0x1f] %vm3_vm0, %v10_v1  }

// kernel: promptsrc_vl_forward.1
= control target key start
LH: loop header
LB: loop body
LE: loop exit
PB: predicated region body
PF: predicated region fallthrough
CT: control target
= control target key end

     0   :  { %vm230_vm0 = vcmask 261120   ;;  %s7294_s6 = smov 4   ;;  %s7295_s10 = smov 8   ;;  %vm532_vm1 = vcmask 130048   ;;  %vm7312_vm2 = vmmov 0   ;;  %vm3236_vm3 = vcmask 523264   ;;  %s8378_s0 = inlined_call_operand.smem [shape: u32[53], index: -1, kind: input, shape index: {}] }
   0x1   :  { %s1_s5 = sld [smem:[%s8378_s0]]   ;;  %s7296_s14 = smov 6  }
   0x2   :  { %s7393_s9 = sld [smem:[%s8378_s0 + %s7294_s6]]   ;;  %s7297_s18 = smov 2  }
   0x3   :  { %s7398_s13 = sld [smem:[%s8378_s0 + %s7295_s10]]   ;;  %s7298_s22 = smov 3  }
   0x4   :  { %s7405_s17 = sld [smem:[%s8378_s0 + %s7296_s14]]   ;;  %s7299_s26 = smov 5  }
   0x5   :  { %s7413_s21 = sld [smem:[%s8378_s0 + %s7297_s18]]   ;;  %s7300_s30 = smov 9  }
   0x6   :  { %s7418_s25 = sld [smem:[%s8378_s0 + %s7298_s22]]   ;;  %s7301_s4 = smov 7  }
   0x7   :  { %v7358_v0 = vld [vmem:[%s1_s5] sm:$0xff]  ;;  %v7360_v1 = vld [vmem:[%s1_s5 + $0x10] sm:$0xff]  ;;  %v7362_v2 = vld [vmem:[%s1_s5 + $0x8] sm:$0xff]  ;;  %s7444_s29 = sld [smem:[%s8378_s0 + %s7299_s26]]   ;;  %s7302_s8 = smov 1  }
   0x8   :  { %v231_v3 = vsel %vm230_vm0, %v7358_v0, 0.0  ;;  %v237_v4 = vsel %vm230_vm0, %v7360_v1, 0.0  ;;  %v7368_v5 = vld [vmem:[%s1_s5 + $0x18] sm:$0xff]  ;;  %v234_v6 = vsel %vm230_vm0, %v7362_v2, 0.0  ;;  %v6965_v28 = vld [vmem:[%s7393_s9] sm:$0xff]   ;;  %v6967_v30 = vld [vmem:[%s7393_s9 + $0x8] sm:$0xff]   ;;  %s7449_s3 = sld [smem:[%s8378_s0 + %s7300_s30]]  }
   0x9   :  { %232 = vadd.xlane.f32.xlu0 %v231_v3  ;;  %238 = vadd.xlane.f32.xlu1 %v237_v4  ;;  %v240_v7 = vsel %vm230_vm0, %v7368_v5, 0.0  ;;  %v6966_v29 = vld [vmem:[%s7398_s13] sm:$0xff]   ;;  %v6968_v31 = vld [vmem:[%s7398_s13 + $0x8] sm:$0xff]   ;;  %s7456_s7 = sld [smem:[%s8378_s0 + %s7301_s4]]   ;;  %s7303_s14 = smov 10  }
   0xa   :  { %6376 = vmatprep.subr.bf16.mxu1 %v6965_v28  ;;  %6392 = vmatprep.subr.bf16.mxu0 %v6966_v29  ;;  %v6969_v32 = vld [vmem:[%s7405_s17] sm:$0xff]   ;;  %v6970_v4 = vld [vmem:[%s7405_s17 + $0x8] sm:$0xff]   ;;  %s7474_s12 = sld [smem:[%s8378_s0 + %s7302_s8]]   ;;  %s7304_s19 = smov 11  }
   0xb   :  { %6377 = vmatpush3.bf16.msra.mxu1 %v6965_v28  ;;  %6393 = vmatpush3.bf16.msra.mxu0 %v6966_v29  ;;  %v5732_v47 = vld [vmem:[%s7413_s21] ss:$0 sm:$0xff]  ;;  %s7552_s18 = sld [smem:[%s8378_s0 + %s7303_s14]]   ;;  %s7305_s24 = smov 14  }
   0xc   :  { %6378 = vmatprep.subr.bf16.mxu1 %v6967_v30  ;;  %6394 = vmatprep.subr.bf16.mxu0 %v6968_v31  ;;  %v5733_v52 = vld [vmem:[%s7418_s25] ss:$0 sm:$0xff]  ;;  %s7569_s23 = sld [smem:[%s8378_s0 + %s7304_s19]]   ;;  %s7306_s30 = smov 12  }
   0xd   :  { %235 = vadd.xlane.f32.xlu0 %v234_v6  ;;  %241 = vadd.xlane.f32.xlu1 %v240_v7  ;;  %v5734_v7 = vld [vmem:[%s7444_s29] ss:$0 sm:$0xff]  ;;  %s7603_s28 = sld [smem:[%s8378_s0 + %s7305_s24]]   ;;  %s7307_s5 = smov 13  }
   0xe   :  { %s7610_s4 = sld [smem:[%s8378_s0 + %s7306_s30]]   ;;  %s7308_s11 = smov 16  }
   0xf   :  { %6379 = vmatpush3.bf16.msra.mxu1 %v6967_v30  ;;  %6395 = vmatpush3.bf16.msra.mxu0 %v6968_v31  ;;  %v5739_v29 = vld [vmem:[%s7456_s7] ss:$0 sm:$0xff]  ;;  %s7615_s10 = sld [smem:[%s8378_s0 + %s7307_s5]]   ;;  %s7309_s19 = smov 15  }
  0x10   :  { %6384 = vmatprep.subr.bf16.mxu1 %v6969_v32  ;;  %s7624_s16 = sld [smem:[%s8378_s0 + %s7308_s11]]   ;;  %s7310_s26 = smov 17  }
  0x11   :  { %s7637_s24 = sld [smem:[%s8378_s0 + %s7309_s19]]   ;;  %s7317_s2 = smov 20  }
  0x12   :  { %s7643_s1 = sld [smem:[%s8378_s0 + %s7310_s26]]   ;;  %s7318_s8 = smov 23  }
  0x13   :  { %s5699_s6 = sld [smem:[%s8378_s0 + %s7317_s2]]   ;;  %s7320_s15 = smov 22  }
  0x14   :  { %s7886_s14 = sld [smem:[%s8378_s0 + %s7318_s8]]   ;;  %s7321_s22 = smov 24  }
  0x15   :  { %s7891_s20 = sld [smem:[%s8378_s0 + %s7320_s15]]   ;;  %s7322_s30 = smov 25  }
  0x16   :  { %s5703_s27 = sld [smem:[%s8378_s0 + %s7321_s22]]   ;;  %s7326_s5 = smov 34  }
  0x17   :  { %s7327_s11 = smov 28   ;;  %s7328_s19 = smov 29  }
  0x18   :  { %s7329_s26 = smov 31   ;;  %s7335_s22 = smov 40  }
  0x19   :  { %s7339_s8 = smov 41   ;;  %s7347_s15 = smov 50  }
  0x96   :  { %v233_v8 = vpop.xlane.xlu0 %232  ;;  %v239_v9 = vpop.xlane.xlu1 %238 }
  0x97   :  { %v244_v10 = vmul.f32 0.03125, %v233_v8  ;;  %v246_v11 = vmul.f32 0.03125, %v239_v9  ;;  %v5744_v9 = vld [vmem:[%s7449_s3] ss:$0 sm:$0xff] }
  0x99   :  { %v248_v12 = vsub.f32 %v7358_v0, %v244_v10  ;;  %v7376_v13 = vsub.f32 %v7360_v1, %v246_v11 }
  0x9a   :  { %v236_v14 = vpop.xlane.xlu0 %235  ;;  %v242_v15 = vpop.xlane.xlu1 %241 }
  0x9b   :  { %v245_v16 = vmul.f32 0.03125, %v236_v14  ;;  %v247_v17 = vmul.f32 0.03125, %v242_v15  ;;  %v252_v18 = vmul.f32 %v248_v12, %v248_v12  ;;  %v254_v19 = vmul.f32 %v7376_v13, %v7376_v13 }
  0x9d   :  { %v249_v20 = vsub.f32 %v7362_v2, %v245_v16  ;;  %v7382_v21 = vsub.f32 %v7368_v5, %v247_v17  ;;  %v256_v22 = vsel %vm230_vm0, %v252_v18, 0.0  ;;  %v262_v23 = vsel %vm230_vm0, %v254_v19, 0.0 }
  0x9e   :  { %257 = vadd.xlane.f32.xlu0 %v256_v22 }
  0x9f   :  { %v253_v24 = vmul.f32 %v249_v20, %v249_v20  ;;  %v255_v25 = vmul.f32 %v7382_v21, %v7382_v21 }
  0xa1   :  { %v259_v26 = vsel %vm230_vm0, %v253_v24, 0.0  ;;  %v265_v27 = vsel %vm230_vm0, %v255_v25, 0.0 }
  0xa2   :  { %263 = vadd.xlane.f32.xlu0 %v262_v23  ;;  %260 = vadd.xlane.f32.xlu1 %v259_v26 }
  0xa6   :  { %266 = vadd.xlane.f32.xlu1 %v265_v27 }
 0x12b   :  { %v258_v33 = vpop.xlane.xlu0 %257 }
 0x12c   :  { %v268_v34 = vmul.f32 0.03125, %v258_v33 }
 0x12e   :  { %v272_v35 = vadd.f32 1e-05, %v268_v34 }
 0x12f   :  { %v261_v36 = vpop.xlane.xlu1 %260  ;;  %v264_v37 = vpop.xlane.xlu0 %263 }
 0x130   :  { %7080 = vrsqrt.f32 %v272_v35  ;;  %v269_v38 = vmul.f32 0.03125, %v261_v36  ;;  %v270_v39 = vmul.f32 0.03125, %v264_v37 }
 0x132   :  { %v273_v40 = vadd.f32 1e-05, %v269_v38  ;;  %v274_v41 = vadd.f32 1e-05, %v270_v39 }
 0x133   :  { %v267_v42 = vpop.xlane.xlu1 %266 }
 0x134   :  { %7082 = vrsqrt.f32 %v273_v40  ;;  %v271_v43 = vmul.f32 0.03125, %v267_v42  ;;  %v6971_v40 = vld [vmem:[%s7405_s17 + $0x10] sm:$0xff]   ;;  %v6972_v42 = vld [vmem:[%s7405_s17 + $0x18] sm:$0xff]  }
 0x135   :  { %7084 = vrsqrt.f32 %v274_v41 }
 0x136   :  { %v275_v44 = vadd.f32 1e-05, %v271_v43 }
 0x138   :  { %7086 = vrsqrt.f32 %v275_v44 }
 0x13a   :  { %v7081_v45 = vpop.eup %7080 }
 0x13b   :  { %v280_v46 = vmul.f32 %v7081_v45, %v248_v12  ;;  %v7477_v45 = vld [vmem:[%s7474_s12] sm:$0xff] }
 0x13d   :  { %v290_v50 = vmul.f32 %v5732_v47, %v280_v46 }
 0x13e   :  { %v7083_v48 = vpop.eup %7082 }
 0x13f   :  { %v7085_v49 = vpop.eup %7084  ;;  %v281_v51 = vmul.f32 %v7083_v48, %v249_v20  ;;  %v300_v56 = vadd.f32 %v5733_v52, %v290_v50  ;;  %v7480_v50 = vld [vmem:[%s7474_s12 + $0x8] sm:$0xff] }
 0x140   :  { %v282_v53 = vmul.f32 %v7085_v49, %v7376_v13 }
 0x141   :  { %v291_v54 = vmul.f32 %v5732_v47, %v281_v51  ;;  %v7483_v51 = vld [vmem:[%s7474_s12 + $0x10] sm:$0xff] }
 0x142   :  { %v7087_v55 = vpop.eup %7086  ;;  %v292_v58 = vmul.f32 %v5732_v47, %v282_v53 }
 0x143   :  { %v301_v57 = vadd.f32 %v5733_v52, %v291_v54  ;;  %v283_v59 = vmul.f32 %v7087_v55, %v7382_v21  ;;  %v7487_v55 = vld [vmem:[%s7474_s12 + $0x18] sm:$0xff] }
 0x144   :  { %v302_v62 = vadd.f32 %v5733_v52, %v292_v58 }
 0x145   :  { %v293_v60 = vmul.f32 %v5732_v47, %v283_v59  ;;  %v7424_v61 = vpack.c.bf16 %v301_v57, %v300_v56 }
 0x147   :  { %v303_v63 = vadd.f32 %v5733_v52, %v293_v60  ;;  %6380 = vmatprep.mubr.msk.bf16.mxu1 %vm230_vm0, %v7424_v61  ;;  %6396 = vmatprep.mubr.msk.bf16.mxu0 %vm230_vm0, %v7424_v61  ;;  %v5768_v60 = vld [vmem:[%s7456_s7 + $0x1] ss:$0 sm:$0xff] }
 0x149   :  { %v7430_v3 = vpack.c.bf16 %v303_v63, %v302_v62 }
 0x14b   :  { %6381 = vmatmul.mubr.msk.bf16.vlgmr.msra.gmra.mrb[0].mxu1 %vm230_vm0, %v7430_v3  ;;  %6397 = vmatmul.mubr.msk.bf16.vlgmr.msra.gmra.mrb[0].mxu0 %vm230_vm0, %v7430_v3 }
 0x14c   :  { %6385 = vmatpush3.bf16.msra.mxu1 %v6969_v32  ;;  %6388 = vmatprep.mubr.msk.bf16.mxu1 %vm230_vm0, %v7424_v61 }
 0x14d   :  { %6386 = vmatprep.subr.bf16.mxu1 %v6970_v4 }
 0x150   :  { %6387 = vmatpush3.bf16.msra.mxu1 %v6970_v4 }
 0x153   :  { %6389 = vmatmul.mubr.msk.bf16.vlgmr.msra.gmra.mrb[4].mxu1 %vm230_vm0, %v7430_v3 }
 0x21e   :  { %v6382_v6 = vpop.f32.mrb[0].mxu1  ;;  %v6398_v8 = vpop.f32.mrb[0].mxu0 }
 0x21f   :  { %v369_v10 = vpop.f32.mrb[1].mxu1  ;;  %v513_v11 = vpop.f32.mrb[1].mxu0  ;;  %v378_v14 = vadd.f32 %v6382_v6, %v5734_v7  ;;  %v522_v15 = vadd.f32 %v6398_v8, %v5744_v9 }
 0x220   :  { %v6383_v12 = vpop.f32.mrb[2].mxu1  ;;  %v6399_v13 = vpop.f32.mrb[2].mxu0  ;;  %v370_v20 = vadd.f32 %v5734_v7, %v369_v10  ;;  %v514_v21 = vadd.f32 %v5744_v9, %v513_v11 }
 0x221   :  { %v381_v16 = vadd.f32 %v6383_v12, %v5734_v7  ;;  %v525_v17 = vadd.f32 %v6399_v13, %v5744_v9  ;;  %v372_v18 = vpop.f32.mrb[3].mxu1  ;;  %v516_v19 = vpop.f32.mrb[3].mxu0 }
 0x222   :  { %v373_v22 = vadd.f32 %v5734_v7, %v372_v18  ;;  %v517_v23 = vadd.f32 %v5744_v9, %v516_v19 }
 0x223   :  { %v529_v24 = vpack.c.bf16 %v381_v16, %v378_v14  ;;  %v649_v25 = vpack.c.bf16 %v525_v17, %v522_v15 }
 0x224   :  { %v528_v26 = vpack.c.bf16 %v373_v22, %v370_v20  ;;  %v648_v27 = vpack.c.bf16 %v517_v23, %v514_v21 }
 0x226   :  { %v6390_v28 = vpop.f32.mrb[4].mxu1  ;;  %6404 = vmatprep.mubr.msk.bf16.mxu1 %vm532_vm1, %v528_v26  ;;  %6408 = vmatprep.subr.bf16.mxu0 %v648_v27 }
 0x227   :  { %v441_v30 = vpop.f32.mrb[5].mxu1  ;;  %6409 = vmatpush3.bf16.msra.mxu0 %v648_v27  ;;  %v450_v32 = vadd.f32 %v6390_v28, %v5739_v29 }
 0x228   :  { %v6391_v31 = vpop.f32.mrb[6].mxu1  ;;  %6410 = vmatprep.subr.bf16.mxu0 %v649_v25  ;;  %v442_v35 = vadd.f32 %v5739_v29, %v441_v30 }
 0x229   :  { %v453_v33 = vadd.f32 %v6391_v31, %v5739_v29  ;;  %v444_v34 = vpop.f32.mrb[7].mxu1 }
 0x22a   :  { %v445_v36 = vadd.f32 %v5739_v29, %v444_v34 }
 0x22b   :  { %v531_v37 = vpack.c.bf16 %v453_v33, %v450_v32  ;;  %6411 = vmatpush3.bf16.msra.mxu0 %v649_v25 }
 0x22c   :  { %v530_v38 = vpack.c.bf16 %v445_v36, %v442_v35 }
 0x22d   :  { %v543_v41 = vsel %vm532_vm1, %v531_v37, 0 }
 0x22e   :  { %6901 = vmatprep.subr.msk.bf16.mxu1 %vm532_vm1, %v530_v38  ;;  %v540_v39 = vsel %vm532_vm1, %v530_v38, 0  ;;  %v6973_v38 = vld [vmem:[%s7393_s9 + $0x10] sm:$0xff]  }
 0x22f   :  { %6401 = vmatpush3.bf16.xpose.msra.mxu1 %v540_v39  ;;  %6416 = vmatprep.subr.bf16.mxu0 %v6973_v38 }
 0x230   :  { %6902 = vmatprep.subr.msk.bf16.mxu1 %vm532_vm1, %v531_v37 }
 0x237   :  { %6403 = vmatpush3.bf16.xpose.msra.mxu1 %v543_v41 }
 0x238   :  { %6424 = vmatprep.subr.bf16.mxu1 %v6971_v40 }
 0x23e   :  { %6405 = vmatmul.mubr.msk.bf16.vlgmr.msra.gmra.mrb[8].mxu1 %vm532_vm1, %v529_v24 }
 0x23f   :  { %6425 = vmatpush3.bf16.msra.mxu1 %v6971_v40  ;;  %6428 = vmatprep.mubr.msk.bf16.mxu1 %vm230_vm0, %v7424_v61 }
 0x240   :  { %6426 = vmatprep.subr.bf16.mxu1 %v6972_v42 }
 0x243   :  { %6427 = vmatpush3.bf16.msra.mxu1 %v6972_v42 }
 0x246   :  { %6429 = vmatmul.mubr.msk.bf16.vlgmr.msra.gmra.mrb[12].mxu1 %vm230_vm0, %v7430_v3 }
 0x311   :  { %v6406_v43 = vpop.f32.mrb[8].mxu1 }
 0x312   :  { %v579_v44 = vpop.f32.mrb[9].mxu1  ;;  %v596_v46 = vmul.f32 0.25, %v6406_v43 }
 0x313   :  { %v594_v47 = vmul.f32 0.25, %v579_v44  ;;  %v6407_v48 = vpop.f32.mrb[10].mxu1 }
 0x314   :  { %v582_v49 = vpop.f32.mrb[11].mxu1  ;;  %v597_v52 = vmul.f32 0.25, %v6407_v48  ;;  %v600_v58 = vadd.f32 %v596_v46, %v7483_v51 }
 0x315   :  { %v595_v53 = vmul.f32 0.25, %v582_v49  ;;  %v598_v54 = vadd.f32 %v594_v47, %v7477_v45 }
 0x316   :  { %v601_v63 = vadd.f32 %v597_v52, %v7487_v55  ;;  %v608_v7 = vsel %vm230_vm0, %v600_v58, -inf }
 0x317   :  { %v602_v56 = vsel %vm230_vm0, %v598_v54, -inf  ;;  %v599_v57 = vadd.f32 %v595_v53, %v7480_v50 }
 0x318   :  { %603 = vmax.xlane.f32.xlu0 %v602_v56  ;;  %v611_v13 = vsel %vm230_vm0, %v601_v63, -inf }
 0x319   :  { %v6430_v59 = vpop.f32.mrb[12].mxu1  ;;  %v605_v62 = vsel %vm230_vm0, %v599_v57, -inf }
 0x31a   :  { %v842_v4 = vpop.f32.mrb[13].mxu1  ;;  %606 = vmax.xlane.f32.xlu1 %v605_v62  ;;  %v851_v8 = vadd.f32 %v6430_v59, %v5768_v60  ;;  %v6976_v59 = vld [vmem:[%s7398_s13 + $0x18] sm:$0xff]  }
 0x31b   :  { %v6431_v6 = vpop.f32.mrb[14].mxu1  ;;  %v843_v11 = vadd.f32 %v5768_v60, %v842_v4 }
 0x31c   :  { %v854_v9 = vadd.f32 %v6431_v6, %v5768_v60  ;;  %609 = vmax.xlane.f32.xlu0 %v608_v7  ;;  %v845_v10 = vpop.f32.mrb[15].mxu1 }
 0x31d   :  { %v846_v12 = vadd.f32 %v5768_v60, %v845_v10 }
 0x31e   :  { %v934_v14 = vpack.c.bf16 %v854_v9, %v851_v8  ;;  %612 = vmax.xlane.f32.xlu1 %v611_v13  ;;  %v5758_v8 = vld [vmem:[%s7444_s29 + $0x1] ss:$0 sm:$0xff] }
 0x31f   :  { %v933_v15 = vpack.c.bf16 %v846_v12, %v843_v11 }
 0x320   :  { %v945_v17 = vsel %vm532_vm1, %v934_v14, 0 }
 0x321   :  { %6903 = vmatprep.subr.msk.bf16.mxu1 %vm532_vm1, %v933_v15  ;;  %v942_v16 = vsel %vm532_vm1, %v933_v15, 0 }
 0x322   :  { %6441 = vmatpush3.bf16.xpose.msra.mxu1 %v942_v16 }
 0x323   :  { %6904 = vmatprep.subr.msk.bf16.mxu1 %vm532_vm1, %v934_v14 }
 0x32a   :  { %6443 = vmatpush3.bf16.xpose.msra.mxu1 %v945_v17 }
 0x3a5   :  { %v604_v18 = vpop.xlane.xlu0 %603 }
 0x3a6   :  { %v614_v19 = vsub.f32 %v598_v54, %v604_v18  ;;  %v5778_v18 = vld [vmem:[%s7449_s3 + $0x1] ss:$0 sm:$0xff] }
 0x3a7   :  { %v607_v20 = vpop.xlane.xlu1 %606 }
 0x3a8   :  { %v618_v21 = vmul.f32 1.442695, %v614_v19  ;;  %v615_v22 = vsub.f32 %v599_v57, %v607_v20  ;;  %v6974_v57 = vld [vmem:[%s7393_s9 + $0x18] sm:$0xff]  }
 0x3a9   :  { %v610_v23 = vpop.xlane.xlu0 %609 }
 0x3aa   :  { %7088 = vpow2.f32 %v618_v21  ;;  %v620_v24 = vmul.f32 1.442695, %v615_v22  ;;  %v616_v25 = vsub.f32 %v600_v58, %v610_v23  ;;  %v6975_v58 = vld [vmem:[%s7398_s13 + $0x10] sm:$0xff]  }
 0x3ab   :  { %v613_v26 = vpop.xlane.xlu1 %612 }
 0x3ac   :  { %7090 = vpow2.f32 %v620_v24  ;;  %v622_v27 = vmul.f32 1.442695, %v616_v25  ;;  %v617_v28 = vsub.f32 %v601_v63, %v613_v26 }
 0x3ae   :  { %7092 = vpow2.f32 %v622_v27  ;;  %v624_v29 = vmul.f32 1.442695, %v617_v28 }
 0x3b0   :  { %7094 = vpow2.f32 %v624_v29 }
 0x3b4   :  { %v7089_v30 = vpop.eup %7088 }
 0x3b5   :  { %v626_v31 = vsel %vm230_vm0, %v7089_v30, 0.0 }
 0x3b6   :  { %v7091_v32 = vpop.eup %7090  ;;  %627 = vadd.xlane.f32.xlu0 %v626_v31 }
 0x3b7   :  { %v629_v33 = vsel %vm230_vm0, %v7091_v32, 0.0 }
 0x3b8   :  { %v7093_v34 = vpop.eup %7092  ;;  %630 = vadd.xlane.f32.xlu1 %v629_v33 }
 0x3b9   :  { %v632_v35 = vsel %vm230_vm0, %v7093_v34, 0.0 }
 0x3ba   :  { %v7095_v36 = vpop.eup %7094  ;;  %633 = vadd.xlane.f32.xlu0 %v632_v35 }
 0x3bb   :  { %v635_v37 = vsel %vm230_vm0, %v7095_v36, 0.0 }
 0x3bc   :  { %636 = vadd.xlane.f32.xlu1 %v635_v37 }
 0x443   :  { %v628_v39 = vpop.xlane.xlu0 %627 }
 0x444   :  { %7096 = vrcp.f32 %v628_v39 }
 0x445   :  { %v631_v40 = vpop.xlane.xlu1 %630 }
 0x446   :  { %7098 = vrcp.f32 %v631_v40 }
 0x447   :  { %v634_v41 = vpop.xlane.xlu0 %633 }
 0x448   :  { %7100 = vrcp.f32 %v634_v41 }
 0x449   :  { %v637_v42 = vpop.xlane.xlu1 %636 }
 0x44a   :  { %7102 = vrcp.f32 %v637_v42 }
 0x44e   :  { %v7097_v43 = vpop.eup %7096 }
 0x44f   :  { %v642_v46 = vmul.f32 %v7097_v43, %v7089_v30 }
 0x450   :  { %v7099_v44 = vpop.eup %7098 }
 0x451   :  { %v643_v47 = vmul.f32 %v7099_v44, %v7091_v32 }
 0x452   :  { %v7101_v48 = vpop.eup %7100 }
 0x453   :  { %v646_v49 = vpack.c.bf16 %v643_v47, %v642_v46  ;;  %v644_v53 = vmul.f32 %v7101_v48, %v7093_v34 }
 0x454   :  { %v7103_v52 = vpop.eup %7102 }
 0x455   :  { %v645_v54 = vmul.f32 %v7103_v52, %v7095_v36  ;;  %6412 = vmatprep.mubr.msk.bf16.mxu0 %vm230_vm0, %v646_v49 }
 0x457   :  { %v647_v56 = vpack.c.bf16 %v645_v54, %v644_v53 }
 0x459   :  { %6413 = vmatmul.mubr.msk.bf16.vlgmr.msra.gmra.mrb[4].mxu0 %vm230_vm0, %v647_v56 }
 0x45a   :  { %6417 = vmatpush3.bf16.msra.mxu0 %v6973_v38  ;;  %6420 = vmatprep.mubr.msk.bf16.mxu0 %vm230_vm0, %v7424_v61 }
 0x45b   :  { %6418 = vmatprep.subr.bf16.mxu0 %v6974_v57 }
 0x45e   :  { %6419 = vmatpush3.bf16.msra.mxu0 %v6974_v57 }
 0x45f   :  { %6432 = vmatprep.subr.bf16.mxu0 %v6975_v58 }
 0x461   :  { %6421 = vmatmul.mubr.msk.bf16.vlgmr.msra.gmra.mrb[8].mxu0 %vm230_vm0, %v7430_v3 }
 0x462   :  { %6433 = vmatpush3.bf16.msra.mxu0 %v6975_v58  ;;  %6436 = vmatprep.mubr.msk.bf16.mxu0 %vm230_vm0, %v7424_v61 }
 0x463   :  { %6434 = vmatprep.subr.bf16.mxu0 %v6976_v59 }
 0x466   :  { %6435 = vmatpush3.bf16.msra.mxu0 %v6976_v59 }
 0x469   :  { %6437 = vmatmul.mubr.msk.bf16.vlgmr.msra.gmra.mrb[12].mxu0 %vm230_vm0, %v7430_v3 }
 0x52c   :  { %v7519_v60 = vpop.f32.mrb[4].mxu0 }
 0x52d   :  { %v7521_v62 = vpop.f32.mrb[5].mxu0 }
 0x52e   :  { %v7523_v63 = vpop.f32.mrb[6].mxu0 }
 0x52f   :  { %v706_v4 = vpack.c.bf16 %v7523_v63, %v7519_v60  ;;  %v7527_v6 = vpop.f32.mrb[7].mxu0 }
 0x530   :  { %v705_v61 = vpack.c.bf16 %v7527_v6, %v7521_v62 }
 0x534   :  { %v6422_v7 = vpop.f32.mrb[8].mxu0 }
 0x535   :  { %v768_v9 = vpop.f32.mrb[9].mxu0  ;;  %v777_v3 = vadd.f32 %v6422_v7, %v5758_v8 }
 0x536   :  { %v6423_v10 = vpop.f32.mrb[10].mxu0  ;;  %v769_v13 = vadd.f32 %v5758_v8, %v768_v9 }
 0x537   :  { %v780_v11 = vadd.f32 %v6423_v10, %v5758_v8  ;;  %v771_v12 = vpop.f32.mrb[11].mxu0 }
 0x538   :  { %v772_v14 = vadd.f32 %v5758_v8, %v771_v12 }
 0x539   :  { %v932_v15 = vpack.c.bf16 %v780_v11, %v777_v3 }
 0x53a   :  { %v931_v16 = vpack.c.bf16 %v772_v14, %v769_v13 }
 0x53c   :  { %v6438_v17 = vpop.f32.mrb[12].mxu0  ;;  %6444 = vmatprep.mubr.msk.bf16.mxu1 %vm532_vm1, %v931_v16 }
 0x53d   :  { %v916_v19 = vpop.f32.mrb[13].mxu0  ;;  %6445 = vmatmul.mubr.msk.bf16.vlgmr.msra.gmra.mrb[16].mxu1 %vm532_vm1, %v932_v15  ;;  %v925_v21 = vadd.f32 %v6438_v17, %v5778_v18 }
 0x53e   :  { %v6439_v20 = vpop.f32.mrb[14].mxu0  ;;  %v917_v24 = vadd.f32 %v5778_v18, %v916_v19 }
 0x53f   :  { %v928_v22 = vadd.f32 %v6439_v20, %v5778_v18  ;;  %v919_v23 = vpop.f32.mrb[15].mxu0 }
 0x540   :  { %v920_v25 = vadd.f32 %v5778_v18, %v919_v23 }
 0x541   :  { %v1051_v26 = vpack.c.bf16 %v928_v22, %v925_v21 }
 0x542   :  { %v1050_v27 = vpack.c.bf16 %v920_v25, %v917_v24  ;;  %v6977_v24 = vld [vmem:[%s7552_s18 + $0x8] sm:$0xff]   ;;  %v6978_v25 = vld [vmem:[%s7552_s18] sm:$0xff]  }
 0x544   :  { %6448 = vmatprep.subr.bf16.mxu0 %v1050_v27 }
 0x545   :  { %6449 = vmatpush3.bf16.msra.mxu0 %v1050_v27 }
 0x546   :  { %6450 = vmatprep.subr.bf16.mxu0 %v1051_v26 }
 0x549   :  { %6451 = vmatpush3.bf16.msra.mxu0 %v1051_v26 }
 0x54a   :  { %6456 = vmatprep.subr.bf16.mxu0 %v6977_v24 }
 0x610   :  { %v6446_v28 = vpop.f32.mrb[16].mxu1 }
 0x611   :  { %v981_v29 = vpop.f32.mrb[17].mxu1  ;;  %v998_v30 = vmul.f32 0.25, %v6446_v28 }
 0x612   :  { %v996_v31 = vmul.f32 0.25, %v981_v29  ;;  %v6447_v32 = vpop.f32.mrb[18].mxu1 }
 0x613   :  { %v984_v33 = vpop.f32.mrb[19].mxu1  ;;  %v999_v34 = vmul.f32 0.25, %v6447_v32  ;;  %v1002_v39 = vadd.f32 %v998_v30, %v7483_v51 }
 0x614   :  { %v997_v35 = vmul.f32 0.25, %v984_v33  ;;  %v1000_v36 = vadd.f32 %v996_v31, %v7477_v45  ;;  %v5795_v33 = vld [vmem:[%s7569_s23] ss:$0 sm:$0xff] }
 0x615   :  { %v1003_v41 = vadd.f32 %v999_v34, %v7487_v55  ;;  %v1010_v42 = vsel %vm230_vm0, %v1002_v39, -inf }
 0x616   :  { %v1004_v37 = vsel %vm230_vm0, %v1000_v36, -inf  ;;  %v1001_v38 = vadd.f32 %v997_v35, %v7480_v50 }
 0x617   :  { %1005 = vmax.xlane.f32.xlu0 %v1004_v37  ;;  %v1013_v43 = vsel %vm230_vm0, %v1003_v41, -inf }
 0x618   :  { %v1007_v40 = vsel %vm230_vm0, %v1001_v38, -inf }
 0x619   :  { %1008 = vmax.xlane.f32.xlu1 %v1007_v40 }
 0x61b   :  { %1011 = vmax.xlane.f32.xlu0 %v1010_v42 }
 0x61d   :  { %1014 = vmax.xlane.f32.xlu1 %v1013_v43 }
 0x6a4   :  { %v1006_v44 = vpop.xlane.xlu0 %1005 }
 0x6a5   :  { %v1016_v45 = vsub.f32 %v1000_v36, %v1006_v44 }
 0x6a6   :  { %v1009_v46 = vpop.xlane.xlu1 %1008 }
 0x6a7   :  { %v1020_v47 = vmul.f32 1.442695, %v1016_v45  ;;  %v1017_v48 = vsub.f32 %v1001_v38, %v1009_v46 }
 0x6a8   :  { %v1012_v50 = vpop.xlane.xlu0 %1011 }
 0x6a9   :  { %7104 = vpow2.f32 %v1020_v47  ;;  %v1022_v51 = vmul.f32 1.442695, %v1017_v48  ;;  %v1018_v49 = vsub.f32 %v1002_v39, %v1012_v50 }
 0x6aa   :  { %v1015_v52 = vpop.xlane.xlu1 %1014 }
 0x6ab   :  { %7106 = vpow2.f32 %v1022_v51  ;;  %v1024_v53 = vmul.f32 1.442695, %v1018_v49  ;;  %v1019_v55 = vsub.f32 %v1003_v41, %v1015_v52 }
 0x6ad   :  { %7108 = vpow2.f32 %v1024_v53  ;;  %v1026_v54 = vmul.f32 1.442695, %v1019_v55 }
 0x6af   :  { %7110 = vpow2.f32 %v1026_v54 }
 0x6b3   :  { %v7105_v56 = vpop.eup %7104 }
 0x6b4   :  { %v1028_v57 = vsel %vm230_vm0, %v7105_v56, 0.0 }
 0x6b5   :  { %v7107_v58 = vpop.eup %7106  ;;  %1029 = vadd.xlane.f32.xlu0 %v1028_v57 }
 0x6b6   :  { %v1031_v59 = vsel %vm230_vm0, %v7107_v58, 0.0 }
 0x6b7   :  { %v7109_v7 = vpop.eup %7108  ;;  %1032 = vadd.xlane.f32.xlu1 %v1031_v59  ;;  %v6979_v59 = vld [vmem:[%s7603_s28] sm:$0xff]  }
 0x6b8   :  { %v1034_v8 = vsel %vm230_vm0, %v7109_v7, 0.0  ;;  %6468 = vmatprep.subr.bf16.mxu1 %v6979_v59 }
 0x6b9   :  { %v7111_v9 = vpop.eup %7110  ;;  %1035 = vadd.xlane.f32.xlu0 %v1034_v8  ;;  %6469 = vmatpush3.bf16.msra.mxu1 %v6979_v59 }
 0x6ba   :  { %v1037_v10 = vsel %vm230_vm0, %v7111_v9, 0.0 }
 0x6bb   :  { %1038 = vadd.xlane.f32.xlu1 %v1037_v10 }
 0x742   :  { %v1030_v3 = vpop.xlane.xlu0 %1029 }
 0x743   :  { %7112 = vrcp.f32 %v1030_v3 }
 0x744   :  { %v1033_v11 = vpop.xlane.xlu1 %1032 }
 0x745   :  { %7114 = vrcp.f32 %v1033_v11 }
 0x746   :  { %v1036_v12 = vpop.xlane.xlu0 %1035 }
 0x747   :  { %7116 = vrcp.f32 %v1036_v12 }
 0x748   :  { %v1039_v13 = vpop.xlane.xlu1 %1038 }
 0x749   :  { %7118 = vrcp.f32 %v1039_v13 }
 0x74d   :  { %v7113_v14 = vpop.eup %7112 }
 0x74e   :  { %v1044_v16 = vmul.f32 %v7113_v14, %v7105_v56 }
 0x74f   :  { %v7115_v15 = vpop.eup %7114 }
 0x750   :  { %v1045_v17 = vmul.f32 %v7115_v15, %v7107_v58 }
 0x751   :  { %v7117_v18 = vpop.eup %7116 }
 0x752   :  { %v1048_v19 = vpack.c.bf16 %v1045_v17, %v1044_v16  ;;  %v1046_v21 = vmul.f32 %v7117_v18, %v7109_v7  ;;  %v6980_v7 = vld [vmem:[%s7603_s28 + $0x8] sm:$0xff]  }
 0x753   :  { %v7119_v20 = vpop.eup %7118  ;;  %6470 = vmatprep.subr.bf16.mxu1 %v6980_v7 }
 0x754   :  { %v1047_v22 = vmul.f32 %v7119_v20, %v7111_v9  ;;  %6452 = vmatprep.mubr.msk.bf16.mxu0 %vm230_vm0, %v1048_v19  ;;  %6471 = vmatpush3.bf16.msra.mxu1 %v6980_v7  ;;  %v5796_v20 = vld [vmem:[%s7610_s4] ss:$0 sm:$0xff] }
 0x756   :  { %v1049_v23 = vpack.c.bf16 %v1047_v22, %v1046_v21 }
 0x758   :  { %6453 = vmatmul.mubr.msk.bf16.vlgmr.msra.gmra.mrb[16].mxu0 %vm230_vm0, %v1049_v23 }
 0x759   :  { %6457 = vmatpush3.bf16.msra.mxu0 %v6977_v24 }
 0x75a   :  { %6462 = vmatprep.subr.bf16.mxu0 %v6978_v25 }
 0x82b   :  { %v6454_v26 = vpop.f32.mrb[16].mxu0 }
 0x82c   :  { %v1092_v27 = vpop.f32.mrb[17].mxu0 }
 0x82d   :  { %v6455_v28 = vpop.f32.mrb[18].mxu0 }
 0x82e   :  { %v1108_v29 = vpack.c.bf16 %v6455_v28, %v6454_v26  ;;  %v1095_v30 = vpop.f32.mrb[19].mxu0  ;;  %v5797_v26 = vld [vmem:[%s7615_s10] ss:$0 sm:$0xff] }
 0x82f   :  { %v1107_v31 = vpack.c.bf16 %v1095_v30, %v1092_v27 }
 0x831   :  { %6458 = vmatprep.mubr.msk.bf16.mxu0 %vm532_vm1, %v1107_v31 }
 0x832   :  { %6459 = vmatmul.mubr.msk.bf16.vlgmr.msra.gmra.mrb[20].mxu0 %vm532_vm1, %v1108_v29 }
 0x833   :  { %6464 = vmatprep.mubr.msk.bf16.mxu0 %vm532_vm1, %v705_v61  ;;  %6463 = vmatpush3.bf16.msra.mxu0 %v6978_v25 }
 0x83e   :  { %6465 = vmatmul.mubr.msk.bf16.vlgmr.msra.gmra.mrb[20].mxu0 %vm532_vm1, %v706_v4 }
 0x911   :  { %v6466_v32 = vpop.f32.mrb[20].mxu0 }
 0x912   :  { %v1219_v34 = vpop.f32.mrb[21].mxu0  ;;  %v1236_v62 = vadd.f32 %v6466_v32, %v7360_v1 }
 0x913   :  { %v1234_v6 = vadd.f32 %v1219_v34, %v7358_v0  ;;  %v6467_v61 = vpop.f32.mrb[22].mxu0 }
 0x914   :  { %v1222_v35 = vpop.f32.mrb[23].mxu0  ;;  %v1237_v60 = vadd.f32 %v6467_v61, %v7368_v5  ;;  %v7578_v4 = vadd.f32 %v5795_v33, %v1236_v62 }
 0x915   :  { %v7574_v36 = vadd.f32 %v5795_v33, %v1234_v6  ;;  %v1235_v63 = vadd.f32 %v1222_v35, %v7362_v2 }
 0x916   :  { %v7584_v39 = vadd.f32 %v5795_v33, %v1237_v60  ;;  %v1257_v1 = vsel %vm230_vm0, %v7578_v4, 0.0  ;;  %v6981_v60 = vld [vmem:[%s7624_s16] sm:$0xff]  }
 0x917   :  { %v7580_v37 = vadd.f32 %v5795_v33, %v1235_v63  ;;  %v1251_v38 = vsel %vm230_vm0, %v7574_v36, 0.0  ;;  %6476 = vmatprep.subr.bf16.mxu1 %v6981_v60  ;;  %v6982_v63 = vld [vmem:[%s7624_s16 + $0x8] sm:$0xff]  }
 0x918   :  { %1252 = vadd.xlane.f32.xlu0 %v1251_v38  ;;  %v1260_v2 = vsel %vm230_vm0, %v7584_v39, 0.0  ;;  %v6983_v38 = vld [vmem:[%s7624_s16 + $0x10] sm:$0xff]  }
 0x919   :  { %v1254_v0 = vsel %vm230_vm0, %v7580_v37, 0.0 }
 0x91a   :  { %1255 = vadd.xlane.f32.xlu1 %v1254_v0  ;;  %v6984_v0 = vld [vmem:[%s7624_s16 + $0x18] sm:$0xff]  }
 0x91c   :  { %1258 = vadd.xlane.f32.xlu0 %v1257_v1  ;;  %v6985_v1 = vld [vmem:[%s7624_s16 + $0x20] sm:$0xff]  }
 0x91e   :  { %1261 = vadd.xlane.f32.xlu1 %v1260_v2  ;;  %v6986_v2 = vld [vmem:[%s7624_s16 + $0x28] sm:$0xff]  }
 0x9a5   :  { %v1253_v5 = vpop.xlane.xlu0 %1252 }
 0x9a6   :  { %v1263_v40 = vmul.f32 0.03125, %v1253_v5  ;;  %v6987_v5 = vld [vmem:[%s7624_s16 + $0x30] sm:$0xff]  }
 0x9a7   :  { %v1256_v41 = vpop.xlane.xlu1 %1255 }
 0x9a8   :  { %v1267_v42 = vsub.f32 %v7574_v36, %v1263_v40  ;;  %v1264_v43 = vmul.f32 0.03125, %v1256_v41  ;;  %v6988_v40 = vld [vmem:[%s7624_s16 + $0x38] sm:$0xff]   ;;  %v5798_v41 = vld [vmem:[%s7637_s24] ss:$0 sm:$0xff] }
 0x9a9   :  { %v1259_v44 = vpop.xlane.xlu0 %1258 }
 0x9aa   :  { %v1268_v45 = vsub.f32 %v7580_v37, %v1264_v43  ;;  %v1265_v46 = vmul.f32 0.03125, %v1259_v44  ;;  %v1271_v47 = vmul.f32 %v1267_v42, %v1267_v42 }
 0x9ab   :  { %v1262_v48 = vpop.xlane.xlu1 %1261 }
 0x9ac   :  { %v1269_v50 = vsub.f32 %v7578_v4, %v1265_v46  ;;  %v1266_v51 = vmul.f32 0.03125, %v1262_v48  ;;  %v1275_v49 = vsel %vm230_vm0, %v1271_v47, 0.0  ;;  %v1272_v52 = vmul.f32 %v1268_v45, %v1268_v45 }
 0x9ad   :  { %1276 = vadd.xlane.f32.xlu0 %v1275_v49 }
 0x9ae   :  { %v1270_v53 = vsub.f32 %v7584_v39, %v1266_v51  ;;  %v1278_v55 = vsel %vm230_vm0, %v1272_v52, 0.0  ;;  %v1273_v54 = vmul.f32 %v1269_v50, %v1269_v50 }
 0x9af   :  { %1279 = vadd.xlane.f32.xlu1 %v1278_v55 }
 0x9b0   :  { %v1281_v56 = vsel %vm230_vm0, %v1273_v54, 0.0  ;;  %v1274_v57 = vmul.f32 %v1270_v53, %v1270_v53 }
 0x9b1   :  { %1282 = vadd.xlane.f32.xlu0 %v1281_v56 }
 0x9b2   :  { %v1284_v58 = vsel %vm230_vm0, %v1274_v57, 0.0 }
 0x9b3   :  { %1285 = vadd.xlane.f32.xlu1 %v1284_v58 }
 0xa3a   :  { %v1277_v8 = vpop.xlane.xlu0 %1276 }
 0xa3b   :  { %v1287_v9 = vmul.f32 0.03125, %v1277_v8 }
 0xa3c   :  { %v1280_v10 = vpop.xlane.xlu1 %1279 }
 0xa3d   :  { %v1291_v3 = vadd.f32 1e-05, %v1287_v9  ;;  %v1288_v11 = vmul.f32 0.03125, %v1280_v10 }
 0xa3e   :  { %v1283_v12 = vpop.xlane.xlu0 %1282 }
 0xa3f   :  { %7120 = vrsqrt.f32 %v1291_v3  ;;  %v1292_v13 = vadd.f32 1e-05, %v1288_v11  ;;  %v1289_v14 = vmul.f32 0.03125, %v1283_v12 }
 0xa40   :  { %v1286_v15 = vpop.xlane.xlu1 %1285 }
 0xa41   :  { %7122 = vrsqrt.f32 %v1292_v13  ;;  %v1293_v16 = vadd.f32 1e-05, %v1289_v14  ;;  %v1290_v17 = vmul.f32 0.03125, %v1286_v15 }
 0xa43   :  { %7124 = vrsqrt.f32 %v1293_v16  ;;  %v1294_v18 = vadd.f32 1e-05, %v1290_v17 }
 0xa45   :  { %7126 = vrsqrt.f32 %v1294_v18 }
 0xa49   :  { %v7121_v19 = vpop.eup %7120 }
 0xa4a   :  { %v1299_v21 = vmul.f32 %v7121_v19, %v1267_v42 }
 0xa4b   :  { %v7123_v22 = vpop.eup %7122 }
 0xa4c   :  { %v1300_v23 = vmul.f32 %v7123_v22, %v1268_v45  ;;  %v1309_v24 = vmul.f32 %v5796_v20, %v1299_v21 }
 0xa4d   :  { %v7125_v25 = vpop.eup %7124 }
 0xa4e   :  { %v1301_v27 = vmul.f32 %v7125_v25, %v1269_v50  ;;  %v1310_v28 = vmul.f32 %v5796_v20, %v1300_v23  ;;  %v1319_v32 = vadd.f32 %v5797_v26, %v1309_v24  ;;  %v5815_v23 = vld [vmem:[%s7643_s1] ss:$0 sm:$0xff] }
 0xa4f   :  { %v7127_v29 = vpop.eup %7126 }
 0xa50   :  { %v1311_v30 = vmul.f32 %v5796_v20, %v1301_v27  ;;  %v1302_v31 = vmul.f32 %v7127_v29, %v1270_v53  ;;  %v1320_v33 = vadd.f32 %v5797_v26, %v1310_v28 }
 0xa52   :  { %v1312_v34 = vmul.f32 %v5796_v20, %v1302_v31  ;;  %v1323_v62 = vpack.c.bf16 %v1320_v33, %v1319_v32  ;;  %v1321_v6 = vadd.f32 %v5797_v26, %v1311_v30 }
 0xa54   :  { %6472 = vmatprep.mubr.msk.bf16.mxu1 %vm230_vm0, %v1323_v62  ;;  %v1322_v61 = vadd.f32 %v5797_v26, %v1312_v34 }
 0xa56   :  { %v1324_v35 = vpack.c.bf16 %v1322_v61, %v1321_v6 }
 0xa58   :  { %6473 = vmatmul.mubr.msk.bf16.vlgmr.msra.gmra.mrb[20].mxu1 %vm230_vm0, %v1324_v35 }
 0xa59   :  { %6477 = vmatpush3.bf16.msra.mxu1 %v6981_v60 }
 0xa5a   :  { %6478 = vmatprep.subr.bf16.mxu1 %v6982_v63 }
 0xa5d   :  { %6479 = vmatpush3.bf16.msra.mxu1 %v6982_v63 }
 0xa5e   :  { %6480 = vmatprep.subr.bf16.mxu1 %v6983_v38 }
 0xa61   :  { %6481 = vmatpush3.bf16.msra.mxu1 %v6983_v38 }
 0xa62   :  { %6482 = vmatprep.subr.bf16.mxu1 %v6984_v0 }
 0xa65   :  { %6483 = vmatpush3.bf16.msra.mxu1 %v6984_v0 }
 0xa66   :  { %6484 = vmatprep.subr.bf16.mxu1 %v6985_v1 }
 0xa69   :  { %6485 = vmatpush3.bf16.msra.mxu1 %v6985_v1 }
 0xa6a   :  { %6486 = vmatprep.subr.bf16.mxu1 %v6986_v2 }
 0xa6d   :  { %6487 = vmatpush3.bf16.msra.mxu1 %v6986_v2 }
 0xa6e   :  { %6488 = vmatprep.subr.bf16.mxu1 %v6987_v5 }
 0xa71   :  { %6489 = vmatpush3.bf16.msra.mxu1 %v6987_v5 }
 0xa72   :  { %6490 = vmatprep.subr.bf16.mxu1 %v6988_v40 }
 0xa75   :  { %6491 = vmatpush3.bf16.msra.mxu1 %v6988_v40 }
 0xb2b   :  { %v6474_v42 = vpop.f32.mrb[20].mxu1 }
 0xb2c   :  { %v1397_v43 = vadd.f32 %v6474_v42, %v5798_v41  ;;  %v1388_v44 = vpop.f32.mrb[21].mxu1 }
 0xb2d   :  { %v1389_v45 = vadd.f32 %v5798_v41, %v1388_v44  ;;  %v6475_v46 = vpop.f32.mrb[22].mxu1 }
 0xb2e   :  { %v5805_v47 = vmul.f32 -1.702, %v1397_v43  ;;  %v1400_v48 = vadd.f32 %v6475_v46, %v5798_v41  ;;  %v1391_v50 = vpop.f32.mrb[23].mxu1 }
 0xb2f   :  { %v5803_v51 = vmul.f32 -1.702, %v1389_v45  ;;  %v1392_v49 = vadd.f32 %v5798_v41, %v1391_v50  ;;  %v6989_v50 = vld [vmem:[%s7393_s9 + $0x20] sm:$0xff]  }
 0xb30   :  { %v1415_v52 = vmul.f32 1.442695, %v5805_v47  ;;  %v5806_v53 = vmul.f32 -1.702, %v1400_v48  ;;  %6496 = vmatprep.subr.bf16.mxu0 %v6989_v50 }
 0xb31   :  { %v1411_v55 = vmul.f32 1.442695, %v5803_v51  ;;  %v5804_v54 = vmul.f32 -1.702, %v1392_v49  ;;  %6497 = vmatpush3.bf16.msra.mxu0 %v6989_v50  ;;  %v6990_v51 = vld [vmem:[%s7393_s9 + $0x28] sm:$0xff]  }
 0xb32   :  { %7128 = vpow2.f32 %v1415_v52  ;;  %v1417_v56 = vmul.f32 1.442695, %v5806_v53  ;;  %6498 = vmatprep.subr.bf16.mxu0 %v6990_v51 }
 0xb33   :  { %7130 = vpow2.f32 %v1411_v55  ;;  %v1413_v57 = vmul.f32 1.442695, %v5804_v54 }
 0xb34   :  { %7132 = vpow2.f32 %v1417_v56 }
 0xb35   :  { %7134 = vpow2.f32 %v1413_v57  ;;  %6499 = vmatpush3.bf16.msra.mxu0 %v6990_v51  ;;  %v5845_v51 = vld [vmem:[%s7449_s3 + $0x2] ss:$0 sm:$0xff] }
 0xb3c   :  { %v7129_v58 = vpop.eup %7128 }
 0xb3d   :  { %v7131_v59 = vpop.eup %7130  ;;  %v1421_v7 = vadd.f32 1.0, %v7129_v58 }
 0xb3e   :  { %v7133_v8 = vpop.eup %7132  ;;  %v1419_v9 = vadd.f32 1.0, %v7131_v59 }
 0xb3f   :  { %v7135_v10 = vpop.eup %7134  ;;  %7136 = vrcp.f32 %v1421_v7  ;;  %v1422_v3 = vadd.f32 1.0, %v7133_v8 }
 0xb40   :  { %7138 = vrcp.f32 %v1419_v9  ;;  %v1420_v11 = vadd.f32 1.0, %v7135_v10 }
 0xb41   :  { %7140 = vrcp.f32 %v1422_v3 }
 0xb42   :  { %7142 = vrcp.f32 %v1420_v11  ;;  %v5818_v11 = vld [vmem:[%s7413_s21 + $0x1] ss:$0 sm:$0xff] }
 0xb49   :  { %v7137_v12 = vpop.eup %7136 }
 0xb4a   :  { %v7139_v13 = vpop.eup %7138  ;;  %v1433_v16 = vmul.f32 %v7137_v12, %v1397_v43 }
 0xb4b   :  { %v7141_v14 = vpop.eup %7140  ;;  %v1431_v18 = vmul.f32 %v7139_v13, %v1389_v45 }
 0xb4c   :  { %v7143_v15 = vpop.eup %7142  ;;  %v1434_v17 = vmul.f32 %v7141_v14, %v1400_v48 }
 0xb4d   :  { %v1432_v19 = vmul.f32 %v7143_v15, %v1392_v49  ;;  %v6991_v49 = vld [vmem:[%s7405_s17 + $0x20] sm:$0xff]  }
 0xb4e   :  { %v1436_v20 = vpack.c.bf16 %v1434_v17, %v1433_v16  ;;  %6504 = vmatprep.subr.bf16.mxu0 %v6991_v49  ;;  %v5819_v17 = vld [vmem:[%s7418_s25 + $0x1] ss:$0 sm:$0xff]  ;;  %s7315_s25 = smov 18  }
 0xb4f   :  { %v1435_v21 = vpack.c.bf16 %v1432_v19, %v1431_v18 }
 0xb51   :  { %6492 = vmatprep.mubr.bf16.mxu1 %v1435_v21 }
 0xb52   :  { %6493 = vmatmul.mubr.bf16.vlgmr.msra.gmra.mrb[24].mxu1 %v1436_v20 }
 0xc25   :  { %v6494_v22 = vpop.f32.mrb[24].mxu1 }
 0xc26   :  { %v1535_v24 = vpop.f32.mrb[25].mxu1  ;;  %v1552_v25 = vadd.f32 %v6494_v22, %v7578_v4 }
 0xc27   :  { %v1550_v26 = vadd.f32 %v1535_v24, %v7574_v36  ;;  %v6495_v27 = vpop.f32.mrb[26].mxu1 }
 0xc28   :  { %v1538_v28 = vpop.f32.mrb[27].mxu1  ;;  %v1553_v30 = vadd.f32 %v6495_v27, %v7584_v39  ;;  %v7652_v32 = vadd.f32 %v5815_v23, %v1552_v25 }
 0xc29   :  { %v7648_v29 = vadd.f32 %v5815_v23, %v1550_v26  ;;  %v1551_v31 = vadd.f32 %v1538_v28, %v7580_v37 }
 0xc2a   :  { %v7658_v62 = vadd.f32 %v5815_v23, %v1553_v30  ;;  %v1575_v4 = vsel %vm230_vm0, %v7652_v32, 0.0 }
 0xc2b   :  { %v7654_v33 = vadd.f32 %v5815_v23, %v1551_v31  ;;  %v1569_v34 = vsel %vm230_vm0, %v7648_v29, 0.0  ;;  %v6992_v31 = vld [vmem:[%s7405_s17 + $0x28] sm:$0xff]  }
 0xc2c   :  { %1570 = vadd.xlane.f32.xlu0 %v1569_v34  ;;  %v1578_v37 = vsel %vm230_vm0, %v7658_v62, 0.0  ;;  %v6993_v34 = vld [vmem:[%s7398_s13 + $0x20] sm:$0xff]  }
 0xc2d   :  { %v1572_v36 = vsel %vm230_vm0, %v7654_v33, 0.0 }
 0xc2e   :  { %1573 = vadd.xlane.f32.xlu1 %v1572_v36  ;;  %v6994_v36 = vld [vmem:[%s7398_s13 + $0x28] sm:$0xff]  }
 0xc30   :  { %1576 = vadd.xlane.f32.xlu0 %v1575_v4 }
 0xc32   :  { %1579 = vadd.xlane.f32.xlu1 %v1578_v37  ;;  %v5825_v37 = vld [vmem:[%s7444_s29 + $0x2] ss:$0 sm:$0xff] }
 0xcb9   :  { %v1571_v39 = vpop.xlane.xlu0 %1570 }
 0xcba   :  { %v1581_v6 = vmul.f32 0.03125, %v1571_v39 }
 0xcbb   :  { %v1574_v61 = vpop.xlane.xlu1 %1573 }
 0xcbc   :  { %v1585_v35 = vsub.f32 %v7648_v29, %v1581_v6  ;;  %v1582_v60 = vmul.f32 0.03125, %v1574_v61 }
 0xcbd   :  { %v1577_v63 = vpop.xlane.xlu0 %1576 }
 0xcbe   :  { %v1586_v38 = vsub.f32 %v7654_v33, %v1582_v60  ;;  %v1583_v0 = vmul.f32 0.03125, %v1577_v63  ;;  %v1589_v1 = vmul.f32 %v1585_v35, %v1585_v35 }
 0xcbf   :  { %v1580_v2 = vpop.xlane.xlu1 %1579 }
 0xcc0   :  { %v1587_v5 = vsub.f32 %v7652_v32, %v1583_v0  ;;  %v1584_v40 = vmul.f32 0.03125, %v1580_v2  ;;  %v1593_v41 = vsel %vm230_vm0, %v1589_v1, 0.0  ;;  %v1590_v42 = vmul.f32 %v1586_v38, %v1586_v38 }
 0xcc1   :  { %1594 = vadd.xlane.f32.xlu0 %v1593_v41 }
 0xcc2   :  { %v1588_v43 = vsub.f32 %v7658_v62, %v1584_v40  ;;  %v1596_v44 = vsel %vm230_vm0, %v1590_v42, 0.0  ;;  %v1591_v45 = vmul.f32 %v1587_v5, %v1587_v5 }
 0xcc3   :  { %1597 = vadd.xlane.f32.xlu1 %v1596_v44 }
 0xcc4   :  { %v1599_v46 = vsel %vm230_vm0, %v1591_v45, 0.0  ;;  %v1592_v47 = vmul.f32 %v1588_v43, %v1588_v43 }
 0xcc5   :  { %1600 = vadd.xlane.f32.xlu0 %v1599_v46 }
 0xcc6   :  { %v1602_v48 = vsel %vm230_vm0, %v1592_v47, 0.0 }
 0xcc7   :  { %1603 = vadd.xlane.f32.xlu1 %v1602_v48 }
 0xd4e   :  { %v1595_v52 = vpop.xlane.xlu0 %1594 }
 0xd4f   :  { %v1605_v53 = vmul.f32 0.03125, %v1595_v52 }
 0xd50   :  { %v1598_v55 = vpop.xlane.xlu1 %1597 }
 0xd51   :  { %v1609_v54 = vadd.f32 1e-05, %v1605_v53  ;;  %v1606_v56 = vmul.f32 0.03125, %v1598_v55 }
 0xd52   :  { %v1601_v57 = vpop.xlane.xlu0 %1600 }
 0xd53   :  { %7144 = vrsqrt.f32 %v1609_v54  ;;  %v1610_v58 = vadd.f32 1e-05, %v1606_v56  ;;  %v1607_v59 = vmul.f32 0.03125, %v1601_v57 }
 0xd54   :  { %v1604_v7 = vpop.xlane.xlu1 %1603 }
 0xd55   :  { %7146 = vrsqrt.f32 %v1610_v58  ;;  %v1611_v8 = vadd.f32 1e-05, %v1607_v59  ;;  %v1608_v9 = vmul.f32 0.03125, %v1604_v7 }
 0xd57   :  { %7148 = vrsqrt.f32 %v1611_v8  ;;  %v1612_v10 = vadd.f32 1e-05, %v1608_v9  ;;  %v6995_v8 = vld [vmem:[%s7405_s17 + $0x30] sm:$0xff]  }
 0xd59   :  { %7150 = vrsqrt.f32 %v1612_v10  ;;  %v6996_v10 = vld [vmem:[%s7405_s17 + $0x38] sm:$0xff]   ;;  %s7323_s17 = smov 26  }
 0xd5d   :  { %v7145_v3 = vpop.eup %7144 }
 0xd5e   :  { %v1617_v12 = vmul.f32 %v7145_v3, %v1585_v35 }
 0xd5f   :  { %v7147_v13 = vpop.eup %7146 }
 0xd60   :  { %v1627_v14 = vmul.f32 %v5818_v11, %v1617_v12  ;;  %v1618_v15 = vmul.f32 %v7147_v13, %v1586_v38 }
 0xd61   :  { %v7149_v16 = vpop.eup %7148 }
 0xd62   :  { %v1628_v18 = vmul.f32 %v5818_v11, %v1618_v15  ;;  %v1619_v19 = vmul.f32 %v7149_v16, %v1587_v5  ;;  %v1637_v21 = vadd.f32 %v5819_v17, %v1627_v14  ;;  %v5835_v5 = vld [vmem:[%s7456_s7 + $0x2] ss:$0 sm:$0xff] }
 0xd63   :  { %v7151_v20 = vpop.eup %7150 }
 0xd64   :  { %v1638_v22 = vadd.f32 %v5819_v17, %v1628_v18  ;;  %v1629_v23 = vmul.f32 %v5818_v11, %v1619_v19  ;;  %v1620_v24 = vmul.f32 %v7151_v20, %v1588_v43  ;;  %v7714_v18 = vld [vmem:[%s7474_s12] sm:$0xff] }
 0xd66   :  { %v1630_v25 = vmul.f32 %v5818_v11, %v1620_v24  ;;  %v7679_v26 = vpack.c.bf16 %v1638_v22, %v1637_v21  ;;  %v1639_v27 = vadd.f32 %v5819_v17, %v1629_v23  ;;  %v7719_v21 = vld [vmem:[%s7474_s12 + $0x8] sm:$0xff]  ;;  %v7723_v23 = vld [vmem:[%s7474_s12 + $0x10] sm:$0xff] }
 0xd68   :  { %v1640_v28 = vadd.f32 %v5819_v17, %v1630_v25  ;;  %6500 = vmatprep.mubr.msk.bf16.mxu0 %vm230_vm0, %v7679_v26 }
 0xd6a   :  { %v7683_v30 = vpack.c.bf16 %v1640_v28, %v1639_v27  ;;  %v5871_v27 = vld [vmem:[%s7456_s7 + $0x3] ss:$0 sm:$0xff]  ;;  %s5697_s7 = sld [smem:[%s8378_s0 + %s7315_s25]]   ;;  %s7331_s25 = smov 35  }
 0xd6c   :  { %6501 = vmatmul.mubr.msk.bf16.vlgmr.msra.gmra.mrb[24].mxu0 %vm230_vm0, %v7683_v30 }
 0xd6d   :  { %6505 = vmatpush3.bf16.msra.mxu0 %v6991_v49  ;;  %6508 = vmatprep.mubr.msk.bf16.mxu0 %vm230_vm0, %v7679_v26 }
 0xd6e   :  { %6506 = vmatprep.subr.bf16.mxu0 %v6992_v31 }
 0xd71   :  { %6507 = vmatpush3.bf16.msra.mxu0 %v6992_v31  ;;  %v7729_v31 = vld [vmem:[%s7474_s12 + $0x18] sm:$0xff]  ;;  %s7316_s12 = smov 19  }
 0xd72   :  { %6512 = vmatprep.subr.bf16.mxu0 %v6993_v34 }
 0xd74   :  { %6509 = vmatmul.mubr.msk.bf16.vlgmr.msra.gmra.mrb[28].mxu0 %vm230_vm0, %v7683_v30 }
 0xd75   :  { %6513 = vmatpush3.bf16.msra.mxu0 %v6993_v34  ;;  %6516 = vmatprep.mubr.msk.bf16.mxu0 %vm230_vm0, %v7679_v26 }
 0xd76   :  { %6514 = vmatprep.subr.bf16.mxu0 %v6994_v36 }
 0xd79   :  { %6515 = vmatpush3.bf16.msra.mxu0 %v6994_v36 }
 0xd7c   :  { %6517 = vmatmul.mubr.msk.bf16.vlgmr.msra.gmra.mrb[32].mxu0 %vm230_vm0, %v7683_v30 }
 0xe3f   :  { %v6502_v4 = vpop.f32.mrb[24].mxu0 }
 0xe40   :  { %v1708_v39 = vpop.f32.mrb[25].mxu0  ;;  %v1717_v61 = vadd.f32 %v6502_v4, %v5825_v37 }
 0xe41   :  { %v6503_v6 = vpop.f32.mrb[26].mxu0  ;;  %v1709_v63 = vadd.f32 %v5825_v37, %v1708_v39 }
 0xe42   :  { %v1720_v35 = vadd.f32 %v6503_v6, %v5825_v37  ;;  %v1711_v60 = vpop.f32.mrb[27].mxu0 }
 0xe43   :  { %v1712_v38 = vadd.f32 %v5825_v37, %v1711_v60 }
 0xe44   :  { %v1872_v0 = vpack.c.bf16 %v1720_v35, %v1717_v61 }
 0xe45   :  { %v1871_v1 = vpack.c.bf16 %v1712_v38, %v1709_v63 }
 0xe47   :  { %v6510_v2 = vpop.f32.mrb[28].mxu0  ;;  %6524 = vmatprep.mubr.msk.bf16.mxu0 %vm532_vm1, %v1871_v1 }
 0xe48   :  { %v1782_v40 = vpop.f32.mrb[29].mxu0  ;;  %v1791_v42 = vadd.f32 %v6510_v2, %v5835_v5 }
 0xe49   :  { %v6511_v41 = vpop.f32.mrb[30].mxu0  ;;  %v1783_v45 = vadd.f32 %v5835_v5, %v1782_v40 }
 0xe4a   :  { %v1794_v43 = vadd.f32 %v6511_v41, %v5835_v5  ;;  %v1785_v44 = vpop.f32.mrb[31].mxu0 }
 0xe4b   :  { %v1786_v46 = vadd.f32 %v5835_v5, %v1785_v44 }
 0xe4c   :  { %v1874_v47 = vpack.c.bf16 %v1794_v43, %v1791_v42 }
 0xe4d   :  { %v1873_v48 = vpack.c.bf16 %v1786_v46, %v1783_v45 }
 0xe4e   :  { %v1885_v9 = vsel %vm532_vm1, %v1874_v47, 0 }
 0xe4f   :  { %v6518_v50 = vpop.f32.mrb[32].mxu0  ;;  %6905 = vmatprep.subr.msk.bf16.mxu0 %vm532_vm1, %v1873_v48  ;;  %v1882_v49 = vsel %vm532_vm1, %v1873_v48, 0 }
 0xe50   :  { %v1856_v52 = vpop.f32.mrb[33].mxu0  ;;  %6521 = vmatpush3.bf16.xpose.msra.mxu0 %v1882_v49  ;;  %v1865_v55 = vadd.f32 %v6518_v50, %v5845_v51 }
 0xe51   :  { %v6519_v53 = vpop.f32.mrb[34].mxu0  ;;  %6906 = vmatprep.subr.msk.bf16.mxu0 %vm532_vm1, %v1874_v47  ;;  %v1857_v57 = vadd.f32 %v5845_v51, %v1856_v52 }
 0xe52   :  { %v1868_v54 = vadd.f32 %v6519_v53, %v5845_v51  ;;  %v1859_v56 = vpop.f32.mrb[35].mxu0 }
 0xe53   :  { %v1860_v58 = vadd.f32 %v5845_v51, %v1859_v56 }
 0xe54   :  { %v1991_v59 = vpack.c.bf16 %v1868_v54, %v1865_v55 }
 0xe55   :  { %v1990_v7 = vpack.c.bf16 %v1860_v58, %v1857_v57 }
 0xe57   :  { %6528 = vmatprep.subr.bf16.mxu1 %v1990_v7 }
 0xe58   :  { %6523 = vmatpush3.bf16.xpose.msra.mxu0 %v1885_v9  ;;  %6529 = vmatpush3.bf16.msra.mxu1 %v1990_v7 }
 0xe59   :  { %6530 = vmatprep.subr.bf16.mxu1 %v1991_v59  ;;  %6544 = vmatprep.subr.bf16.mxu0 %v6995_v8 }
 0xe5c   :  { %6531 = vmatpush3.bf16.msra.mxu1 %v1991_v59  ;;  %v6997_v59 = vld [vmem:[%s7393_s9 + $0x30] sm:$0xff]  }
 0xe5d   :  { %6536 = vmatprep.subr.bf16.mxu1 %v6997_v59 }
 0xe5f   :  { %6525 = vmatmul.mubr.msk.bf16.vlgmr.msra.gmra.mrb[36].mxu0 %vm532_vm1, %v1872_v0 }
 0xe60   :  { %6545 = vmatpush3.bf16.msra.mxu0 %v6995_v8  ;;  %6548 = vmatprep.mubr.msk.bf16.mxu0 %vm230_vm0, %v7679_v26 }
 0xe61   :  { %6546 = vmatprep.subr.bf16.mxu0 %v6996_v10 }
 0xe64   :  { %6547 = vmatpush3.bf16.msra.mxu0 %v6996_v10 }
 0xe67   :  { %6549 = vmatmul.mubr.msk.bf16.vlgmr.msra.gmra.mrb[40].mxu0 %vm230_vm0, %v7683_v30 }
 0xf32   :  { %v6526_v3 = vpop.f32.mrb[36].mxu0 }
 0xf33   :  { %v1921_v11 = vpop.f32.mrb[37].mxu0  ;;  %v1938_v12 = vmul.f32 0.25, %v6526_v3 }
 0xf34   :  { %v1936_v13 = vmul.f32 0.25, %v1921_v11  ;;  %v6527_v14 = vpop.f32.mrb[38].mxu0 }
 0xf35   :  { %v1924_v15 = vpop.f32.mrb[39].mxu0  ;;  %v1939_v16 = vmul.f32 0.25, %v6527_v14  ;;  %v1942_v24 = vadd.f32 %v7723_v23, %v1938_v12 }
 0xf36   :  { %v1937_v17 = vmul.f32 0.25, %v1924_v15  ;;  %v1940_v19 = vadd.f32 %v7714_v18, %v1936_v13 }
 0xf37   :  { %v1943_v34 = vadd.f32 %v7729_v31, %v1939_v16  ;;  %v1950_v37 = vsel %vm230_vm0, %v1942_v24, -inf }
 0xf38   :  { %v1944_v20 = vsel %vm230_vm0, %v1940_v19, -inf  ;;  %v1941_v22 = vadd.f32 %v7719_v21, %v1937_v17 }
 0xf39   :  { %1945 = vmax.xlane.f32.xlu0 %v1944_v20  ;;  %v1953_v63 = vsel %vm230_vm0, %v1943_v34, -inf }
 0xf3a   :  { %v6550_v25 = vpop.f32.mrb[40].mxu0  ;;  %v1947_v28 = vsel %vm230_vm0, %v1941_v22, -inf }
 0xf3b   :  { %v2185_v36 = vpop.f32.mrb[41].mxu0  ;;  %1948 = vmax.xlane.f32.xlu1 %v1947_v28  ;;  %v2194_v39 = vadd.f32 %v6550_v25, %v5871_v27  ;;  %v7000_v25 = vld [vmem:[%s7398_s13 + $0x38] sm:$0xff]  }
 0xf3c   :  { %v6551_v4 = vpop.f32.mrb[42].mxu0  ;;  %v2186_v35 = vadd.f32 %v5871_v27, %v2185_v36 }
 0xf3d   :  { %v2197_v6 = vadd.f32 %v6551_v4, %v5871_v27  ;;  %1951 = vmax.xlane.f32.xlu0 %v1950_v37  ;;  %v2188_v61 = vpop.f32.mrb[43].mxu0 }
 0xf3e   :  { %v2189_v60 = vadd.f32 %v5871_v27, %v2188_v61 }
 0xf3f   :  { %v2277_v38 = vpack.c.bf16 %v2197_v6, %v2194_v39  ;;  %1954 = vmax.xlane.f32.xlu1 %v1953_v63  ;;  %v5861_v39 = vld [vmem:[%s7444_s29 + $0x3] ss:$0 sm:$0xff]  ;;  %s5705_s29 = sld [smem:[%s8378_s0 + %s7323_s17]]   ;;  %s7344_s17 = smov 44  }
 0xf40   :  { %v2276_v0 = vpack.c.bf16 %v2189_v60, %v2186_v35 }
 0xf41   :  { %v2288_v2 = vsel %vm532_vm1, %v2277_v38, 0 }
 0xf42   :  { %6907 = vmatprep.subr.msk.bf16.mxu0 %vm532_vm1, %v2276_v0  ;;  %v2285_v1 = vsel %vm532_vm1, %v2276_v0, 0 }
 0xf43   :  { %6561 = vmatpush3.bf16.xpose.msra.mxu0 %v2285_v1 }
 0xf44   :  { %6908 = vmatprep.subr.msk.bf16.mxu0 %vm532_vm1, %v2277_v38 }
 0xf4b   :  { %6563 = vmatpush3.bf16.xpose.msra.mxu0 %v2288_v2 }
 0xfc6   :  { %v1946_v5 = vpop.xlane.xlu0 %1945 }
 0xfc7   :  { %v1956_v40 = vsub.f32 %v1940_v19, %v1946_v5  ;;  %v5881_v5 = vld [vmem:[%s7449_s3 + $0x3] ss:$0 sm:$0xff]  ;;  %s7324_s3 = smov 30  }
 0xfc8   :  { %v1949_v41 = vpop.xlane.xlu1 %1948 }
 0xfc9   :  { %v1960_v42 = vmul.f32 1.442695, %v1956_v40  ;;  %v1957_v43 = vsub.f32 %v1941_v22, %v1949_v41  ;;  %v6998_v22 = vld [vmem:[%s7393_s9 + $0x38] sm:$0xff]   ;;  %s7314_s9 = smov 21  }
 0xfca   :  { %v1952_v44 = vpop.xlane.xlu0 %1951  ;;  %s7864_s21 = sld [smem:[%s8378_s0 + %s7314_s9]]   ;;  %s7330_s9 = smov 33  }
 0xfcb   :  { %7152 = vpow2.f32 %v1960_v42  ;;  %v1962_v45 = vmul.f32 1.442695, %v1957_v43  ;;  %v1958_v46 = vsub.f32 %v1942_v24, %v1952_v44  ;;  %v6999_v24 = vld [vmem:[%s7398_s13 + $0x30] sm:$0xff]   ;;  %s5704_s13 = sld [smem:[%s8378_s0 + %s7322_s30]]  }
 0xfcc   :  { %v1955_v47 = vpop.xlane.xlu1 %1954  ;;  %s8120_s30 = sld [smem:[%s8378_s0 + %s7335_s22]]   ;;  %s7340_s22 = smov 43  }
 0xfcd   :  { %7154 = vpow2.f32 %v1962_v45  ;;  %v1964_v48 = vmul.f32 1.442695, %v1958_v46  ;;  %v1959_v50 = vsub.f32 %v1943_v34, %v1955_v47 }
 0xfcf   :  { %7156 = vpow2.f32 %v1964_v48  ;;  %v1966_v51 = vmul.f32 1.442695, %v1959_v50 }
 0xfd1   :  { %7158 = vpow2.f32 %v1966_v51 }
 0xfd5   :  { %v7153_v49 = vpop.eup %7152 }
 0xfd6   :  { %v1968_v52 = vsel %vm230_vm0, %v7153_v49, 0.0 }
 0xfd7   :  { %v7155_v53 = vpop.eup %7154  ;;  %1969 = vadd.xlane.f32.xlu0 %v1968_v52 }
 0xfd8   :  { %v1971_v55 = vsel %vm230_vm0, %v7155_v53, 0.0 }
 0xfd9   :  { %v7157_v54 = vpop.eup %7156  ;;  %1972 = vadd.xlane.f32.xlu1 %v1971_v55 }
 0xfda   :  { %v1974_v56 = vsel %vm230_vm0, %v7157_v54, 0.0 }
 0xfdb   :  { %v7159_v57 = vpop.eup %7158  ;;  %1975 = vadd.xlane.f32.xlu0 %v1974_v56 }
 0xfdc   :  { %v1977_v58 = vsel %vm230_vm0, %v7159_v57, 0.0 }
 0xfdd   :  { %1978 = vadd.xlane.f32.xlu1 %v1977_v58 }
0x1064   :  { %v1970_v7 = vpop.xlane.xlu0 %1969 }
0x1065   :  { %7160 = vrcp.f32 %v1970_v7 }
0x1066   :  { %v1973_v8 = vpop.xlane.xlu1 %1972 }
0x1067   :  { %7162 = vrcp.f32 %v1973_v8 }
0x1068   :  { %v1976_v9 = vpop.xlane.xlu0 %1975 }
0x1069   :  { %7164 = vrcp.f32 %v1976_v9 }
0x106a   :  { %v1979_v10 = vpop.xlane.xlu1 %1978 }
0x106b   :  { %7166 = vrcp.f32 %v1979_v10 }
0x106f   :  { %v7161_v3 = vpop.eup %7160 }
0x1070   :  { %v1984_v12 = vmul.f32 %v7161_v3, %v7153_v49 }
0x1071   :  { %v7163_v11 = vpop.eup %7162 }
0x1072   :  { %v1985_v13 = vmul.f32 %v7163_v11, %v7155_v53 }
0x1073   :  { %v7165_v14 = vpop.eup %7164 }
0x1074   :  { %v1988_v15 = vpack.c.bf16 %v1985_v13, %v1984_v12  ;;  %v1986_v17 = vmul.f32 %v7165_v14, %v7157_v54 }
0x1075   :  { %v7167_v16 = vpop.eup %7166 }
0x1076   :  { %v1987_v19 = vmul.f32 %v7167_v16, %v7159_v57  ;;  %6532 = vmatprep.mubr.msk.bf16.mxu1 %vm230_vm0, %v1988_v15 }
0x1078   :  { %v1989_v20 = vpack.c.bf16 %v1987_v19, %v1986_v17 }
0x107a   :  { %6533 = vmatmul.mubr.msk.bf16.vlgmr.msra.gmra.mrb[28].mxu1 %vm230_vm0, %v1989_v20 }
0x107b   :  { %6537 = vmatpush3.bf16.msra.mxu1 %v6997_v59  ;;  %6540 = vmatprep.mubr.msk.bf16.mxu1 %vm230_vm0, %v7679_v26 }
0x107c   :  { %6538 = vmatprep.subr.bf16.mxu1 %v6998_v22 }
0x107f   :  { %6539 = vmatpush3.bf16.msra.mxu1 %v6998_v22 }
0x1080   :  { %6552 = vmatprep.subr.bf16.mxu1 %v6999_v24 }
0x1082   :  { %6541 = vmatmul.mubr.msk.bf16.vlgmr.msra.gmra.mrb[32].mxu1 %vm230_vm0, %v7683_v30 }
0x1083   :  { %6553 = vmatpush3.bf16.msra.mxu1 %v6999_v24  ;;  %6556 = vmatprep.mubr.msk.bf16.mxu1 %vm230_vm0, %v7679_v26 }
0x1084   :  { %6554 = vmatprep.subr.bf16.mxu1 %v7000_v25 }
0x1087   :  { %6555 = vmatpush3.bf16.msra.mxu1 %v7000_v25 }
0x108a   :  { %6557 = vmatmul.mubr.msk.bf16.vlgmr.msra.gmra.mrb[36].mxu1 %vm230_vm0, %v7683_v30 }
0x114d   :  { %v7756_v27 = vpop.f32.mrb[28].mxu1 }
0x114e   :  { %v7758_v28 = vpop.f32.mrb[29].mxu1 }
0x114f   :  { %v7760_v34 = vpop.f32.mrb[30].mxu1 }
0x1150   :  { %v2048_v36 = vpack.c.bf16 %v7760_v34, %v7756_v27  ;;  %v7764_v4 = vpop.f32.mrb[31].mxu1 }
0x1151   :  { %v2047_v26 = vpack.c.bf16 %v7764_v4, %v7758_v28 }
0x1155   :  { %v6542_v37 = vpop.f32.mrb[32].mxu1 }
0x1156   :  { %v2111_v6 = vpop.f32.mrb[33].mxu1  ;;  %v2120_v30 = vadd.f32 %v6542_v37, %v5861_v39 }
0x1157   :  { %v6543_v61 = vpop.f32.mrb[34].mxu1  ;;  %v2112_v63 = vadd.f32 %v5861_v39, %v2111_v6 }
0x1158   :  { %v2123_v35 = vadd.f32 %v6543_v61, %v5861_v39  ;;  %v2114_v60 = vpop.f32.mrb[35].mxu1 }
0x1159   :  { %v2115_v38 = vadd.f32 %v5861_v39, %v2114_v60 }
0x115a   :  { %v2275_v0 = vpack.c.bf16 %v2123_v35, %v2120_v30 }
0x115b   :  { %v2274_v1 = vpack.c.bf16 %v2115_v38, %v2112_v63 }
0x115d   :  { %v6558_v2 = vpop.f32.mrb[36].mxu1  ;;  %6564 = vmatprep.mubr.msk.bf16.mxu0 %vm532_vm1, %v2274_v1 }
0x115e   :  { %v2259_v40 = vpop.f32.mrb[37].mxu1  ;;  %6565 = vmatmul.mubr.msk.bf16.vlgmr.msra.gmra.mrb[44].mxu0 %vm532_vm1, %v2275_v0  ;;  %v2268_v42 = vadd.f32 %v6558_v2, %v5881_v5 }
0x115f   :  { %v6559_v41 = vpop.f32.mrb[38].mxu1  ;;  %v2260_v45 = vadd.f32 %v5881_v5, %v2259_v40 }
0x1160   :  { %v2271_v43 = vadd.f32 %v6559_v41, %v5881_v5  ;;  %v2262_v44 = vpop.f32.mrb[39].mxu1 }
0x1161   :  { %v2263_v46 = vadd.f32 %v5881_v5, %v2262_v44 }
0x1162   :  { %v2394_v47 = vpack.c.bf16 %v2271_v43, %v2268_v42 }
0x1163   :  { %v2393_v48 = vpack.c.bf16 %v2263_v46, %v2260_v45  ;;  %v7001_v45 = vld [vmem:[%s7552_s18 + $0x18] sm:$0xff]   ;;  %v7002_v46 = vld [vmem:[%s7552_s18 + $0x10] sm:$0xff]   ;;  %s7941_s18 = sld [smem:[%s8378_s0 + %s7324_s3]]  }
0x1164   :  { %s5723_s3 = sld [smem:[%s8378_s0 + %s7344_s17]]  }
0x1165   :  { %6568 = vmatprep.subr.bf16.mxu1 %v2393_v48 }
0x1166   :  { %6569 = vmatpush3.bf16.msra.mxu1 %v2393_v48 }
0x1167   :  { %6570 = vmatprep.subr.bf16.mxu1 %v2394_v47 }
0x116a   :  { %6571 = vmatpush3.bf16.msra.mxu1 %v2394_v47 }
0x116b   :  { %6576 = vmatprep.subr.bf16.mxu1 %v7001_v45 }
0x1231   :  { %v6566_v50 = vpop.f32.mrb[44].mxu0 }
0x1232   :  { %v2324_v51 = vpop.f32.mrb[45].mxu0  ;;  %v2341_v49 = vmul.f32 0.25, %v6566_v50 }
0x1233   :  { %v2339_v52 = vmul.f32 0.25, %v2324_v51  ;;  %v6567_v53 = vpop.f32.mrb[46].mxu0 }
0x1234   :  { %v2327_v55 = vpop.f32.mrb[47].mxu0  ;;  %v2342_v54 = vmul.f32 0.25, %v6567_v53  ;;  %v2345_v7 = vadd.f32 %v7723_v23, %v2341_v49 }
0x1235   :  { %v2340_v56 = vmul.f32 0.25, %v2327_v55  ;;  %v2343_v57 = vadd.f32 %v7714_v18, %v2339_v52  ;;  %v5899_v55 = vld [vmem:[%s7569_s23 + $0x1] ss:$0 sm:$0xff]  ;;  %s7325_s23 = smov 32  }
0x1236   :  { %v2346_v9 = vadd.f32 %v7729_v31, %v2342_v54  ;;  %v2353_v10 = vsel %vm230_vm0, %v2345_v7, -inf }
0x1237   :  { %v2347_v58 = vsel %vm230_vm0, %v2343_v57, -inf  ;;  %v2344_v59 = vadd.f32 %v7719_v21, %v2340_v56 }
0x1238   :  { %2348 = vmax.xlane.f32.xlu0 %v2347_v58  ;;  %v2356_v3 = vsel %vm230_vm0, %v2346_v9, -inf }
0x1239   :  { %v2350_v8 = vsel %vm230_vm0, %v2344_v59, -inf }
0x123a   :  { %2351 = vmax.xlane.f32.xlu1 %v2350_v8 }
0x123c   :  { %2354 = vmax.xlane.f32.xlu0 %v2353_v10 }
0x123e   :  { %2357 = vmax.xlane.f32.xlu1 %v2356_v3 }
0x12c5   :  { %v2349_v11 = vpop.xlane.xlu0 %2348 }
0x12c6   :  { %v2359_v18 = vsub.f32 %v2343_v57, %v2349_v11 }
0x12c7   :  { %v2352_v12 = vpop.xlane.xlu1 %2351 }
0x12c8   :  { %v2363_v13 = vmul.f32 1.442695, %v2359_v18  ;;  %v2360_v14 = vsub.f32 %v2344_v59, %v2352_v12 }
0x12c9   :  { %v2355_v21 = vpop.xlane.xlu0 %2354 }
0x12ca   :  { %7168 = vpow2.f32 %v2363_v13  ;;  %v2365_v23 = vmul.f32 1.442695, %v2360_v14  ;;  %v2361_v15 = vsub.f32 %v2345_v7, %v2355_v21 }
0x12cb   :  { %v2358_v16 = vpop.xlane.xlu1 %2357 }
0x12cc   :  { %7170 = vpow2.f32 %v2365_v23  ;;  %v2367_v17 = vmul.f32 1.442695, %v2361_v15  ;;  %v2362_v31 = vsub.f32 %v2346_v9, %v2358_v16 }
0x12ce   :  { %7172 = vpow2.f32 %v2367_v17  ;;  %v2369_v19 = vmul.f32 1.442695, %v2362_v31 }
0x12d0   :  { %7174 = vpow2.f32 %v2369_v19 }
0x12d4   :  { %v7169_v20 = vpop.eup %7168 }
0x12d5   :  { %v2371_v22 = vsel %vm230_vm0, %v7169_v20, 0.0 }
0x12d6   :  { %v7171_v24 = vpop.eup %7170  ;;  %2372 = vadd.xlane.f32.xlu0 %v2371_v22 }
0x12d7   :  { %v2374_v25 = vsel %vm230_vm0, %v7171_v24, 0.0 }
0x12d8   :  { %v7173_v37 = vpop.eup %7172  ;;  %2375 = vadd.xlane.f32.xlu1 %v2374_v25  ;;  %v7003_v25 = vld [vmem:[%s7603_s28 + $0x10] sm:$0xff]  }
0x12d9   :  { %v2377_v39 = vsel %vm230_vm0, %v7173_v37, 0.0  ;;  %6588 = vmatprep.subr.bf16.mxu0 %v7003_v25 }
0x12da   :  { %v7175_v6 = vpop.eup %7174  ;;  %2378 = vadd.xlane.f32.xlu0 %v2377_v39  ;;  %6589 = vmatpush3.bf16.msra.mxu0 %v7003_v25 }
0x12db   :  { %v2380_v61 = vsel %vm230_vm0, %v7175_v6, 0.0 }
0x12dc   :  { %2381 = vadd.xlane.f32.xlu1 %v2380_v61 }
0x1363   :  { %v2373_v30 = vpop.xlane.xlu0 %2372 }
0x1364   :  { %7176 = vrcp.f32 %v2373_v30 }
0x1365   :  { %v2376_v35 = vpop.xlane.xlu1 %2375 }
0x1366   :  { %7178 = vrcp.f32 %v2376_v35 }
0x1367   :  { %v2379_v60 = vpop.xlane.xlu0 %2378 }
0x1368   :  { %7180 = vrcp.f32 %v2379_v60 }
0x1369   :  { %v2382_v63 = vpop.xlane.xlu1 %2381 }
0x136a   :  { %7182 = vrcp.f32 %v2382_v63 }
0x136e   :  { %v7177_v38 = vpop.eup %7176 }
0x136f   :  { %v2387_v1 = vmul.f32 %v7177_v38, %v7169_v20 }
0x1370   :  { %v7179_v0 = vpop.eup %7178 }
0x1371   :  { %v2388_v2 = vmul.f32 %v7179_v0, %v7171_v24 }
0x1372   :  { %v7181_v5 = vpop.eup %7180 }
0x1373   :  { %v2391_v40 = vpack.c.bf16 %v2388_v2, %v2387_v1  ;;  %v2389_v42 = vmul.f32 %v7181_v5, %v7173_v37  ;;  %v7004_v37 = vld [vmem:[%s7603_s28 + $0x18] sm:$0xff]   ;;  %s5698_s28 = sld [smem:[%s8378_s0 + %s7316_s12]]   ;;  %s7332_s12 = smov 27  }
0x1374   :  { %v7183_v41 = vpop.eup %7182  ;;  %6590 = vmatprep.subr.bf16.mxu0 %v7004_v37  ;;  %s5706_s2 = sld [smem:[%s8378_s0 + %s7332_s12]]   ;;  %s7345_s12 = smov 45  }
0x1375   :  { %v2390_v43 = vmul.f32 %v7183_v41, %v7175_v6  ;;  %6572 = vmatprep.mubr.msk.bf16.mxu1 %vm230_vm0, %v2391_v40  ;;  %6591 = vmatpush3.bf16.msra.mxu0 %v7004_v37  ;;  %v5902_v41 = vld [vmem:[%s7610_s4 + $0x1] ss:$0 sm:$0xff]  ;;  %s7948_s4 = sld [smem:[%s8378_s0 + %s7325_s23]]  }
0x1377   :  { %v2392_v44 = vpack.c.bf16 %v2390_v43, %v2389_v42 }
0x1379   :  { %6573 = vmatmul.mubr.msk.bf16.vlgmr.msra.gmra.mrb[40].mxu1 %vm230_vm0, %v2392_v44 }
0x137a   :  { %6577 = vmatpush3.bf16.msra.mxu1 %v7001_v45 }
0x137b   :  { %6582 = vmatprep.subr.bf16.mxu1 %v7002_v46 }
0x144c   :  { %v6574_v47 = vpop.f32.mrb[40].mxu1 }
0x144d   :  { %v2435_v48 = vpop.f32.mrb[41].mxu1 }
0x144e   :  { %v6575_v50 = vpop.f32.mrb[42].mxu1 }
0x144f   :  { %v2451_v51 = vpack.c.bf16 %v6575_v50, %v6574_v47  ;;  %v2438_v49 = vpop.f32.mrb[43].mxu1  ;;  %v5903_v47 = vld [vmem:[%s7615_s10 + $0x1] ss:$0 sm:$0xff]  ;;  %s7957_s10 = sld [smem:[%s8378_s0 + %s7326_s5]]   ;;  %s7333_s5 = smov 36  }
0x1450   :  { %v2450_v52 = vpack.c.bf16 %v2438_v49, %v2435_v48 }
0x1452   :  { %6578 = vmatprep.mubr.msk.bf16.mxu1 %vm532_vm1, %v2450_v52 }
0x1453   :  { %6579 = vmatmul.mubr.msk.bf16.vlgmr.msra.gmra.mrb[44].mxu1 %vm532_vm1, %v2451_v51 }
0x1454   :  { %6584 = vmatprep.mubr.msk.bf16.mxu1 %vm532_vm1, %v2047_v26  ;;  %6583 = vmatpush3.bf16.msra.mxu1 %v7002_v46 }
0x145f   :  { %6585 = vmatmul.mubr.msk.bf16.vlgmr.msra.gmra.mrb[44].mxu1 %vm532_vm1, %v2048_v36 }
0x1532   :  { %v6586_v53 = vpop.f32.mrb[44].mxu1 }
0x1533   :  { %v2562_v54 = vpop.f32.mrb[45].mxu1  ;;  %v2579_v56 = vadd.f32 %v6586_v53, %v7652_v32 }
0x1534   :  { %v2577_v57 = vadd.f32 %v2562_v54, %v7648_v29  ;;  %v6587_v58 = vpop.f32.mrb[46].mxu1 }
0x1535   :  { %v2565_v59 = vpop.f32.mrb[47].mxu1  ;;  %v2580_v28 = vadd.f32 %v6587_v58, %v7658_v62  ;;  %v7805_v26 = vadd.f32 %v5899_v55, %v2579_v56 }
0x1536   :  { %v7801_v7 = vadd.f32 %v5899_v55, %v2577_v57  ;;  %v2578_v4 = vadd.f32 %v2565_v59, %v7654_v33 }
0x1537   :  { %v7811_v36 = vadd.f32 %v5899_v55, %v2580_v28  ;;  %v2603_v32 = vsel %vm230_vm0, %v7805_v26, 0.0  ;;  %v7005_v28 = vld [vmem:[%s7624_s16 + $0x40] sm:$0xff]  }
0x1538   :  { %v7807_v27 = vadd.f32 %v5899_v55, %v2578_v4  ;;  %v2597_v34 = vsel %vm230_vm0, %v7801_v7, 0.0  ;;  %6596 = vmatprep.subr.bf16.mxu0 %v7005_v28  ;;  %v7006_v4 = vld [vmem:[%s7624_s16 + $0x48] sm:$0xff]  }
0x1539   :  { %2598 = vadd.xlane.f32.xlu0 %v2597_v34  ;;  %v2606_v33 = vsel %vm230_vm0, %v7811_v36, 0.0  ;;  %v7007_v34 = vld [vmem:[%s7624_s16 + $0x50] sm:$0xff]  }
0x153a   :  { %v2600_v29 = vsel %vm230_vm0, %v7807_v27, 0.0 }
0x153b   :  { %2601 = vadd.xlane.f32.xlu1 %v2600_v29  ;;  %v7008_v29 = vld [vmem:[%s7624_s16 + $0x58] sm:$0xff]  }
0x153d   :  { %2604 = vadd.xlane.f32.xlu0 %v2603_v32  ;;  %v7009_v32 = vld [vmem:[%s7624_s16 + $0x60] sm:$0xff]  }
0x153f   :  { %2607 = vadd.xlane.f32.xlu1 %v2606_v33  ;;  %v7010_v33 = vld [vmem:[%s7624_s16 + $0x68] sm:$0xff]  }
0x15c6   :  { %v2599_v62 = vpop.xlane.xlu0 %2598 }
0x15c7   :  { %v2609_v8 = vmul.f32 0.03125, %v2599_v62  ;;  %v7011_v62 = vld [vmem:[%s7624_s16 + $0x70] sm:$0xff]  }
0x15c8   :  { %v2602_v9 = vpop.xlane.xlu1 %2601 }
0x15c9   :  { %v2613_v10 = vsub.f32 %v7801_v7, %v2609_v8  ;;  %v2610_v3 = vmul.f32 0.03125, %v2602_v9  ;;  %v7012_v8 = vld [vmem:[%s7624_s16 + $0x78] sm:$0xff]   ;;  %v5909_v9 = vld [vmem:[%s7637_s24 + $0x1] ss:$0 sm:$0xff]  ;;  %s7964_s16 = sld [smem:[%s8378_s0 + %s7327_s11]]  }
0x15ca   :  { %v2605_v11 = vpop.xlane.xlu0 %2604  ;;  %s7969_s24 = sld [smem:[%s8378_s0 + %s7328_s19]]  }
0x15cb   :  { %v2614_v18 = vsub.f32 %v7807_v27, %v2610_v3  ;;  %v2611_v12 = vmul.f32 0.03125, %v2605_v11  ;;  %v2617_v13 = vmul.f32 %v2613_v10, %v2613_v10  ;;  %s8082_s11 = sld [smem:[%s8378_s0 + %s7333_s5]]   ;;  %s7346_s5 = smov 48  }
0x15cc   :  { %v2608_v14 = vpop.xlane.xlu1 %2607  ;;  %s8165_s19 = sld [smem:[%s8378_s0 + %s7339_s8]]  }
0x15cd   :  { %v2615_v21 = vsub.f32 %v7805_v26, %v2611_v12  ;;  %v2612_v23 = vmul.f32 0.03125, %v2608_v14  ;;  %v2621_v15 = vsel %vm230_vm0, %v2617_v13, 0.0  ;;  %v2618_v16 = vmul.f32 %v2614_v18, %v2614_v18 }
0x15ce   :  { %2622 = vadd.xlane.f32.xlu0 %v2621_v15 }
0x15cf   :  { %v2616_v17 = vsub.f32 %v7811_v36, %v2612_v23  ;;  %v2624_v31 = vsel %vm230_vm0, %v2618_v16, 0.0  ;;  %v2619_v19 = vmul.f32 %v2615_v21, %v2615_v21 }
0x15d0   :  { %2625 = vadd.xlane.f32.xlu1 %v2624_v31 }
0x15d1   :  { %v2627_v20 = vsel %vm230_vm0, %v2619_v19, 0.0  ;;  %v2620_v22 = vmul.f32 %v2616_v17, %v2616_v17 }
0x15d2   :  { %2628 = vadd.xlane.f32.xlu0 %v2627_v20 }
0x15d3   :  { %v2630_v24 = vsel %vm230_vm0, %v2620_v22, 0.0 }
0x15d4   :  { %2631 = vadd.xlane.f32.xlu1 %v2630_v24 }
0x165b   :  { %v2623_v39 = vpop.xlane.xlu0 %2622 }
0x165c   :  { %v2633_v6 = vmul.f32 0.03125, %v2623_v39 }
0x165d   :  { %v2626_v61 = vpop.xlane.xlu1 %2625 }
0x165e   :  { %v2637_v30 = vadd.f32 1e-05, %v2633_v6  ;;  %v2634_v35 = vmul.f32 0.03125, %v2626_v61 }
0x165f   :  { %v2629_v60 = vpop.xlane.xlu0 %2628 }
0x1660   :  { %7184 = vrsqrt.f32 %v2637_v30  ;;  %v2638_v63 = vadd.f32 1e-05, %v2634_v35  ;;  %v2635_v38 = vmul.f32 0.03125, %v2629_v60 }
0x1661   :  { %v2632_v0 = vpop.xlane.xlu1 %2631 }
0x1662   :  { %7186 = vrsqrt.f32 %v2638_v63  ;;  %v2639_v1 = vadd.f32 1e-05, %v2635_v38  ;;  %v2636_v2 = vmul.f32 0.03125, %v2632_v0 }
0x1664   :  { %7188 = vrsqrt.f32 %v2639_v1  ;;  %v2640_v5 = vadd.f32 1e-05, %v2636_v2 }
0x1666   :  { %7190 = vrsqrt.f32 %v2640_v5 }
0x166a   :  { %v7185_v40 = vpop.eup %7184 }
0x166b   :  { %v2645_v42 = vmul.f32 %v7185_v40, %v2613_v10 }
0x166c   :  { %v7187_v43 = vpop.eup %7186 }
0x166d   :  { %v2646_v44 = vmul.f32 %v7187_v43, %v2614_v18  ;;  %v2655_v45 = vmul.f32 %v5902_v41, %v2645_v42 }
0x166e   :  { %v7189_v46 = vpop.eup %7188 }
0x166f   :  { %v2647_v48 = vmul.f32 %v7189_v46, %v2615_v21  ;;  %v2656_v50 = vmul.f32 %v5902_v41, %v2646_v44  ;;  %v2665_v53 = vadd.f32 %v5903_v47, %v2655_v45  ;;  %v5943_v45 = vld [vmem:[%s7643_s1 + $0x1] ss:$0 sm:$0xff]  ;;  %s8010_s1 = sld [smem:[%s8378_s0 + %s7329_s26]]  }
0x1670   :  { %v7191_v51 = vpop.eup %7190  ;;  %s5729_s26 = sld [smem:[%s8378_s0 + %s7347_s15]]  }
0x1671   :  { %v2657_v49 = vmul.f32 %v5902_v41, %v2647_v48  ;;  %v2648_v52 = vmul.f32 %v7191_v51, %v2616_v17  ;;  %v2666_v55 = vadd.f32 %v5903_v47, %v2656_v50 }
0x1673   :  { %v2658_v54 = vmul.f32 %v5902_v41, %v2648_v52  ;;  %v2669_v56 = vpack.c.bf16 %v2666_v55, %v2665_v53  ;;  %v2667_v57 = vadd.f32 %v5903_v47, %v2657_v49 }
0x1675   :  { %6592 = vmatprep.mubr.msk.bf16.mxu0 %vm230_vm0, %v2669_v56  ;;  %v2668_v58 = vadd.f32 %v5903_v47, %v2658_v54 }
0x1677   :  { %v2670_v59 = vpack.c.bf16 %v2668_v58, %v2667_v57 }
0x1679   :  { %6593 = vmatmul.mubr.msk.bf16.vlgmr.msra.gmra.mrb[48].mxu0 %vm230_vm0, %v2670_v59 }
0x167a   :  { %6597 = vmatpush3.bf16.msra.mxu0 %v7005_v28 }
0x167b   :  { %6598 = vmatprep.subr.bf16.mxu0 %v7006_v4 }
0x167e   :  { %6599 = vmatpush3.bf16.msra.mxu0 %v7006_v4 }
0x167f   :  { %6600 = vmatprep.subr.bf16.mxu0 %v7007_v34 }
0x1682   :  { %6601 = vmatpush3.bf16.msra.mxu0 %v7007_v34 }
0x1683   :  { %6602 = vmatprep.subr.bf16.mxu0 %v7008_v29 }
0x1686   :  { %6603 = vmatpush3.bf16.msra.mxu0 %v7008_v29 }
0x1687   :  { %6604 = vmatprep.subr.bf16.mxu0 %v7009_v32 }
0x168a   :  { %6605 = vmatpush3.bf16.msra.mxu0 %v7009_v32 }
0x168b   :  { %6606 = vmatprep.subr.bf16.mxu0 %v7010_v33 }
0x168e   :  { %6607 = vmatpush3.bf16.msra.mxu0 %v7010_v33 }
0x168f   :  { %6608 = vmatprep.subr.bf16.mxu0 %v7011_v62 }
0x1692   :  { %6609 = vmatpush3.bf16.msra.mxu0 %v7011_v62 }
0x1693   :  { %6610 = vmatprep.subr.bf16.mxu0 %v7012_v8 }
0x1696   :  { %6611 = vmatpush3.bf16.msra.mxu0 %v7012_v8 }
0x174c   :  { %v6594_v10 = vpop.f32.mrb[48].mxu0 }
0x174d   :  { %v2745_v3 = vadd.f32 %v6594_v10, %v5909_v9  ;;  %v2736_v11 = vpop.f32.mrb[49].mxu0 }
0x174e   :  { %v2737_v18 = vadd.f32 %v5909_v9, %v2736_v11  ;;  %v6595_v12 = vpop.f32.mrb[50].mxu0 }
0x174f   :  { %v5916_v13 = vmul.f32 -1.702, %v2745_v3  ;;  %v2748_v14 = vadd.f32 %v6595_v12, %v5909_v9  ;;  %v2739_v21 = vpop.f32.mrb[51].mxu0 }
0x1750   :  { %v5914_v23 = vmul.f32 -1.702, %v2737_v18  ;;  %v2740_v15 = vadd.f32 %v5909_v9, %v2739_v21  ;;  %v7311_v21 = vmov 0.0|0.0  }
0x1751   :  { %v2763_v16 = vmul.f32 1.442695, %v5916_v13  ;;  %v5917_v17 = vmul.f32 -1.702, %v2748_v14  ;;  %6881 = vmatprep.subr.bf16.mxu1 %v7311_v21 }
0x1752   :  { %v2759_v31 = vmul.f32 1.442695, %v5914_v23  ;;  %v5915_v19 = vmul.f32 -1.702, %v2740_v15  ;;  %v7313_v23 = vmov 0.0  }
0x1753   :  { %7192 = vpow2.f32 %v2763_v16  ;;  %v2765_v20 = vmul.f32 1.442695, %v5917_v17  ;;  %6624 = vmatprep.mubr.msk.f32.mxu1 %vm7312_vm2, %v7313_v23  ;;  %6635 = vmatprep.subr.bf16.mxu0 %v7313_v23 }
0x1754   :  { %7194 = vpow2.f32 %v2759_v31  ;;  %v2761_v22 = vmul.f32 1.442695, %v5915_v19 }
0x1755   :  { %7196 = vpow2.f32 %v2765_v20 }
0x1756   :  { %7198 = vpow2.f32 %v2761_v22 }
0x175d   :  { %v7193_v24 = vpop.eup %7192 }
0x175e   :  { %v7195_v25 = vpop.eup %7194  ;;  %v2769_v37 = vadd.f32 1.0, %v7193_v24 }
0x175f   :  { %v7197_v39 = vpop.eup %7196  ;;  %v2767_v6 = vadd.f32 1.0, %v7195_v25 }
0x1760   :  { %v7199_v61 = vpop.eup %7198  ;;  %7200 = vrcp.f32 %v2769_v37  ;;  %v2770_v30 = vadd.f32 1.0, %v7197_v39 }
0x1761   :  { %7202 = vrcp.f32 %v2767_v6  ;;  %v2768_v35 = vadd.f32 1.0, %v7199_v61 }
0x1762   :  { %7204 = vrcp.f32 %v2770_v30  ;;  %v5944_v30 = vld [vmem:[%s5697_s7] ss:$0 sm:$0xff]  ;;  %s8022_s7 = sld [smem:[%s8378_s0 + %s7331_s25]]  }
0x1763   :  { %7206 = vrcp.f32 %v2768_v35 }
0x176a   :  { %v7201_v60 = vpop.eup %7200 }
0x176b   :  { %v7203_v63 = vpop.eup %7202  ;;  %v2781_v1 = vmul.f32 %v7201_v60, %v2745_v3 }
0x176c   :  { %v7205_v38 = vpop.eup %7204  ;;  %v2779_v5 = vmul.f32 %v7203_v63, %v2737_v18 }
0x176d   :  { %v7207_v0 = vpop.eup %7206  ;;  %v2782_v2 = vmul.f32 %v7205_v38, %v2748_v14 }
0x176e   :  { %v2780_v40 = vmul.f32 %v7207_v0, %v2740_v15 }
0x176f   :  { %v2784_v41 = vpack.c.bf16 %v2782_v2, %v2781_v1  ;;  %v5945_v1 = vld [vmem:[%s5698_s28] ss:$0 sm:$0xff]  ;;  %s7338_s28 = smov 42  }
0x1770   :  { %v2783_v42 = vpack.c.bf16 %v2780_v40, %v2779_v5 }
0x1772   :  { %6612 = vmatprep.mubr.bf16.mxu0 %v2783_v42 }
0x1773   :  { %6613 = vmatmul.mubr.bf16.vlgmr.msra.gmra.mrb[52].mxu0 %v2784_v41 }
0x1774   :  { %6639 = vmatprep.mubr.msk.bf16.mxu0 %vm7312_vm2, %v7313_v23 }
0x1846   :  { %v6614_v43 = vpop.f32.mrb[52].mxu0 }
0x1847   :  { %v2884_v44 = vpop.f32.mrb[53].mxu0  ;;  %v2901_v46 = vadd.f32 %v6614_v43, %v7805_v26 }
0x1848   :  { %v2899_v47 = vadd.f32 %v2884_v44, %v7801_v7  ;;  %v6615_v48 = vpop.f32.mrb[54].mxu0 }
0x1849   :  { %v2887_v50 = vpop.f32.mrb[55].mxu0  ;;  %v2902_v51 = vadd.f32 %v6615_v48, %v7811_v36  ;;  %v2913_v54 = vadd.f32 %v5943_v45, %v2901_v46 }
0x184a   :  { %v2900_v49 = vadd.f32 %v2887_v50, %v7807_v27  ;;  %v2911_v52 = vadd.f32 %v5943_v45, %v2899_v47 }
0x184b   :  { %v2914_v57 = vadd.f32 %v5943_v45, %v2902_v51  ;;  %v2921_v26 = vsel %vm230_vm0, %v2913_v54, 0.0  ;;  %v223_v51 = vld [vmem:[%s5699_s6] sm:$0xff]  ;;  %s8144_s6 = sld [smem:[%s8378_s0 + %s7338_s28]]  }
0x184c   :  { %v2915_v53 = vsel %vm230_vm0, %v2911_v52, 0.0  ;;  %v2912_v55 = vadd.f32 %v5943_v45, %v2900_v49  ;;  %v7013_v49 = vld [vmem:[%s7864_s21] sm:$0xff]  }
0x184d   :  { %2916 = vadd.xlane.f32.xlu0 %v2915_v53  ;;  %v2924_v7 = vsel %vm230_vm0, %v2914_v57, 0.0  ;;  %v7319_v53 = vmov 0  }
0x184e   :  { %v2918_v56 = vsel %vm230_vm0, %v2912_v55, 0.0 }
0x184f   :  { %2919 = vadd.xlane.f32.xlu1 %v2918_v56  ;;  %v7027_v56 = vld [vmem:[%s7891_s20 + $0x4] ss:$8 sps:$4 sm:$0xff]  }
0x1851   :  { %2922 = vadd.xlane.f32.xlu0 %v2921_v26 }
0x1853   :  { %2925 = vadd.xlane.f32.xlu1 %v2924_v7  ;;  %v7016_v7 = vld [vmem:[%s7886_s14 + $0x8] sm:$0xff]  }
0x18da   :  { %v2917_v58 = vpop.xlane.xlu0 %2916 }
0x18db   :  { %v2927_v36 = vmul.f32 0.03125, %v2917_v58  ;;  %v7017_v58 = vld [vmem:[%s7886_s14 + $0x10] sm:$0xff]  }
0x18dc   :  { %v2920_v59 = vpop.xlane.xlu1 %2919 }
0x18dd   :  { %v2931_v27 = vsub.f32 %v2911_v52, %v2927_v36  ;;  %v2928_v28 = vmul.f32 0.03125, %v2920_v59  ;;  %v7014_v52 = vld [vmem:[%s7864_s21 + $0x8] sm:$0xff]   ;;  %v7018_v36 = vld [vmem:[%s7886_s14 + $0x18] sm:$0xff]   ;;  %v7019_v59 = vld [vmem:[%s7886_s14 + $0x20] sm:$0xff]   ;;  %s8017_s21 = sld [smem:[%s8378_s0 + %s7330_s9]]   ;;  %s7336_s9 = smov 38  }
0x18de   :  { %v2923_v4 = vpop.xlane.xlu0 %2922  ;;  %s8129_s25 = sld [smem:[%s8378_s0 + %s7336_s9]]  }
0x18df   :  { %v2932_v34 = vsub.f32 %v2912_v55, %v2928_v28  ;;  %v2929_v29 = vmul.f32 0.03125, %v2923_v4  ;;  %v2935_v32 = vmul.f32 %v2931_v27, %v2931_v27  ;;  %v7021_v28 = vld [vmem:[%s7886_s14 + $0x30] sm:$0xff]   ;;  %v7022_v4 = vld [vmem:[%s7886_s14 + $0x38] sm:$0xff]   ;;  %s8173_s9 = sld [smem:[%s8378_s0 + %s7340_s22]]  }
0x18e0   :  { %v2926_v33 = vpop.xlane.xlu1 %2925 }
0x18e1   :  { %v2933_v62 = vsub.f32 %v2913_v54, %v2929_v29  ;;  %v2930_v8 = vmul.f32 0.03125, %v2926_v33  ;;  %v2939_v9 = vsel %vm230_vm0, %v2935_v32, 0.0  ;;  %v2936_v10 = vmul.f32 %v2932_v34, %v2932_v34  ;;  %v7015_v54 = vld [vmem:[%s7886_s14] sm:$0xff]   ;;  %v7024_v29 = vld [vmem:[%s7886_s14 + $0x48] sm:$0xff]   ;;  %v7025_v32 = vld [vmem:[%s7886_s14 + $0x50] sm:$0xff]  }
0x18e2   :  { %2940 = vadd.xlane.f32.xlu0 %v2939_v9  ;;  %v7026_v33 = vld [vmem:[%s7886_s14 + $0x58] sm:$0xff]  }
0x18e3   :  { %v2934_v3 = vsub.f32 %v2914_v57, %v2930_v8  ;;  %v2942_v11 = vsel %vm230_vm0, %v2936_v10, 0.0  ;;  %v2937_v18 = vmul.f32 %v2933_v62, %v2933_v62 }
0x18e4   :  { %2943 = vadd.xlane.f32.xlu1 %v2942_v11  ;;  %v3142_v11 = vld [vmem:[%s5703_s27] sm:$0xff] }
0x18e5   :  { %v2945_v12 = vsel %vm230_vm0, %v2937_v18, 0.0  ;;  %v2938_v13 = vmul.f32 %v2934_v3, %v2934_v3 }
0x18e6   :  { %2946 = vadd.xlane.f32.xlu0 %v2945_v12  ;;  %v3143_v12 = vld [vmem:[%s5703_s27 + $0x8] sm:$0xff]  ;;  %s7348_s27 = smov 49  }
0x18e7   :  { %v2948_v14 = vsel %vm230_vm0, %v2938_v13, 0.0 }
0x18e8   :  { %2949 = vadd.xlane.f32.xlu1 %v2948_v14 }
0x196f   :  { %v2941_v15 = vpop.xlane.xlu0 %2940 }
0x1970   :  { %v2951_v16 = vmul.f32 0.03125, %v2941_v15 }
0x1971   :  { %v2944_v17 = vpop.xlane.xlu1 %2943 }
0x1972   :  { %v2955_v31 = vadd.f32 1e-05, %v2951_v16  ;;  %v2952_v19 = vmul.f32 0.03125, %v2944_v17 }
0x1973   :  { %v2947_v20 = vpop.xlane.xlu0 %2946 }
0x1974   :  { %7208 = vrsqrt.f32 %v2955_v31  ;;  %v2956_v22 = vadd.f32 1e-05, %v2952_v19  ;;  %v2953_v24 = vmul.f32 0.03125, %v2947_v20 }
0x1975   :  { %v2950_v25 = vpop.xlane.xlu1 %2949 }
0x1976   :  { %7210 = vrsqrt.f32 %v2956_v22  ;;  %v2957_v37 = vadd.f32 1e-05, %v2953_v24  ;;  %v2954_v39 = vmul.f32 0.03125, %v2950_v25 }
0x1978   :  { %7212 = vrsqrt.f32 %v2957_v37  ;;  %v2958_v6 = vadd.f32 1e-05, %v2954_v39 }
0x197a   :  { %7214 = vrsqrt.f32 %v2958_v6 }
0x197e   :  { %v7209_v61 = vpop.eup %7208 }
0x197f   :  { %v2963_v35 = vmul.f32 %v7209_v61, %v2931_v27  ;;  %v7020_v27 = vld [vmem:[%s7886_s14 + $0x28] sm:$0xff]  }
0x1980   :  { %v7211_v60 = vpop.eup %7210 }
0x1981   :  { %v2964_v63 = vmul.f32 %v7211_v60, %v2932_v34  ;;  %v2973_v38 = vmul.f32 %v5944_v30, %v2963_v35  ;;  %v7023_v34 = vld [vmem:[%s7886_s14 + $0x40] sm:$0xff]   ;;  %s7334_s14 = smov 37  }
0x1982   :  { %v7213_v0 = vpop.eup %7212 }
0x1983   :  { %v2965_v2 = vmul.f32 %v7213_v0, %v2933_v62  ;;  %v2974_v5 = vmul.f32 %v5944_v30, %v2964_v63  ;;  %v2983_v42 = vadd.f32 %v5945_v1, %v2973_v38  ;;  %v7029_v62 = vld [vmem:[%s7891_s20] ss:$8 sps:$4 sm:$0xff]   ;;  %s8100_s20 = sld [smem:[%s8378_s0 + %s7334_s14]]  }
0x1984   :  { %v7215_v40 = vpop.eup %7214  ;;  %s5727_s14 = sld [smem:[%s8378_s0 + %s7346_s5]]  }
0x1985   :  { %v2966_v41 = vmul.f32 %v7215_v40, %v2934_v3  ;;  %v2984_v43 = vadd.f32 %v5945_v1, %v2974_v5  ;;  %v2975_v44 = vmul.f32 %v5944_v30, %v2965_v2  ;;  %v5965_v40 = vld [vmem:[%s5704_s13] ss:$0 sm:$0xff] }
0x1987   :  { %v6882_v45 = vpack.c.bf16 %v2984_v43, %v2983_v42  ;;  %v2976_v46 = vmul.f32 %v5944_v30, %v2966_v41  ;;  %v2985_v47 = vadd.f32 %v5945_v1, %v2975_v44  ;;  %v5966_v43 = vld [vmem:[%s5705_s29] ss:$0 sm:$0xff]  ;;  %s7337_s29 = smov 39  }
0x1988   :  { %s8134_s23 = sld [smem:[%s8378_s0 + %s7337_s29]]  }
0x1989   :  { %6883 = vmatpush3.bf16.msra.mxu1 %v6882_v45  ;;  %v2986_v48 = vadd.f32 %v5945_v1, %v2976_v46 }
0x198a   :  { %6884 = vmatprep.subr.bf16.mxu1 %v7311_v21 }
0x198b   :  { %v6885_v50 = vpack.c.bf16 %v2986_v48, %v2985_v47 }
0x198d   :  { %6886 = vmatpush3.bf16.msra.mxu1 %v6885_v50 }
0x198e   :  { %6627 = vmatprep.subr.bf16.mxu1 %v7313_v23 }
0x1990   :  { %6625 = vmatmul.mubr.msk.f32.vlgmr.msra.gmra.mrb[48].mxu1 %vm230_vm0, %v223_v51 }
0x1991   :  { %6628 = vmatpush3.bf16.msra.mxu1 %v7013_v49  ;;  %6631 = vmatprep.mubr.msk.bf16.mxu1 %vm7312_vm2, %v7313_v23 }
0x1992   :  { %6629 = vmatprep.subr.bf16.mxu1 %v7313_v23 }
0x1995   :  { %6630 = vmatpush3.bf16.msra.mxu1 %v7014_v52 }
0x1996   :  { %3240 = vmatprep.subr.bf16.mxu1 %v7319_v53 }
0x1a63   :  { %v3056_v55 = vpop.f32.mrb[48].mxu1 }
0x1a64   :  { %v3060_v57 = vpack.c.bf16 %v3056_v55, %v3056_v55  ;;  %v6626_v26 = vpop.f32.mrb[49].mxu1 }
0x1a66   :  { %6632 = vmatmul.mubr.msk.bf16.vlgmr.msra.gmra.mrb[52].mxu1 %vm230_vm0, %v3060_v57 }
0x1a67   :  { %3241 = vmatpush1.bf16.msra.mxu1 %v7015_v54  ;;  %5964 = vmatprep.mubr.msk.bf16.mxu1 %vm3236_vm3, %v7027_v56 }
0x1a68   :  { %3242 = vmatprep.subr.bf16.mxu1 %v7319_v53 }
0x1a6b   :  { %3243 = vmatpush1.bf16.msra.mxu1 %v7016_v7 }
0x1a6c   :  { %3244 = vmatprep.subr.bf16.mxu1 %v7319_v53 }
0x1a6f   :  { %3245 = vmatpush1.bf16.msra.mxu1 %v7017_v58 }
0x1a70   :  { %3246 = vmatprep.subr.bf16.mxu1 %v7319_v53 }
0x1a73   :  { %3247 = vmatpush1.bf16.msra.mxu1 %v7018_v36  ;;  %v7030_v36 = vld [vmem:[%s7941_s18] sm:$0xff]  }
0x1a74   :  { %3248 = vmatprep.subr.bf16.mxu1 %v7319_v53  ;;  %6636 = vmatpush3.bf16.msra.mxu0 %v7030_v36 }
0x1a75   :  { %6637 = vmatprep.subr.bf16.mxu0 %v7313_v23 }
0x1a77   :  { %3249 = vmatpush1.bf16.msra.mxu1 %v7019_v59  ;;  %v7031_v59 = vld [vmem:[%s7941_s18 + $0x10] sm:$0xff]  }
0x1a78   :  { %3250 = vmatprep.subr.bf16.mxu1 %v7319_v53 }
0x1a7b   :  { %3251 = vmatpush1.bf16.msra.mxu1 %v7020_v27  ;;  %v7032_v27 = vld [vmem:[%s7941_s18 + $0x8] sm:$0xff]  }
0x1a7c   :  { %3252 = vmatprep.subr.bf16.mxu1 %v7319_v53  ;;  %6638 = vmatpush3.bf16.msra.mxu0 %v7032_v27 }
0x1a7d   :  { %6643 = vmatprep.subr.bf16.mxu0 %v7313_v23 }
0x1a7f   :  { %3253 = vmatpush1.bf16.msra.mxu1 %v7021_v28  ;;  %v7033_v28 = vld [vmem:[%s7941_s18 + $0x18] sm:$0xff]  }
0x1a80   :  { %3254 = vmatprep.subr.bf16.mxu1 %v7319_v53 }
0x1a83   :  { %3255 = vmatpush1.bf16.msra.mxu1 %v7022_v4 }
0x1a84   :  { %3256 = vmatprep.subr.bf16.mxu1 %v7319_v53 }
0x1a87   :  { %3257 = vmatpush1.bf16.msra.mxu1 %v7023_v34 }
0x1a88   :  { %3258 = vmatprep.subr.bf16.mxu1 %v7319_v53 }
0x1a8b   :  { %3259 = vmatpush1.bf16.msra.mxu1 %v7024_v29 }
0x1a8c   :  { %3260 = vmatprep.subr.bf16.mxu1 %v7319_v53 }
0x1a8f   :  { %3261 = vmatpush1.bf16.msra.mxu1 %v7025_v32 }
0x1a90   :  { %3262 = vmatprep.subr.bf16.mxu1 %v7319_v53 }
0x1a93   :  { %3263 = vmatpush1.bf16.msra.mxu1 %v7026_v33 }
0x1a94   :  { %6671 = vmatprep.subr.bf16.mxu1 %v7313_v23 }
0x1a96   :  { %3273 = vmatmul.mubr.bf16.vlgmr.msra.gmra.mrb[56].mxu1 %v7029_v62 }
0x1a97   :  { %6675 = vmatprep.mubr.msk.bf16.mxu1 %vm7312_vm2, %v7313_v23  ;;  %6672 = vmatpush3.bf16.msra.mxu1 %v7031_v59  ;;  %v5977_v59 = vld [vmem:[%s8022_s7] ss:$0 sm:$0xff] }
0x1a98   :  { %6673 = vmatprep.subr.bf16.mxu1 %v7313_v23 }
0x1a9b   :  { %6674 = vmatpush3.bf16.msra.mxu1 %v7033_v28 }
0x1a9c   :  { %6687 = vmatprep.subr.bf16.mxu1 %v7313_v23 }
0x1b39   :  { %v7911_v8 = vpop.f32.mrb[52].mxu1 }
0x1b3a   :  { %v6633_v9 = vpop.f32.mrb[53].mxu1 }
0x1b3b   :  { %v3113_v10 = vpop.f32.mrb[54].mxu1 }
0x1b3c   :  { %v6634_v3 = vpop.f32.mrb[55].mxu1  ;;  %v5967_v10 = vld [vmem:[%s7964_s16] ss:$0 sm:$0xff] }
0x1b69   :  { %v3274_v18 = vpop.f32.mrb[56].mxu1 }
0x1b6a   :  { %v3275_v13 = vadd.f32 %v3274_v18, %v3142_v11  ;;  %v3276_v14 = vpop.f32.mrb[57].mxu1 }
0x1b6b   :  { %v3277_v15 = vpop.f32.mrb[58].mxu1 }
0x1b6c   :  { %v3278_v16 = vadd.f32 %v3277_v15, %v3143_v12  ;;  %v3279_v17 = vpop.f32.mrb[59].mxu1  ;;  %v3281_v31 = vsel %vm230_vm0, %v3275_v13, 0.0 }
0x1b6d   :  { %3282 = vadd.xlane.f32.xlu0 %v3281_v31  ;;  %v7034_v17 = vld [vmem:[%s7948_s4] sm:$0xff]   ;;  %v7035_v31 = vld [vmem:[%s7957_s10 + $0x10] sm:$0xff]  }
0x1b6e   :  { %v3284_v19 = vsel %vm230_vm0, %v3278_v16, 0.0 }
0x1b6f   :  { %3285 = vadd.xlane.f32.xlu1 %v3284_v19 }
0x1bfa   :  { %v3283_v20 = vpop.xlane.xlu0 %3282 }
0x1bfb   :  { %v3287_v22 = vmul.f32 0.03125, %v3283_v20  ;;  %v7036_v20 = vld [vmem:[%s7948_s4 + $0x8] sm:$0xff]  }
0x1bfc   :  { %v3286_v24 = vpop.xlane.xlu1 %3285 }
0x1bfd   :  { %v3289_v25 = vsub.f32 %v3275_v13, %v3287_v22  ;;  %v3288_v37 = vmul.f32 0.03125, %v3286_v24  ;;  %v5968_v13 = vld [vmem:[%s7969_s24] ss:$0 sm:$0xff]  ;;  %v7037_v22 = vld [vmem:[%s7957_s10 + $0x18] sm:$0xff]  }
0x1bfe   :  { %v7038_v24 = vld [vmem:[%s7957_s10] sm:$0xff]  }
0x1bff   :  { %v3290_v39 = vsub.f32 %v3278_v16, %v3288_v37  ;;  %v3291_v6 = vmul.f32 %v3289_v25, %v3289_v25  ;;  %v5969_v37 = vld [vmem:[%s8010_s1] ss:$0 sm:$0xff] }
0x1c01   :  { %v3293_v61 = vsel %vm230_vm0, %v3291_v6, 0.0  ;;  %v3292_v30 = vmul.f32 %v3290_v39, %v3290_v39  ;;  %v5988_v6 = vld [vmem:[%s8010_s1 + $0x1] ss:$0 sm:$0xff] }
0x1c02   :  { %3294 = vadd.xlane.f32.xlu0 %v3293_v61 }
0x1c03   :  { %v3296_v35 = vsel %vm230_vm0, %v3292_v30, 0.0 }
0x1c04   :  { %3297 = vadd.xlane.f32.xlu1 %v3296_v35 }
0x1c8f   :  { %v3295_v60 = vpop.xlane.xlu0 %3294 }
0x1c90   :  { %v3299_v63 = vmul.f32 0.03125, %v3295_v60 }
0x1c91   :  { %v3298_v38 = vpop.xlane.xlu1 %3297 }
0x1c92   :  { %v3301_v0 = vadd.f32 1e-05, %v3299_v63  ;;  %v3300_v1 = vmul.f32 0.03125, %v3298_v38 }
0x1c94   :  { %7216 = vrsqrt.f32 %v3301_v0  ;;  %v3302_v2 = vadd.f32 1e-05, %v3300_v1 }
0x1c96   :  { %7218 = vrsqrt.f32 %v3302_v2 }
0x1c9e   :  { %v7217_v5 = vpop.eup %7216 }
0x1c9f   :  { %v3305_v41 = vmul.f32 %v7217_v5, %v3289_v25  ;;  %v7039_v25 = vld [vmem:[%s7957_s10 + $0x8] sm:$0xff]  }
0x1ca0   :  { %v7219_v42 = vpop.eup %7218 }
0x1ca1   :  { %v3313_v44 = vmul.f32 %v5965_v40, %v3305_v41  ;;  %v3306_v45 = vmul.f32 %v7219_v42, %v3290_v39 }
0x1ca3   :  { %v7926_v46 = vadd.f32 %v5966_v43, %v3313_v44  ;;  %v3314_v47 = vmul.f32 %v5965_v40, %v3306_v45  ;;  %v6006_v45 = vld [vmem:[%s8022_s7 + $0x1] ss:$0 sm:$0xff] }
0x1ca5   :  { %v3325_v48 = vsel %vm230_vm0, %v7926_v46, 0.0  ;;  %v7930_v50 = vadd.f32 %v5966_v43, %v3314_v47  ;;  %v5973_v43 = vld [vmem:[%s8017_s21] ss:$0 sm:$0xff] }
0x1ca6   :  { %3326 = vadd.xlane.f32.xlu0 %v3325_v48 }
0x1ca7   :  { %v3328_v51 = vsel %vm230_vm0, %v7930_v50, 0.0 }
0x1ca8   :  { %3329 = vadd.xlane.f32.xlu1 %v3328_v51 }
0x1d33   :  { %v3327_v49 = vpop.xlane.xlu0 %3326 }
0x1d34   :  { %v3331_v52 = vmul.f32 0.03125, %v3327_v49 }
0x1d35   :  { %v3330_v53 = vpop.xlane.xlu1 %3329 }
0x1d36   :  { %v3333_v55 = vsub.f32 %v7926_v46, %v3331_v52  ;;  %v3332_v54 = vmul.f32 0.03125, %v3330_v53 }
0x1d38   :  { %v3334_v56 = vsub.f32 %v7930_v50, %v3332_v54  ;;  %v3335_v57 = vmul.f32 %v3333_v55, %v3333_v55 }
0x1d3a   :  { %v3337_v26 = vsel %vm230_vm0, %v3335_v57, 0.0  ;;  %v3336_v7 = vmul.f32 %v3334_v56, %v3334_v56 }
0x1d3b   :  { %3338 = vadd.xlane.f32.xlu0 %v3337_v26 }
0x1d3c   :  { %v3340_v58 = vsel %vm230_vm0, %v3336_v7, 0.0 }
0x1d3d   :  { %3341 = vadd.xlane.f32.xlu1 %v3340_v58 }
0x1dc8   :  { %v3339_v4 = vpop.xlane.xlu0 %3338 }
0x1dc9   :  { %v3343_v34 = vmul.f32 0.03125, %v3339_v4 }
0x1dca   :  { %v3342_v29 = vpop.xlane.xlu1 %3341 }
0x1dcb   :  { %v3345_v32 = vadd.f32 1e-05, %v3343_v34  ;;  %v3344_v33 = vmul.f32 0.03125, %v3342_v29 }
0x1dcd   :  { %7220 = vrsqrt.f32 %v3345_v32  ;;  %v3346_v62 = vadd.f32 1e-05, %v3344_v33 }
0x1dcf   :  { %7222 = vrsqrt.f32 %v3346_v62 }
0x1dd7   :  { %v7221_v9 = vpop.eup %7220 }
0x1dd8   :  { %v3349_v3 = vmul.f32 %v7221_v9, %v3333_v55  ;;  %v8043_v9 = vld [vmem:[%s5706_s2] sm:$0xff] }
0x1dd9   :  { %v7223_v11 = vpop.eup %7222 }
0x1dda   :  { %v3357_v18 = vmul.f32 %v5967_v10, %v3349_v3  ;;  %v3350_v12 = vmul.f32 %v7223_v11, %v3334_v56 }
0x1ddc   :  { %v3358_v14 = vmul.f32 %v5967_v10, %v3350_v12  ;;  %v3365_v15 = vadd.f32 %v5968_v13, %v3357_v18  ;;  %v8045_v18 = vld [vmem:[%s5706_s2 + $0x8] sm:$0xff]  ;;  %s5724_s2 = sld [smem:[%s8378_s0 + %s7345_s12]]  }
0x1dde   :  { %v3366_v16 = vadd.f32 %v5968_v13, %v3358_v14 }
0x1de0   :  { %v7975_v19 = vpack.c.bf16 %v3366_v16, %v3365_v15 }
0x1de2   :  { %6640 = vmatmul.mubr.msk.bf16.vlgmr.msra.gmra.mrb[56].mxu0 %vm230_vm0, %v7975_v19  ;;  %6676 = vmatmul.mubr.msk.bf16.vlgmr.msra.gmra.mrb[60].mxu1 %vm230_vm0, %v7975_v19 }
0x1de3   :  { %6644 = vmatpush3.bf16.msra.mxu0 %v7034_v17  ;;  %6688 = vmatpush3.bf16.msra.mxu1 %v7035_v31 }
0x1de4   :  { %6645 = vmatprep.subr.bf16.mxu0 %v7313_v23  ;;  %6689 = vmatprep.subr.bf16.mxu1 %v7313_v23 }
0x1de5   :  { %6647 = vmatprep.mubr.msk.bf16.mxu0 %vm7312_vm2, %v7313_v23  ;;  %6691 = vmatprep.mubr.msk.bf16.mxu1 %vm7312_vm2, %v7313_v23 }
0x1de7   :  { %6646 = vmatpush3.bf16.msra.mxu0 %v7036_v20  ;;  %6690 = vmatpush3.bf16.msra.mxu1 %v7037_v22 }
0x1de8   :  { %6651 = vmatprep.subr.bf16.mxu0 %v7313_v23  ;;  %6701 = vmatprep.subr.bf16.mxu1 %v7313_v23 }
0x1dea   :  { %6648 = vmatmul.mubr.msk.bf16.vlgmr.msra.gmra.mrb[60].mxu0 %vm230_vm0, %v7975_v19  ;;  %6692 = vmatmul.mubr.msk.bf16.vlgmr.msra.gmra.mrb[64].mxu1 %vm230_vm0, %v7975_v19 }
0x1deb   :  { %6652 = vmatpush3.bf16.msra.mxu0 %v7038_v24  ;;  %6655 = vmatprep.mubr.msk.bf16.mxu0 %vm7312_vm2, %v7313_v23 }
0x1dec   :  { %6653 = vmatprep.subr.bf16.mxu0 %v7313_v23  ;;  %6703 = vmatprep.mubr.msk.bf16.mxu1 %vm7312_vm2, %v7313_v23 }
0x1def   :  { %6654 = vmatpush3.bf16.msra.mxu0 %v7039_v25 }
0x1df0   :  { %6659 = vmatprep.subr.bf16.mxu0 %v7313_v23 }
0x1df2   :  { %6656 = vmatmul.mubr.msk.bf16.vlgmr.msra.gmra.mrb[64].mxu0 %vm230_vm0, %v7975_v19 }
0x1df3   :  { %6661 = vmatprep.mubr.msk.bf16.mxu0 %vm7312_vm2, %v7313_v23 }
0x1eb5   :  { %v3428_v39 = vpop.f32.mrb[56].mxu0  ;;  %v3746_v61 = vpop.f32.mrb[60].mxu1 }
0x1eb6   :  { %v6641_v30 = vpop.f32.mrb[57].mxu0  ;;  %v6677_v35 = vpop.f32.mrb[61].mxu1  ;;  %v3429_v38 = vadd.f32 %v5969_v37, %v3428_v39  ;;  %v8024_v0 = vadd.f32 %v5988_v6, %v3746_v61 }
0x1eb7   :  { %v3431_v60 = vpop.f32.mrb[58].mxu0  ;;  %v3749_v63 = vpop.f32.mrb[62].mxu1 }
0x1eb8   :  { %v3432_v1 = vadd.f32 %v5969_v37, %v3431_v60  ;;  %v8026_v2 = vadd.f32 %v5988_v6, %v3749_v63  ;;  %v6642_v5 = vpop.f32.mrb[59].mxu0  ;;  %v6678_v40 = vpop.f32.mrb[63].mxu1 }
0x1eb9   :  { %v7040_v40 = vld [vmem:[%s7948_s4 + $0x10] sm:$0xff]  }
0x1eba   :  { %v3563_v41 = vpack.c.bf16 %v3432_v1, %v3429_v38  ;;  %v3885_v42 = vpack.c.bf16 %v8026_v2, %v8024_v0 }
0x1ebd   :  { %v3492_v44 = vpop.f32.mrb[60].mxu0  ;;  %v3878_v47 = vpop.f32.mrb[64].mxu1 }
0x1ebe   :  { %v6649_v48 = vpop.f32.mrb[61].mxu0  ;;  %v6693_v51 = vpop.f32.mrb[65].mxu1  ;;  %v3493_v53 = vadd.f32 %v5973_v43, %v3492_v44  ;;  %v3879_v55 = vadd.f32 %v6006_v45, %v3878_v47 }
0x1ebf   :  { %v3495_v49 = vpop.f32.mrb[62].mxu0  ;;  %v3881_v52 = vpop.f32.mrb[66].mxu1 }
0x1ec0   :  { %v3496_v54 = vadd.f32 %v5973_v43, %v3495_v49  ;;  %v3882_v56 = vadd.f32 %v6006_v45, %v3881_v52  ;;  %v6650_v57 = vpop.f32.mrb[63].mxu0  ;;  %v6694_v26 = vpop.f32.mrb[67].mxu1  ;;  %v7041_v43 = vld [vmem:[%s7948_s4 + $0x18] sm:$0xff]   ;;  %v5997_v49 = vld [vmem:[%s8017_s21 + $0x1] ss:$0 sm:$0xff] }
0x1ec2   :  { %v3564_v7 = vpack.c.bf16 %v3496_v54, %v3493_v53  ;;  %v3961_v58 = vpack.c.bf16 %v3882_v56, %v3879_v55 }
0x1ec4   :  { %6702 = vmatpush3.bf16.msra.mxu1 %v3961_v58  ;;  %v3569_v36 = vsel %vm532_vm1, %v3564_v7, 0 }
0x1ec5   :  { %v3556_v27 = vpop.f32.mrb[64].mxu0  ;;  %6660 = vmatpush3.bf16.xpose.msra.mxu0 %v3569_v36  ;;  %6713 = vmatprep.subr.bf16.mxu1 %v7313_v23 }
0x1ec6   :  { %v6657_v28 = vpop.f32.mrb[65].mxu0  ;;  %6665 = vmatprep.subr.bf16.mxu0 %v7313_v23  ;;  %v3557_v34 = vadd.f32 %v5977_v59, %v3556_v27 }
0x1ec7   :  { %v3559_v4 = vpop.f32.mrb[66].mxu0 }
0x1ec8   :  { %v3560_v29 = vadd.f32 %v5977_v59, %v3559_v4  ;;  %v6658_v32 = vpop.f32.mrb[67].mxu0 }
0x1eca   :  { %v3639_v33 = vpack.c.bf16 %v3560_v29, %v3557_v34 }
0x1ecc   :  { %6662 = vmatmul.mubr.msk.bf16.vlgmr.msra.gmra.mrb[68].mxu0 %vm532_vm1, %v3563_v41 }
0x1ecd   :  { %6666 = vmatpush3.bf16.msra.mxu0 %v3639_v33  ;;  %6667 = vmatprep.mubr.msk.bf16.mxu0 %vm7312_vm2, %v7313_v23 }
0x1ece   :  { %6679 = vmatprep.subr.bf16.mxu0 %v7313_v23 }
0x1f9f   :  { %v3605_v62 = vpop.f32.mrb[68].mxu0 }
0x1fa0   :  { %v3612_v10 = vmul.f32 0.25, %v3605_v62  ;;  %v6663_v3 = vpop.f32.mrb[69].mxu0 }
0x1fa1   :  { %v3608_v11 = vpop.f32.mrb[70].mxu0 }
0x1fa2   :  { %v3613_v12 = vmul.f32 0.25, %v3608_v11  ;;  %v6664_v13 = vpop.f32.mrb[71].mxu0  ;;  %v3614_v14 = vadd.f32 %v3612_v10, %v8043_v9 }
0x1fa4   :  { %v3616_v15 = vsel %vm532_vm1, %v3614_v14, -inf  ;;  %v3615_v16 = vadd.f32 %v3613_v12, %v8045_v18 }
0x1fa5   :  { %3617 = vmax.xlane.f32.xlu0 %v3616_v15 }
0x1fa6   :  { %v3619_v17 = vsel %vm532_vm1, %v3615_v16, -inf }
0x1fa7   :  { %3620 = vmax.xlane.f32.xlu1 %v3619_v17 }
0x2032   :  { %v3618_v31 = vpop.xlane.xlu0 %3617 }
0x2033   :  { %v3622_v20 = vsub.f32 %v3614_v14, %v3618_v31 }
0x2034   :  { %v3621_v22 = vpop.xlane.xlu1 %3620 }
0x2035   :  { %v3624_v24 = vmul.f32 1.442695, %v3622_v20  ;;  %v3623_v25 = vsub.f32 %v3615_v16, %v3621_v22  ;;  %v7042_v22 = vld [vmem:[%s8082_s11] sm:$0xff]  }
0x2037   :  { %7224 = vpow2.f32 %v3624_v24  ;;  %v3626_v37 = vmul.f32 1.442695, %v3623_v25  ;;  %v7043_v25 = vld [vmem:[%s8082_s11 + $0x8] sm:$0xff]  }
0x2039   :  { %7226 = vpow2.f32 %v3626_v37 }
0x2041   :  { %v7225_v39 = vpop.eup %7224 }
0x2042   :  { %v3628_v6 = vsel %vm532_vm1, %v7225_v39, 0.0 }
0x2043   :  { %v7227_v61 = vpop.eup %7226  ;;  %3629 = vadd.xlane.f32.xlu0 %v3628_v6 }
0x2044   :  { %v3631_v30 = vsel %vm532_vm1, %v7227_v61, 0.0 }
0x2045   :  { %3632 = vadd.xlane.f32.xlu1 %v3631_v30 }
0x20d0   :  { %v3630_v35 = vpop.xlane.xlu0 %3629 }
0x20d1   :  { %7228 = vrcp.f32 %v3630_v35 }
0x20d2   :  { %v3633_v60 = vpop.xlane.xlu1 %3632 }
0x20d3   :  { %7230 = vrcp.f32 %v3633_v60 }
0x20db   :  { %v7229_v63 = vpop.eup %7228 }
0x20dc   :  { %v3636_v1 = vmul.f32 %v7229_v63, %v7225_v39 }
0x20dd   :  { %v7231_v38 = vpop.eup %7230 }
0x20de   :  { %v3637_v5 = vmul.f32 %v7231_v38, %v7227_v61 }
0x20e0   :  { %v3638_v41 = vpack.c.bf16 %v3637_v5, %v3636_v1 }
0x20e2   :  { %6668 = vmatmul.mubr.msk.bf16.vlgmr.msra.gmra.mrb[72].mxu0 %vm532_vm1, %v3638_v41  ;;  %v6018_v41 = vld [vmem:[%s8100_s20] ss:$0 sm:$0xff] }
0x20e3   :  { %6680 = vmatpush3.bf16.msra.mxu0 %v7040_v40  ;;  %6683 = vmatprep.mubr.msk.bf16.mxu0 %vm7312_vm2, %v7313_v23 }
0x20e4   :  { %6681 = vmatprep.subr.bf16.mxu0 %v7313_v23 }
0x20e7   :  { %6682 = vmatpush3.bf16.msra.mxu0 %v7041_v43 }
0x20e8   :  { %6695 = vmatprep.subr.bf16.mxu0 %v7313_v23 }
0x20ea   :  { %6684 = vmatmul.mubr.msk.bf16.vlgmr.msra.gmra.mrb[76].mxu0 %vm230_vm0, %v7975_v19 }
0x20eb   :  { %6697 = vmatprep.mubr.msk.bf16.mxu0 %vm7312_vm2, %v7313_v23 }
0x21b5   :  { %v3677_v44 = vpop.f32.mrb[72].mxu0 }
0x21b6   :  { %v6669_v45 = vpop.f32.mrb[73].mxu0 }
0x21b7   :  { %v3680_v47 = vpop.f32.mrb[74].mxu0 }
0x21b8   :  { %v3684_v48 = vpack.c.bf16 %v3680_v47, %v3677_v44  ;;  %v6670_v51 = vpop.f32.mrb[75].mxu0 }
0x21bd   :  { %v3812_v52 = vpop.f32.mrb[76].mxu0 }
0x21be   :  { %v6685_v53 = vpop.f32.mrb[77].mxu0  ;;  %v3813_v54 = vadd.f32 %v5997_v49, %v3812_v52 }
0x21bf   :  { %v3815_v55 = vpop.f32.mrb[78].mxu0 }
0x21c0   :  { %v3816_v56 = vadd.f32 %v5997_v49, %v3815_v55  ;;  %v6686_v57 = vpop.f32.mrb[79].mxu0 }
0x21c2   :  { %v3886_v26 = vpack.c.bf16 %v3816_v56, %v3813_v54 }
0x21c4   :  { %v3891_v7 = vsel %vm532_vm1, %v3886_v26, 0 }
0x21c5   :  { %6696 = vmatpush3.bf16.xpose.msra.mxu0 %v3891_v7 }
0x21c6   :  { %6707 = vmatprep.subr.bf16.mxu0 %v7313_v23 }
0x21cc   :  { %6698 = vmatmul.mubr.msk.bf16.vlgmr.msra.gmra.mrb[80].mxu0 %vm532_vm1, %v3885_v42 }
0x21cd   :  { %6709 = vmatprep.mubr.msk.bf16.mxu0 %vm7312_vm2, %v7313_v23  ;;  %6708 = vmatpush3.bf16.msra.mxu0 %v7043_v25  ;;  %v7053_v25 = vld [vmem:[%s8144_s6 + $0x38] sm:$0xff]  }
0x21ce   :  { %6719 = vmatprep.subr.bf16.mxu0 %v7313_v23 }
0x229f   :  { %v3927_v19 = vpop.f32.mrb[80].mxu0 }
0x22a0   :  { %v3934_v58 = vmul.f32 0.25, %v3927_v19  ;;  %v6699_v36 = vpop.f32.mrb[81].mxu0 }
0x22a1   :  { %v3930_v59 = vpop.f32.mrb[82].mxu0  ;;  %v7044_v36 = vld [vmem:[%s8120_s30] sm:$0xff]  }
0x22a2   :  { %v3935_v27 = vmul.f32 0.25, %v3930_v59  ;;  %v6700_v28 = vpop.f32.mrb[83].mxu0  ;;  %v3936_v4 = vadd.f32 %v3934_v58, %v8043_v9  ;;  %v7045_v59 = vld [vmem:[%s8120_s30 + $0x8] sm:$0xff]  }
0x22a4   :  { %v3938_v34 = vsel %vm532_vm1, %v3936_v4, -inf  ;;  %v3937_v29 = vadd.f32 %v3935_v27, %v8045_v18 }
0x22a5   :  { %3939 = vmax.xlane.f32.xlu0 %v3938_v34 }
0x22a6   :  { %v3941_v0 = vsel %vm532_vm1, %v3937_v29, -inf }
0x22a7   :  { %3942 = vmax.xlane.f32.xlu1 %v3941_v0 }
0x2332   :  { %v3940_v2 = vpop.xlane.xlu0 %3939 }
0x2333   :  { %v3944_v42 = vsub.f32 %v3936_v4, %v3940_v2 }
0x2334   :  { %v3943_v32 = vpop.xlane.xlu1 %3942 }
0x2335   :  { %v3946_v33 = vmul.f32 1.442695, %v3944_v42  ;;  %v3945_v62 = vsub.f32 %v3937_v29, %v3943_v32  ;;  %v6019_v42 = vld [vmem:[%s8129_s25] ss:$0 sm:$0xff] }
0x2337   :  { %7232 = vpow2.f32 %v3946_v33  ;;  %v3948_v10 = vmul.f32 1.442695, %v3945_v62 }
0x2339   :  { %7234 = vpow2.f32 %v3948_v10 }
0x2341   :  { %v7233_v3 = vpop.eup %7232 }
0x2342   :  { %v3950_v11 = vsel %vm532_vm1, %v7233_v3, 0.0 }
0x2343   :  { %v7235_v12 = vpop.eup %7234  ;;  %3951 = vadd.xlane.f32.xlu0 %v3950_v11 }
0x2344   :  { %v3953_v13 = vsel %vm532_vm1, %v7235_v12, 0.0 }
0x2345   :  { %3954 = vadd.xlane.f32.xlu1 %v3953_v13 }
0x23d0   :  { %v3952_v14 = vpop.xlane.xlu0 %3951 }
0x23d1   :  { %7236 = vrcp.f32 %v3952_v14 }
0x23d2   :  { %v3955_v15 = vpop.xlane.xlu1 %3954 }
0x23d3   :  { %7238 = vrcp.f32 %v3955_v15  ;;  %v7046_v15 = vld [vmem:[%s8144_s6] sm:$0xff]  }
0x23db   :  { %v7237_v16 = vpop.eup %7236 }
0x23dc   :  { %v3958_v31 = vmul.f32 %v7237_v16, %v7233_v3  ;;  %v6020_v3 = vld [vmem:[%s8134_s23] ss:$0 sm:$0xff]  ;;  %v7047_v16 = vld [vmem:[%s8144_s6 + $0x8] sm:$0xff]  }
0x23dd   :  { %v7239_v17 = vpop.eup %7238 }
0x23de   :  { %v3959_v20 = vmul.f32 %v7239_v17, %v7235_v12  ;;  %v7048_v17 = vld [vmem:[%s8144_s6 + $0x10] sm:$0xff]  }
0x23e0   :  { %v3960_v24 = vpack.c.bf16 %v3959_v20, %v3958_v31  ;;  %v7049_v31 = vld [vmem:[%s8144_s6 + $0x18] sm:$0xff]   ;;  %v7050_v20 = vld [vmem:[%s8144_s6 + $0x20] sm:$0xff]  }
0x23e2   :  { %6704 = vmatmul.mubr.msk.bf16.vlgmr.msra.gmra.mrb[68].mxu1 %vm532_vm1, %v3960_v24  ;;  %v7052_v24 = vld [vmem:[%s8144_s6 + $0x30] sm:$0xff]  }
0x23e3   :  { %6714 = vmatpush3.bf16.msra.mxu1 %v7042_v22  ;;  %6715 = vmatprep.mubr.msk.bf16.mxu1 %vm7312_vm2, %v7313_v23  ;;  %v7051_v22 = vld [vmem:[%s8144_s6 + $0x28] sm:$0xff]  }
0x23e4   :  { %6727 = vmatprep.subr.bf16.mxu1 %v7313_v23 }
0x23ea   :  { %6716 = vmatmul.mubr.msk.bf16.vlgmr.msra.gmra.mrb[72].mxu1 %vm532_vm1, %v3684_v48 }
0x23eb   :  { %6743 = vmatprep.mubr.msk.bf16.mxu1 %vm7312_vm2, %v7313_v23  ;;  %6728 = vmatpush3.bf16.msra.mxu1 %v7046_v15 }
0x23ec   :  { %6729 = vmatprep.subr.bf16.mxu1 %v7313_v23 }
0x23ef   :  { %6730 = vmatpush3.bf16.msra.mxu1 %v7047_v16 }
0x23f0   :  { %6731 = vmatprep.subr.bf16.mxu1 %v7313_v23 }
0x23f3   :  { %6732 = vmatpush3.bf16.msra.mxu1 %v7048_v17 }
0x23f4   :  { %6733 = vmatprep.subr.bf16.mxu1 %v7313_v23 }
0x23f7   :  { %6734 = vmatpush3.bf16.msra.mxu1 %v7049_v31 }
0x23f8   :  { %6735 = vmatprep.subr.bf16.mxu1 %v7313_v23 }
0x23fb   :  { %6736 = vmatpush3.bf16.msra.mxu1 %v7050_v20  ;;  %v6039_v20 = vld [vmem:[%s7969_s24 + $0x1] ss:$0 sm:$0xff]  ;;  %s7342_s24 = smov 51  }
0x23fc   :  { %6737 = vmatprep.subr.bf16.mxu1 %v7313_v23 }
0x23ff   :  { %6738 = vmatpush3.bf16.msra.mxu1 %v7051_v22 }
0x2400   :  { %6739 = vmatprep.subr.bf16.mxu1 %v7313_v23 }
0x2403   :  { %6740 = vmatpush3.bf16.msra.mxu1 %v7052_v24 }
0x2404   :  { %6741 = vmatprep.subr.bf16.mxu1 %v7313_v23 }
0x2407   :  { %6742 = vmatpush3.bf16.msra.mxu1 %v7053_v25 }
0x2408   :  { %6777 = vmatprep.subr.bf16.mxu1 %v7313_v23 }
0x24b5   :  { %v3999_v37 = vpop.f32.mrb[68].mxu1 }
0x24b6   :  { %v6705_v39 = vpop.f32.mrb[69].mxu1 }
0x24b7   :  { %v4002_v6 = vpop.f32.mrb[70].mxu1 }
0x24b8   :  { %v4006_v61 = vpack.c.bf16 %v4002_v6, %v3999_v37  ;;  %v6706_v30 = vpop.f32.mrb[71].mxu1  ;;  %v6021_v37 = vld [vmem:[%s8165_s19] ss:$0 sm:$0xff] }
0x24ba   :  { %6710 = vmatmul.mubr.msk.bf16.vlgmr.msra.gmra.mrb[84].mxu0 %vm532_vm1, %v4006_v61 }
0x24bb   :  { %6723 = vmatprep.mubr.msk.bf16.mxu0 %vm7312_vm2, %v7313_v23  ;;  %6720 = vmatpush3.bf16.msra.mxu0 %v7044_v36 }
0x24bc   :  { %6721 = vmatprep.subr.bf16.mxu0 %v7313_v23 }
0x24bd   :  { %v4103_v35 = vpop.f32.mrb[72].mxu1 }
0x24be   :  { %v6717_v60 = vpop.f32.mrb[73].mxu1 }
0x24bf   :  { %v4106_v63 = vpop.f32.mrb[74].mxu1  ;;  %6722 = vmatpush3.bf16.msra.mxu0 %v7045_v59 }
0x24c0   :  { %v6718_v38 = vpop.f32.mrb[75].mxu1  ;;  %6747 = vmatprep.subr.bf16.mxu0 %v7313_v23 }
0x258d   :  { %v4053_v1 = vpop.f32.mrb[84].mxu0 }
0x258e   :  { %v4104_v5 = vadd.f32 %v4103_v35, %v4053_v1  ;;  %v6711_v40 = vpop.f32.mrb[85].mxu0 }
0x258f   :  { %v4056_v43 = vpop.f32.mrb[86].mxu0 }
0x2590   :  { %v4110_v44 = vadd.f32 %v4104_v5, %v7926_v46  ;;  %v4107_v45 = vadd.f32 %v4106_v63, %v4056_v43  ;;  %v6712_v47 = vpop.f32.mrb[87].mxu0 }
0x2592   :  { %v8104_v48 = vadd.f32 %v6018_v41, %v4110_v44  ;;  %v4111_v51 = vadd.f32 %v4107_v45, %v7930_v50 }
0x2594   :  { %v8107_v49 = vadd.f32 %v6018_v41, %v4111_v51  ;;  %v4123_v52 = vsel %vm230_vm0, %v8104_v48, 0.0 }
0x2595   :  { %4124 = vadd.xlane.f32.xlu0 %v4123_v52 }
0x2596   :  { %v4126_v53 = vsel %vm230_vm0, %v8107_v49, 0.0 }
0x2597   :  { %4127 = vadd.xlane.f32.xlu1 %v4126_v53 }
0x2622   :  { %v4125_v55 = vpop.xlane.xlu0 %4124 }
0x2623   :  { %v4129_v54 = vmul.f32 0.03125, %v4125_v55 }
0x2624   :  { %v4128_v56 = vpop.xlane.xlu1 %4127 }
0x2625   :  { %v4131_v46 = vsub.f32 %v8104_v48, %v4129_v54  ;;  %v4130_v57 = vmul.f32 0.03125, %v4128_v56  ;;  %v6035_v54 = vld [vmem:[%s8173_s9] ss:$0 sm:$0xff] }
0x2627   :  { %v4132_v26 = vsub.f32 %v8107_v49, %v4130_v57  ;;  %v4133_v7 = vmul.f32 %v4131_v46, %v4131_v46 }
0x2629   :  { %v4135_v50 = vsel %vm230_vm0, %v4133_v7, 0.0  ;;  %v4134_v19 = vmul.f32 %v4132_v26, %v4132_v26 }
0x262a   :  { %4136 = vadd.xlane.f32.xlu0 %v4135_v50 }
0x262b   :  { %v4138_v58 = vsel %vm230_vm0, %v4134_v19, 0.0 }
0x262c   :  { %4139 = vadd.xlane.f32.xlu1 %v4138_v58 }
0x26b7   :  { %v4137_v27 = vpop.xlane.xlu0 %4136 }
0x26b8   :  { %v4141_v28 = vmul.f32 0.03125, %v4137_v27 }
0x26b9   :  { %v4140_v4 = vpop.xlane.xlu1 %4139 }
0x26ba   :  { %v4143_v34 = vadd.f32 1e-05, %v4141_v28  ;;  %v4142_v29 = vmul.f32 0.03125, %v4140_v4 }
0x26bc   :  { %7240 = vrsqrt.f32 %v4143_v34  ;;  %v4144_v0 = vadd.f32 1e-05, %v4142_v29 }
0x26be   :  { %7242 = vrsqrt.f32 %v4144_v0 }
0x26c6   :  { %v7241_v2 = vpop.eup %7240 }
0x26c7   :  { %v4147_v32 = vmul.f32 %v7241_v2, %v4131_v46 }
0x26c8   :  { %v7243_v33 = vpop.eup %7242 }
0x26c9   :  { %v4155_v62 = vmul.f32 %v6019_v42, %v4147_v32  ;;  %v4148_v10 = vmul.f32 %v7243_v33, %v4132_v26  ;;  %v7055_v32 = vld [vmem:[%s7941_s18 + $0x28] sm:$0xff]  }
0x26cb   :  { %v4156_v11 = vmul.f32 %v6019_v42, %v4148_v10  ;;  %v4163_v12 = vadd.f32 %v6020_v3, %v4155_v62  ;;  %v7054_v42 = vld [vmem:[%s7941_s18 + $0x20] sm:$0xff]  }
0x26cd   :  { %v4164_v13 = vadd.f32 %v6020_v3, %v4156_v11 }
0x26cf   :  { %v4165_v14 = vpack.c.bf16 %v4164_v13, %v4163_v12 }
0x26d1   :  { %6724 = vmatmul.mubr.msk.bf16.vlgmr.msra.gmra.mrb[88].mxu0 %vm230_vm0, %v4165_v14  ;;  %v6038_v14 = vld [vmem:[%s7964_s16 + $0x1] ss:$0 sm:$0xff] }
0x26d2   :  { %6751 = vmatprep.mubr.msk.bf16.mxu0 %vm7312_vm2, %v7313_v23  ;;  %6748 = vmatpush3.bf16.msra.mxu0 %v7054_v42 }
0x26d3   :  { %6749 = vmatprep.subr.bf16.mxu0 %v7313_v23 }
0x26d6   :  { %6750 = vmatpush3.bf16.msra.mxu0 %v7055_v32 }
0x26d7   :  { %6755 = vmatprep.subr.bf16.mxu0 %v7313_v23 }
0x27a4   :  { %v4226_v39 = vpop.f32.mrb[88].mxu0 }
0x27a5   :  { %v4227_v6 = vadd.f32 %v6021_v37, %v4226_v39  ;;  %v6725_v61 = vpop.f32.mrb[89].mxu0 }
0x27a6   :  { %v4229_v30 = vpop.f32.mrb[90].mxu0  ;;  %v7058_v61 = vld [vmem:[%s7957_s10 + $0x20] sm:$0xff]  }
0x27a7   :  { %v6025_v35 = vmul.f32 -1.702, %v4227_v6  ;;  %v4230_v60 = vadd.f32 %v6021_v37, %v4229_v30  ;;  %v6726_v63 = vpop.f32.mrb[91].mxu0  ;;  %v7056_v37 = vld [vmem:[%s7948_s4 + $0x20] sm:$0xff]   ;;  %v7059_v30 = vld [vmem:[%s7957_s10 + $0x28] sm:$0xff]  }
0x27a9   :  { %v4237_v38 = vmul.f32 1.442695, %v6025_v35  ;;  %v6026_v1 = vmul.f32 -1.702, %v4230_v60  ;;  %v6045_v35 = vld [vmem:[%s8010_s1 + $0x2] ss:$0 sm:$0xff] }
0x27ab   :  { %7244 = vpow2.f32 %v4237_v38  ;;  %v4239_v5 = vmul.f32 1.442695, %v6026_v1 }
0x27ad   :  { %7246 = vpow2.f32 %v4239_v5 }
0x27b5   :  { %v7245_v40 = vpop.eup %7244 }
0x27b6   :  { %v4241_v41 = vadd.f32 1.0, %v7245_v40 }
0x27b7   :  { %v7247_v43 = vpop.eup %7246 }
0x27b8   :  { %7248 = vrcp.f32 %v4241_v41  ;;  %v4242_v44 = vadd.f32 1.0, %v7247_v43  ;;  %v6054_v43 = vld [vmem:[%s8017_s21 + $0x2] ss:$0 sm:$0xff] }
0x27ba   :  { %7250 = vrcp.f32 %v4242_v44 }
0x27c2   :  { %v7249_v45 = vpop.eup %7248 }
0x27c3   :  { %v4247_v51 = vmul.f32 %v7249_v45, %v4227_v6  ;;  %v7057_v6 = vld [vmem:[%s7948_s4 + $0x28] sm:$0xff]  }
0x27c4   :  { %v7251_v47 = vpop.eup %7250 }
0x27c5   :  { %v4248_v52 = vmul.f32 %v7251_v47, %v4230_v60 }
0x27c7   :  { %v4249_v53 = vpack.c.bf16 %v4248_v52, %v4247_v51 }
0x27c9   :  { %6744 = vmatmul.mubr.bf16.vlgmr.msra.gmra.mrb[76].mxu1 %v4249_v53 }
0x27ca   :  { %6779 = vmatprep.mubr.msk.bf16.mxu1 %vm7312_vm2, %v7313_v23 }
0x289c   :  { %v4348_v55 = vpop.f32.mrb[76].mxu1 }
0x289d   :  { %v4355_v56 = vadd.f32 %v4348_v55, %v8104_v48  ;;  %v6745_v46 = vpop.f32.mrb[77].mxu1 }
0x289e   :  { %v4351_v57 = vpop.f32.mrb[78].mxu1 }
0x289f   :  { %v8177_v26 = vadd.f32 %v6035_v54, %v4355_v56  ;;  %v4356_v7 = vadd.f32 %v4351_v57, %v8107_v49  ;;  %v6746_v50 = vpop.f32.mrb[79].mxu1  ;;  %v6063_v56 = vld [vmem:[%s8022_s7 + $0x2] ss:$0 sm:$0xff] }
0x28a1   :  { %v8180_v19 = vadd.f32 %v6035_v54, %v4356_v7  ;;  %v4370_v58 = vsel %vm230_vm0, %v8177_v26, 0.0 }
0x28a2   :  { %4371 = vadd.xlane.f32.xlu0 %v4370_v58 }
0x28a3   :  { %v4373_v36 = vsel %vm230_vm0, %v8180_v19, 0.0 }
0x28a4   :  { %4374 = vadd.xlane.f32.xlu1 %v4373_v36 }
0x292f   :  { %v4372_v48 = vpop.xlane.xlu0 %4371 }
0x2930   :  { %v4376_v59 = vmul.f32 0.03125, %v4372_v48  ;;  %v7060_v48 = vld [vmem:[%s7941_s18 + $0x30] sm:$0xff]  }
0x2931   :  { %v4375_v27 = vpop.xlane.xlu1 %4374 }
0x2932   :  { %v4378_v28 = vsub.f32 %v8177_v26, %v4376_v59  ;;  %v4377_v4 = vmul.f32 0.03125, %v4375_v27  ;;  %v7061_v27 = vld [vmem:[%s7941_s18 + $0x38] sm:$0xff]   ;;  %s7341_s18 = smov 46  }
0x2933   :  { %s5725_s16 = sld [smem:[%s8378_s0 + %s7341_s18]]  }
0x2934   :  { %v4379_v49 = vsub.f32 %v8180_v19, %v4377_v4  ;;  %v4380_v34 = vmul.f32 %v4378_v28, %v4378_v28  ;;  %v7063_v4 = vld [vmem:[%s7957_s10 + $0x38] sm:$0xff]  }
0x2936   :  { %v4382_v29 = vsel %vm230_vm0, %v4380_v34, 0.0  ;;  %v4381_v0 = vmul.f32 %v4379_v49, %v4379_v49 }
0x2937   :  { %4383 = vadd.xlane.f32.xlu0 %v4382_v29 }
0x2938   :  { %v4385_v2 = vsel %vm230_vm0, %v4381_v0, 0.0 }
0x2939   :  { %4386 = vadd.xlane.f32.xlu1 %v4385_v2 }
0x29c4   :  { %v4384_v33 = vpop.xlane.xlu0 %4383 }
0x29c5   :  { %v4388_v62 = vmul.f32 0.03125, %v4384_v33 }
0x29c6   :  { %v4387_v10 = vpop.xlane.xlu1 %4386 }
0x29c7   :  { %v4390_v3 = vadd.f32 1e-05, %v4388_v62  ;;  %v4389_v11 = vmul.f32 0.03125, %v4387_v10 }
0x29c9   :  { %7252 = vrsqrt.f32 %v4390_v3  ;;  %v4391_v12 = vadd.f32 1e-05, %v4389_v11  ;;  %v6076_v3 = vld [vmem:[%s8010_s1 + $0x3] ss:$0 sm:$0xff] }
0x29cb   :  { %7254 = vrsqrt.f32 %v4391_v12 }
0x29d3   :  { %v7253_v13 = vpop.eup %7252 }
0x29d4   :  { %v4394_v15 = vmul.f32 %v7253_v13, %v4378_v28  ;;  %v7062_v28 = vld [vmem:[%s7957_s10 + $0x30] sm:$0xff]   ;;  %s7349_s10 = smov 52  }
0x29d5   :  { %v7255_v16 = vpop.eup %7254  ;;  %s5731_s1 = sld [smem:[%s8378_s0 + %s7349_s10]]  }
0x29d6   :  { %v4402_v17 = vmul.f32 %v6038_v14, %v4394_v15  ;;  %v4395_v31 = vmul.f32 %v7255_v16, %v4379_v49 }
0x29d8   :  { %v4403_v22 = vmul.f32 %v6038_v14, %v4395_v31  ;;  %v4410_v24 = vadd.f32 %v6039_v20, %v4402_v17  ;;  %v6094_v31 = vld [vmem:[%s8022_s7 + $0x3] ss:$0 sm:$0xff]  ;;  %s5730_s7 = sld [smem:[%s8378_s0 + %s7342_s24]]  }
0x29da   :  { %v4411_v25 = vadd.f32 %v6039_v20, %v4403_v22 }
0x29dc   :  { %v8197_v39 = vpack.c.bf16 %v4411_v25, %v4410_v24 }
0x29de   :  { %6752 = vmatmul.mubr.msk.bf16.vlgmr.msra.gmra.mrb[92].mxu0 %vm230_vm0, %v8197_v39 }
0x29df   :  { %6756 = vmatpush3.bf16.msra.mxu0 %v7056_v37  ;;  %6759 = vmatprep.mubr.msk.bf16.mxu0 %vm7312_vm2, %v7313_v23 }
0x29e0   :  { %6757 = vmatprep.subr.bf16.mxu0 %v7313_v23 }
0x29e3   :  { %6758 = vmatpush3.bf16.msra.mxu0 %v7057_v6 }
0x29e4   :  { %6763 = vmatprep.subr.bf16.mxu0 %v7313_v23 }
0x29e6   :  { %6760 = vmatmul.mubr.msk.bf16.vlgmr.msra.gmra.mrb[96].mxu0 %vm230_vm0, %v8197_v39 }
0x29e7   :  { %6764 = vmatpush3.bf16.msra.mxu0 %v7058_v61  ;;  %6767 = vmatprep.mubr.msk.bf16.mxu0 %vm7312_vm2, %v7313_v23 }
0x29e8   :  { %6765 = vmatprep.subr.bf16.mxu0 %v7313_v23 }
0x29eb   :  { %6766 = vmatpush3.bf16.msra.mxu0 %v7059_v30 }
0x29ec   :  { %6771 = vmatprep.subr.bf16.mxu0 %v7313_v23 }
0x29ee   :  { %6768 = vmatmul.mubr.msk.bf16.vlgmr.msra.gmra.mrb[100].mxu0 %vm230_vm0, %v8197_v39 }
0x29ef   :  { %6773 = vmatprep.mubr.msk.bf16.mxu0 %vm7312_vm2, %v7313_v23 }
0x2ab1   :  { %v4475_v60 = vpop.f32.mrb[92].mxu0 }
0x2ab2   :  { %v6753_v63 = vpop.f32.mrb[93].mxu0  ;;  %v4476_v1 = vadd.f32 %v6045_v35, %v4475_v60 }
0x2ab3   :  { %v4478_v38 = vpop.f32.mrb[94].mxu0 }
0x2ab4   :  { %v4479_v5 = vadd.f32 %v6045_v35, %v4478_v38  ;;  %v6754_v40 = vpop.f32.mrb[95].mxu0 }
0x2ab6   :  { %v4614_v41 = vpack.c.bf16 %v4479_v5, %v4476_v1 }
0x2ab9   :  { %v4541_v44 = vpop.f32.mrb[96].mxu0 }
0x2aba   :  { %v6761_v45 = vpop.f32.mrb[97].mxu0  ;;  %v4542_v51 = vadd.f32 %v6054_v43, %v4541_v44 }
0x2abb   :  { %v4544_v47 = vpop.f32.mrb[98].mxu0 }
0x2abc   :  { %v4545_v52 = vadd.f32 %v6054_v43, %v4544_v47  ;;  %v6762_v53 = vpop.f32.mrb[99].mxu0 }
0x2abe   :  { %v4615_v55 = vpack.c.bf16 %v4545_v52, %v4542_v51 }
0x2ac0   :  { %v4620_v54 = vsel %vm532_vm1, %v4615_v55, 0  ;;  %v7064_v55 = vld [vmem:[%s7948_s4 + $0x30] sm:$0xff]  }
0x2ac1   :  { %v4607_v46 = vpop.f32.mrb[100].mxu0  ;;  %6772 = vmatpush3.bf16.xpose.msra.mxu0 %v4620_v54 }
0x2ac2   :  { %v6769_v57 = vpop.f32.mrb[101].mxu0  ;;  %6783 = vmatprep.subr.bf16.mxu0 %v7313_v23  ;;  %v4608_v50 = vadd.f32 %v6063_v56, %v4607_v46 }
0x2ac3   :  { %v4610_v7 = vpop.f32.mrb[102].mxu0 }
0x2ac4   :  { %v4611_v58 = vadd.f32 %v6063_v56, %v4610_v7  ;;  %v6770_v36 = vpop.f32.mrb[103].mxu0  ;;  %v7065_v56 = vld [vmem:[%s7948_s4 + $0x38] sm:$0xff]   ;;  %s5728_s4 = sld [smem:[%s8378_s0 + %s7348_s27]]  }
0x2ac5   :  { %v6085_v36 = vld [vmem:[%s8017_s21 + $0x3] ss:$0 sm:$0xff] }
0x2ac6   :  { %v4690_v59 = vpack.c.bf16 %v4611_v58, %v4608_v50 }
0x2ac8   :  { %6774 = vmatmul.mubr.msk.bf16.vlgmr.msra.gmra.mrb[104].mxu0 %vm532_vm1, %v4614_v41  ;;  %6778 = vmatpush3.bf16.msra.mxu1 %v4690_v59 }
0x2ac9   :  { %6784 = vmatpush3.bf16.msra.mxu0 %v7060_v48  ;;  %6787 = vmatprep.mubr.msk.bf16.mxu0 %vm7312_vm2, %v7313_v23 }
0x2aca   :  { %6785 = vmatprep.subr.bf16.mxu0 %v7313_v23  ;;  %6791 = vmatprep.subr.bf16.mxu1 %v7313_v23 }
0x2acd   :  { %6786 = vmatpush3.bf16.msra.mxu0 %v7061_v27 }
0x2ace   :  { %6799 = vmatprep.subr.bf16.mxu0 %v7313_v23 }
0x2ad0   :  { %6788 = vmatmul.mubr.msk.bf16.vlgmr.msra.gmra.mrb[108].mxu0 %vm230_vm0, %v8197_v39 }
0x2ad1   :  { %6800 = vmatpush3.bf16.msra.mxu0 %v7062_v28  ;;  %6803 = vmatprep.mubr.msk.bf16.mxu0 %vm7312_vm2, %v7313_v23 }
0x2ad2   :  { %6801 = vmatprep.subr.bf16.mxu0 %v7313_v23 }
0x2ad5   :  { %6802 = vmatpush3.bf16.msra.mxu0 %v7063_v4 }
0x2ad6   :  { %6813 = vmatprep.subr.bf16.mxu0 %v7313_v23 }
0x2ad8   :  { %6804 = vmatmul.mubr.msk.bf16.vlgmr.msra.gmra.mrb[112].mxu0 %vm230_vm0, %v8197_v39 }
0x2ad9   :  { %6815 = vmatprep.mubr.msk.bf16.mxu0 %vm7312_vm2, %v7313_v23 }
0x2b9b   :  { %v4656_v49 = vpop.f32.mrb[104].mxu0 }
0x2b9c   :  { %v4663_v34 = vmul.f32 0.25, %v4656_v49  ;;  %v6775_v29 = vpop.f32.mrb[105].mxu0 }
0x2b9d   :  { %v4659_v0 = vpop.f32.mrb[106].mxu0 }
0x2b9e   :  { %v4664_v2 = vmul.f32 0.25, %v4659_v0  ;;  %v6776_v42 = vpop.f32.mrb[107].mxu0  ;;  %v4665_v32 = vadd.f32 %v4663_v34, %v8043_v9 }
0x2ba0   :  { %v4667_v33 = vsel %vm532_vm1, %v4665_v32, -inf  ;;  %v4666_v62 = vadd.f32 %v4664_v2, %v8045_v18 }
0x2ba1   :  { %4668 = vmax.xlane.f32.xlu0 %v4667_v33 }
0x2ba2   :  { %v4670_v10 = vsel %vm532_vm1, %v4666_v62, -inf }
0x2ba3   :  { %4671 = vmax.xlane.f32.xlu1 %v4670_v10  ;;  %v4798_v11 = vpop.f32.mrb[108].mxu0 }
0x2ba4   :  { %v6789_v12 = vpop.f32.mrb[109].mxu0  ;;  %v8248_v14 = vadd.f32 %v6076_v3, %v4798_v11 }
0x2ba5   :  { %v4801_v13 = vpop.f32.mrb[110].mxu0 }
0x2ba6   :  { %v8250_v15 = vadd.f32 %v6076_v3, %v4801_v13  ;;  %v6790_v16 = vpop.f32.mrb[111].mxu0 }
0x2ba8   :  { %v4937_v17 = vpack.c.bf16 %v8250_v15, %v8248_v14 }
0x2bab   :  { %v4930_v20 = vpop.f32.mrb[112].mxu0 }
0x2bac   :  { %v6805_v22 = vpop.f32.mrb[113].mxu0  ;;  %v4931_v25 = vadd.f32 %v6094_v31, %v4930_v20 }
0x2bad   :  { %v4933_v24 = vpop.f32.mrb[114].mxu0 }
0x2bae   :  { %v4934_v37 = vadd.f32 %v6094_v31, %v4933_v24  ;;  %v6806_v6 = vpop.f32.mrb[115].mxu0 }
0x2bb0   :  { %v5013_v61 = vpack.c.bf16 %v4934_v37, %v4931_v25 }
0x2bb2   :  { %6814 = vmatpush3.bf16.msra.mxu0 %v5013_v61 }
0x2bb3   :  { %6825 = vmatprep.subr.bf16.mxu0 %v7313_v23 }
0x2c2e   :  { %v4669_v30 = vpop.xlane.xlu0 %4668 }
0x2c2f   :  { %v4673_v35 = vsub.f32 %v4665_v32, %v4669_v30  ;;  %v7066_v30 = vld [vmem:[%s8082_s11 + $0x10] sm:$0xff]  }
0x2c30   :  { %v4672_v60 = vpop.xlane.xlu1 %4671 }
0x2c31   :  { %v4675_v63 = vmul.f32 1.442695, %v4673_v35  ;;  %v4674_v38 = vsub.f32 %v4666_v62, %v4672_v60  ;;  %v7067_v60 = vld [vmem:[%s8082_s11 + $0x18] sm:$0xff]   ;;  %s7343_s11 = smov 47  }
0x2c32   :  { %s5726_s13 = sld [smem:[%s8378_s0 + %s7343_s11]]  }
0x2c33   :  { %7256 = vpow2.f32 %v4675_v63  ;;  %v4677_v1 = vmul.f32 1.442695, %v4674_v38 }
0x2c35   :  { %7258 = vpow2.f32 %v4677_v1 }
0x2c3d   :  { %v7257_v5 = vpop.eup %7256 }
0x2c3e   :  { %v4679_v40 = vsel %vm532_vm1, %v7257_v5, 0.0 }
0x2c3f   :  { %v7259_v41 = vpop.eup %7258  ;;  %4680 = vadd.xlane.f32.xlu0 %v4679_v40 }
0x2c40   :  { %v4682_v43 = vsel %vm532_vm1, %v7259_v41, 0.0 }
0x2c41   :  { %4683 = vadd.xlane.f32.xlu1 %v4682_v43 }
0x2ccc   :  { %v4681_v44 = vpop.xlane.xlu0 %4680 }
0x2ccd   :  { %7260 = vrcp.f32 %v4681_v44 }
0x2cce   :  { %v4684_v45 = vpop.xlane.xlu1 %4683 }
0x2ccf   :  { %7262 = vrcp.f32 %v4684_v45 }
0x2cd7   :  { %v7261_v47 = vpop.eup %7260 }
0x2cd8   :  { %v4687_v52 = vmul.f32 %v7261_v47, %v7257_v5 }
0x2cd9   :  { %v7263_v51 = vpop.eup %7262 }
0x2cda   :  { %v4688_v53 = vmul.f32 %v7263_v51, %v7259_v41 }
0x2cdc   :  { %v4689_v54 = vpack.c.bf16 %v4688_v53, %v4687_v52  ;;  %v6107_v53 = vld [vmem:[%s8100_s20 + $0x1] ss:$0 sm:$0xff] }
0x2cde   :  { %6780 = vmatmul.mubr.msk.bf16.vlgmr.msra.gmra.mrb[80].mxu1 %vm532_vm1, %v4689_v54 }
0x2cdf   :  { %6792 = vmatpush3.bf16.msra.mxu1 %v7064_v55  ;;  %6795 = vmatprep.mubr.msk.bf16.mxu1 %vm7312_vm2, %v7313_v23 }
0x2ce0   :  { %6793 = vmatprep.subr.bf16.mxu1 %v7313_v23 }
0x2ce3   :  { %6794 = vmatpush3.bf16.msra.mxu1 %v7065_v56 }
0x2ce4   :  { %6807 = vmatprep.subr.bf16.mxu1 %v7313_v23 }
0x2ce6   :  { %6796 = vmatmul.mubr.msk.bf16.vlgmr.msra.gmra.mrb[84].mxu1 %vm230_vm0, %v8197_v39 }
0x2ce7   :  { %6809 = vmatprep.mubr.msk.bf16.mxu1 %vm7312_vm2, %v7313_v23 }
0x2db1   :  { %v4728_v46 = vpop.f32.mrb[80].mxu1 }
0x2db2   :  { %v6781_v57 = vpop.f32.mrb[81].mxu1 }
0x2db3   :  { %v4731_v7 = vpop.f32.mrb[82].mxu1 }
0x2db4   :  { %v4735_v50 = vpack.c.bf16 %v4731_v7, %v4728_v46  ;;  %v6782_v58 = vpop.f32.mrb[83].mxu1 }
0x2db9   :  { %v4864_v48 = vpop.f32.mrb[84].mxu1 }
0x2dba   :  { %v6797_v59 = vpop.f32.mrb[85].mxu1  ;;  %v4865_v28 = vadd.f32 %v6085_v36, %v4864_v48 }
0x2dbb   :  { %v4867_v27 = vpop.f32.mrb[86].mxu1 }
0x2dbc   :  { %v4868_v4 = vadd.f32 %v6085_v36, %v4867_v27  ;;  %v6798_v49 = vpop.f32.mrb[87].mxu1 }
0x2dbe   :  { %v4938_v34 = vpack.c.bf16 %v4868_v4, %v4865_v28 }
0x2dc0   :  { %v4943_v29 = vsel %vm532_vm1, %v4938_v34, 0 }
0x2dc1   :  { %6808 = vmatpush3.bf16.xpose.msra.mxu1 %v4943_v29 }
0x2dc2   :  { %6819 = vmatprep.subr.bf16.mxu1 %v7313_v23 }
0x2dc8   :  { %6810 = vmatmul.mubr.msk.bf16.vlgmr.msra.gmra.mrb[88].mxu1 %vm532_vm1, %v4937_v17 }
0x2dc9   :  { %6821 = vmatprep.mubr.msk.bf16.mxu1 %vm7312_vm2, %v7313_v23  ;;  %6820 = vmatpush3.bf16.msra.mxu1 %v7067_v60 }
0x2dca   :  { %6831 = vmatprep.subr.bf16.mxu1 %v7313_v23 }
0x2e9b   :  { %v4979_v39 = vpop.f32.mrb[88].mxu1 }
0x2e9c   :  { %v4986_v0 = vmul.f32 0.25, %v4979_v39  ;;  %v6811_v2 = vpop.f32.mrb[89].mxu1  ;;  %v7068_v39 = vld [vmem:[%s8120_s30 + $0x10] sm:$0xff]  }
0x2e9d   :  { %v4982_v42 = vpop.f32.mrb[90].mxu1 }
0x2e9e   :  { %v4988_v32 = vadd.f32 %v4986_v0, %v8043_v9  ;;  %v4987_v33 = vmul.f32 0.25, %v4982_v42  ;;  %v6812_v62 = vpop.f32.mrb[91].mxu1  ;;  %v7069_v0 = vld [vmem:[%s8120_s30 + $0x18] sm:$0xff]  }
0x2ea0   :  { %v4989_v10 = vadd.f32 %v4987_v33, %v8045_v18  ;;  %v4990_v3 = vsel %vm532_vm1, %v4988_v32, -inf }
0x2ea1   :  { %4991 = vmax.xlane.f32.xlu0 %v4990_v3 }
0x2ea2   :  { %v4993_v11 = vsel %vm532_vm1, %v4989_v10, -inf }
0x2ea3   :  { %4994 = vmax.xlane.f32.xlu1 %v4993_v11  ;;  %v6110_v11 = vld [vmem:[%s8129_s25 + $0x1] ss:$0 sm:$0xff] }
0x2f2e   :  { %v4992_v12 = vpop.xlane.xlu0 %4991 }
0x2f2f   :  { %v4996_v13 = vsub.f32 %v4988_v32, %v4992_v12 }
0x2f30   :  { %v4995_v14 = vpop.xlane.xlu1 %4994 }
0x2f31   :  { %v4998_v15 = vmul.f32 1.442695, %v4996_v13  ;;  %v4997_v16 = vsub.f32 %v4989_v10, %v4995_v14 }
0x2f33   :  { %7264 = vpow2.f32 %v4998_v15  ;;  %v5000_v17 = vmul.f32 1.442695, %v4997_v16  ;;  %v6111_v16 = vld [vmem:[%s8134_s23 + $0x1] ss:$0 sm:$0xff] }
0x2f35   :  { %7266 = vpow2.f32 %v5000_v17 }
0x2f3d   :  { %v7265_v9 = vpop.eup %7264 }
0x2f3e   :  { %v5002_v31 = vsel %vm532_vm1, %v7265_v9, 0.0 }
0x2f3f   :  { %v7267_v20 = vpop.eup %7266  ;;  %5003 = vadd.xlane.f32.xlu0 %v5002_v31 }
0x2f40   :  { %v5005_v18 = vsel %vm532_vm1, %v7267_v20, 0.0 }
0x2f41   :  { %5006 = vadd.xlane.f32.xlu1 %v5005_v18  ;;  %v7070_v18 = vld [vmem:[%s8144_s6 + $0x40] sm:$0xff]  }
0x2fcc   :  { %v5004_v22 = vpop.xlane.xlu0 %5003 }
0x2fcd   :  { %7268 = vrcp.f32 %v5004_v22  ;;  %v7071_v22 = vld [vmem:[%s8144_s6 + $0x48] sm:$0xff]  }
0x2fce   :  { %v5007_v24 = vpop.xlane.xlu1 %5006 }
0x2fcf   :  { %7270 = vrcp.f32 %v5007_v24  ;;  %v7072_v24 = vld [vmem:[%s8144_s6 + $0x50] sm:$0xff]  }
0x2fd7   :  { %v7269_v25 = vpop.eup %7268 }
0x2fd8   :  { %v5010_v6 = vmul.f32 %v7269_v25, %v7265_v9  ;;  %v7073_v25 = vld [vmem:[%s8144_s6 + $0x58] sm:$0xff]  }
0x2fd9   :  { %v7271_v37 = vpop.eup %7270 }
0x2fda   :  { %v5011_v61 = vmul.f32 %v7271_v37, %v7267_v20  ;;  %v7074_v37 = vld [vmem:[%s8144_s6 + $0x60] sm:$0xff]  }
0x2fdc   :  { %v5012_v35 = vpack.c.bf16 %v5011_v61, %v5010_v6  ;;  %v7075_v6 = vld [vmem:[%s8144_s6 + $0x68] sm:$0xff]   ;;  %v7076_v61 = vld [vmem:[%s8144_s6 + $0x70] sm:$0xff]  }
0x2fde   :  { %6816 = vmatmul.mubr.msk.bf16.vlgmr.msra.gmra.mrb[116].mxu0 %vm532_vm1, %v5012_v35  ;;  %v6117_v35 = vld [vmem:[%s8165_s19 + $0x1] ss:$0 sm:$0xff] }
0x2fdf   :  { %6826 = vmatpush3.bf16.msra.mxu0 %v7066_v30  ;;  %6827 = vmatprep.mubr.msk.bf16.mxu0 %vm7312_vm2, %v7313_v23  ;;  %v7077_v30 = vld [vmem:[%s8144_s6 + $0x78] sm:$0xff]  }
0x2fe0   :  { %6839 = vmatprep.subr.bf16.mxu0 %v7313_v23 }
0x2fe6   :  { %6828 = vmatmul.mubr.msk.bf16.vlgmr.msra.gmra.mrb[120].mxu0 %vm532_vm1, %v4735_v50 }
0x2fe7   :  { %6855 = vmatprep.mubr.msk.bf16.mxu0 %vm7312_vm2, %v7313_v23  ;;  %6840 = vmatpush3.bf16.msra.mxu0 %v7070_v18 }
0x2fe8   :  { %6841 = vmatprep.subr.bf16.mxu0 %v7313_v23 }
0x2feb   :  { %6842 = vmatpush3.bf16.msra.mxu0 %v7071_v22 }
0x2fec   :  { %6843 = vmatprep.subr.bf16.mxu0 %v7313_v23 }
0x2fef   :  { %6844 = vmatpush3.bf16.msra.mxu0 %v7072_v24 }
0x2ff0   :  { %6845 = vmatprep.subr.bf16.mxu0 %v7313_v23 }
0x2ff3   :  { %6846 = vmatpush3.bf16.msra.mxu0 %v7073_v25 }
0x2ff4   :  { %6847 = vmatprep.subr.bf16.mxu0 %v7313_v23 }
0x2ff7   :  { %6848 = vmatpush3.bf16.msra.mxu0 %v7074_v37 }
0x2ff8   :  { %6849 = vmatprep.subr.bf16.mxu0 %v7313_v23 }
0x2ffb   :  { %6850 = vmatpush3.bf16.msra.mxu0 %v7075_v6 }
0x2ffc   :  { %6851 = vmatprep.subr.bf16.mxu0 %v7313_v23 }
0x2fff   :  { %6852 = vmatpush3.bf16.msra.mxu0 %v7076_v61 }
0x3000   :  { %6853 = vmatprep.subr.bf16.mxu0 %v7313_v23 }
0x3003   :  { %6854 = vmatpush3.bf16.msra.mxu0 %v7077_v30 }
0x30b1   :  { %v5051_v63 = vpop.f32.mrb[116].mxu0 }
0x30b2   :  { %v6817_v38 = vpop.f32.mrb[117].mxu0 }
0x30b3   :  { %v5054_v1 = vpop.f32.mrb[118].mxu0 }
0x30b4   :  { %v5058_v5 = vpack.c.bf16 %v5054_v1, %v5051_v63  ;;  %v6818_v40 = vpop.f32.mrb[119].mxu0 }
0x30b6   :  { %6822 = vmatmul.mubr.msk.bf16.vlgmr.msra.gmra.mrb[92].mxu1 %vm532_vm1, %v5058_v5 }
0x30b7   :  { %6835 = vmatprep.mubr.msk.bf16.mxu1 %vm7312_vm2, %v7313_v23  ;;  %6832 = vmatpush3.bf16.msra.mxu1 %v7068_v39 }
0x30b8   :  { %6833 = vmatprep.subr.bf16.mxu1 %v7313_v23 }
0x30b9   :  { %v5155_v41 = vpop.f32.mrb[120].mxu0 }
0x30ba   :  { %v6829_v43 = vpop.f32.mrb[121].mxu0 }
0x30bb   :  { %v5158_v44 = vpop.f32.mrb[122].mxu0  ;;  %6834 = vmatpush3.bf16.msra.mxu1 %v7069_v0 }
0x30bc   :  { %v6830_v45 = vpop.f32.mrb[123].mxu0  ;;  %6887 = vmatprep.subr.bf16.mxu1 %v7311_v21 }
0x3189   :  { %v5105_v47 = vpop.f32.mrb[92].mxu1 }
0x318a   :  { %v5156_v51 = vadd.f32 %v5155_v41, %v5105_v47  ;;  %v6823_v52 = vpop.f32.mrb[93].mxu1 }
0x318b   :  { %v5108_v55 = vpop.f32.mrb[94].mxu1 }
0x318c   :  { %v5162_v54 = vadd.f32 %v5156_v51, %v8177_v26  ;;  %v5159_v56 = vadd.f32 %v5158_v44, %v5108_v55  ;;  %v6824_v46 = vpop.f32.mrb[95].mxu1 }
0x318e   :  { %v8296_v57 = vadd.f32 %v6107_v53, %v5162_v54  ;;  %v5163_v7 = vadd.f32 %v5159_v56, %v8180_v19 }
0x3190   :  { %v8299_v50 = vadd.f32 %v6107_v53, %v5163_v7  ;;  %v5178_v58 = vsel %vm230_vm0, %v8296_v57, 0.0 }
0x3191   :  { %5179 = vadd.xlane.f32.xlu0 %v5178_v58 }
0x3192   :  { %v5181_v36 = vsel %vm230_vm0, %v8299_v50, 0.0 }
0x3193   :  { %5182 = vadd.xlane.f32.xlu1 %v5181_v36 }
0x321e   :  { %v5180_v48 = vpop.xlane.xlu0 %5179 }
0x321f   :  { %v5184_v26 = vmul.f32 0.03125, %v5180_v48 }
0x3220   :  { %v5183_v59 = vpop.xlane.xlu1 %5182 }
0x3221   :  { %v5186_v27 = vsub.f32 %v8296_v57, %v5184_v26  ;;  %v5185_v28 = vmul.f32 0.03125, %v5183_v59  ;;  %v6148_v26 = vld [vmem:[%s8173_s9 + $0x1] ss:$0 sm:$0xff] }
0x3223   :  { %v5187_v19 = vsub.f32 %v8299_v50, %v5185_v28  ;;  %v5188_v4 = vmul.f32 %v5186_v27, %v5186_v27 }
0x3225   :  { %v5190_v49 = vsel %vm230_vm0, %v5188_v4, 0.0  ;;  %v5189_v34 = vmul.f32 %v5187_v19, %v5187_v19 }
0x3226   :  { %5191 = vadd.xlane.f32.xlu0 %v5190_v49 }
0x3227   :  { %v5193_v29 = vsel %vm230_vm0, %v5189_v34, 0.0  ;;  %v3150_v34 = vld [vmem:[%s5725_s16] sm:$0xff] }
0x3228   :  { %5194 = vadd.xlane.f32.xlu1 %v5193_v29 }
0x32b3   :  { %v5192_v2 = vpop.xlane.xlu0 %5191 }
0x32b4   :  { %v5196_v42 = vmul.f32 0.03125, %v5192_v2 }
0x32b5   :  { %v5195_v32 = vpop.xlane.xlu1 %5194 }
0x32b6   :  { %v5198_v33 = vadd.f32 1e-05, %v5196_v42  ;;  %v5197_v62 = vmul.f32 0.03125, %v5195_v32 }
0x32b8   :  { %7272 = vrsqrt.f32 %v5198_v33  ;;  %v5199_v10 = vadd.f32 1e-05, %v5197_v62 }
0x32ba   :  { %7274 = vrsqrt.f32 %v5199_v10 }
0x32c2   :  { %v7273_v3 = vpop.eup %7272 }
0x32c3   :  { %v5202_v12 = vmul.f32 %v7273_v3, %v5186_v27 }
0x32c4   :  { %v7275_v13 = vpop.eup %7274 }
0x32c5   :  { %v5210_v14 = vmul.f32 %v6110_v11, %v5202_v12  ;;  %v5203_v15 = vmul.f32 %v7275_v13, %v5187_v19  ;;  %v7079_v12 = vld [vmem:[%s5726_s13 + $0x8] sm:$0xff]  }
0x32c7   :  { %v5211_v17 = vmul.f32 %v6110_v11, %v5203_v15  ;;  %v5218_v9 = vadd.f32 %v6111_v16, %v5210_v14  ;;  %v7078_v11 = vld [vmem:[%s5726_s13] sm:$0xff]  }
0x32c9   :  { %v5219_v31 = vadd.f32 %v6111_v16, %v5211_v17  ;;  %v6151_v17 = vld [vmem:[%s5724_s2] ss:$0 sm:$0xff] }
0x32cb   :  { %v5220_v20 = vpack.c.bf16 %v5219_v31, %v5218_v9 }
0x32cd   :  { %6836 = vmatmul.mubr.msk.bf16.vlgmr.msra.gmra.mrb[96].mxu1 %vm230_vm0, %v5220_v20  ;;  %v5581_v20 = vld [vmem:[%s5727_s14] sm:$0xff] }
0x32ce   :  { %6863 = vmatprep.mubr.msk.f32.mxu1 %vm7312_vm2, %v7313_v23 }
0x33a0   :  { %v5283_v60 = vpop.f32.mrb[96].mxu1 }
0x33a1   :  { %v5284_v63 = vadd.f32 %v6117_v35, %v5283_v60  ;;  %v6837_v38 = vpop.f32.mrb[97].mxu1 }
0x33a2   :  { %v5286_v1 = vpop.f32.mrb[98].mxu1 }
0x33a3   :  { %v6121_v5 = vmul.f32 -1.702, %v5284_v63  ;;  %v5287_v40 = vadd.f32 %v6117_v35, %v5286_v1  ;;  %v6838_v41 = vpop.f32.mrb[99].mxu1 }
0x33a5   :  { %v5294_v43 = vmul.f32 1.442695, %v6121_v5  ;;  %v6122_v44 = vmul.f32 -1.702, %v5287_v40 }
0x33a7   :  { %7276 = vpow2.f32 %v5294_v43  ;;  %v5296_v45 = vmul.f32 1.442695, %v6122_v44 }
0x33a9   :  { %7278 = vpow2.f32 %v5296_v45 }
0x33b1   :  { %v7277_v47 = vpop.eup %7276 }
0x33b2   :  { %v5298_v51 = vadd.f32 1.0, %v7277_v47 }
0x33b3   :  { %v7279_v52 = vpop.eup %7278 }
0x33b4   :  { %7280 = vrcp.f32 %v5298_v51  ;;  %v5299_v53 = vadd.f32 1.0, %v7279_v52 }
0x33b6   :  { %7282 = vrcp.f32 %v5299_v53 }
0x33be   :  { %v7281_v55 = vpop.eup %7280 }
0x33bf   :  { %v5304_v56 = vmul.f32 %v7281_v55, %v5284_v63 }
0x33c0   :  { %v7283_v54 = vpop.eup %7282 }
0x33c1   :  { %v5305_v46 = vmul.f32 %v7283_v54, %v5287_v40 }
0x33c3   :  { %v5306_v7 = vpack.c.bf16 %v5305_v46, %v5304_v56 }
0x33c5   :  { %6856 = vmatmul.mubr.bf16.vlgmr.msra.gmra.mrb[124].mxu0 %v5306_v7 }
0x3498   :  { %v5406_v58 = vpop.f32.mrb[124].mxu0 }
0x3499   :  { %v5413_v36 = vadd.f32 %v5406_v58, %v8296_v57  ;;  %v6857_v48 = vpop.f32.mrb[125].mxu0 }
0x349a   :  { %v5409_v59 = vpop.f32.mrb[126].mxu0 }
0x349b   :  { %v5414_v27 = vadd.f32 %v5409_v59, %v8299_v50  ;;  %v6858_v28 = vpop.f32.mrb[127].mxu0  ;;  %v5423_v19 = vadd.f32 %v6148_v26, %v5413_v36  ;;  %v5588_v50 = vmul.f32 %v7911_v8, %v7911_v8 }
0x349d   :  { %v5424_v4 = vadd.f32 %v6148_v26, %v5414_v27 }
0x349f   :  { %v6888_v49 = vpack.c.bf16 %v5424_v4, %v5423_v19 }
0x34a1   :  { %6889 = vmatpush3.bf16.msra.mxu1 %v6888_v49 }
0x34a2   :  { %6866 = vmatprep.subr.bf16.mxu1 %v7313_v23 }
0x34a4   :  { %6864 = vmatmul.mubr.msk.f32.vlgmr.msra.gmra.mrb[50].mxu1 %vm532_vm1, %v3150_v34 }
0x34a5   :  { %6870 = vmatprep.mubr.msk.bf16.mxu1 %vm7312_vm2, %v7313_v23  ;;  %6867 = vmatpush3.bf16.msra.mxu1 %v7078_v11 }
0x34a6   :  { %6868 = vmatprep.subr.bf16.mxu1 %v7313_v23 }
0x34a9   :  { %6869 = vmatpush3.bf16.msra.mxu1 %v7079_v12 }
0x34aa   :  { %6890 = vmatprep.subr.bf16.mxu1 %v7311_v21 }
0x3577   :  { %v5494_v57 = vpop.f32.mrb[50].mxu1 }
0x3578   :  { %v5498_v29 = vsel %vm230_vm0, %v5494_v57, 0.0  ;;  %v6865_v39 = vpop.f32.mrb[51].mxu1 }
0x3579   :  { %5499 = vadd.xlane.f32.xlu0 %v5498_v29 }
0x357d   :  { %5589 = vadd.xlane.f32.xlu0 %v5588_v50 }
0x3606   :  { %v5500_v0 = vpop.xlane.xlu0 %5499 }
0x3607   :  { %v5501_v2 = vmul.f32 0.03125, %v5500_v0 }
0x3609   :  { %v5502_v42 = vsub.f32 %v5494_v57, %v5501_v2 }
0x360a   :  { %v5590_v32 = vpop.xlane.xlu0 %5589 }
0x360b   :  { %7284 = vrsqrt.f32 %v5590_v32  ;;  %v5503_v33 = vmul.f32 %v5502_v42, %v5502_v42 }
0x360d   :  { %v5504_v62 = vsel %vm230_vm0, %v5503_v33, 0.0 }
0x360e   :  { %5505 = vadd.xlane.f32.xlu1 %v5504_v62 }
0x3615   :  { %v7285_v10 = vpop.eup %7284 }
0x3616   :  { %v5592_v3 = vmul.f32 %v7285_v10, %v7911_v8  ;;  %v6150_v8 = vld [vmem:[%s5723_s3] ss:$0 sm:$0xff] }
0x3618   :  { %5666 = vst [vmem:[%s5730_s7] sm:$0xff] %v5592_v3  ;;  %v6891_v22 = vpack.c.bf16 %v5581_v20, %v5592_v3 }
0x369b   :  { %v5506_v13 = vpop.xlane.xlu1 %5505 }
0x369c   :  { %v5507_v14 = vmul.f32 0.03125, %v5506_v13 }
0x369e   :  { %v5508_v15 = vadd.f32 1e-05, %v5507_v14 }
0x36a0   :  { %7286 = vrsqrt.f32 %v5508_v15 }
0x36aa   :  { %v7287_v21 = vpop.eup %7286 }
0x36ab   :  { %v5510_v16 = vmul.f32 %v7287_v21, %v5502_v42 }
0x36ad   :  { %v5517_v9 = vmul.f32 %v6150_v8, %v5510_v16 }
0x36af   :  { %v5524_v31 = vadd.f32 %v6151_v17, %v5517_v9 }
0x36b1   :  { %v5525_v18 = vpack.c.bf16 %v5524_v31, %v5524_v31 }
0x36b3   :  { %6871 = vmatmul.mubr.msk.bf16.vlgmr.msra.gmra.mrb[100].mxu1 %vm230_vm0, %v5525_v18 }
0x36b4   :  { %6892 = vmatpush3.bf16.xpose.msra.mxu1 %v6891_v22  ;;  %6878 = vmatprep.mubr.msk.f32.mxu1 %vm7312_vm2, %v7313_v23  ;;  %v5663_v23 = vstv %s5728_s4 }
0x3786   :  { %v5575_v24 = vpop.f32.mrb[100].mxu1 }
0x3787   :  { %v5583_v25 = vmul.f32 %v5575_v24, %v5575_v24  ;;  %v6872_v37 = vpop.f32.mrb[101].mxu1 }
0x3788   :  { %v5578_v6 = vpop.f32.mrb[102].mxu1 }
0x3789   :  { %5584 = vadd.xlane.f32.xlu1 %v5583_v25  ;;  %v6873_v61 = vpop.f32.mrb[103].mxu1 }
0x3816   :  { %v5585_v30 = vpop.xlane.xlu1 %5584 }
0x3817   :  { %7288 = vrsqrt.f32 %v5585_v30 }
0x3821   :  { %v7289_v35 = vpop.eup %7288 }
0x3822   :  { %v5587_v60 = vmul.f32 %v7289_v35, %v5575_v24 }
0x3824   :  { %6879 = vmatmul.mubr.f32.vlgmr.msra.gmra.mrb[104].mxu1 %v5587_v60  ;;  %5665 = vst [vmem:[%s5729_s26] sm:$0xff] %v5587_v60 }
0x38f7   :  { %v5659_v63 = vpop.f32.mrb[104].mxu1 }
0x38f8   :  { %v5664_v38 = vmul.f32 %v5663_v23, %v5659_v63  ;;  %v6880_v1 = vpop.f32.mrb[105].mxu1 }
0x38fa   :  { %5667 = vst [vmem:[%s5731_s1] sm:$0xff] %v5664_v38 }

</bundles_post_ra>
